<compile_context>
chip_gen: v7x
topology: tpu7x:2x2x1
jax: 0.10.0
libtpu: 0.0.40
codegen_flags: <defaults>
</compile_context>

<pallas_src>
import jax
import jax.numpy as jnp
from jax import lax
from jax.experimental import pallas as pl
from jax.experimental.pallas import tpu as pltpu

_K = 5            # Conv1d kernel size (padding = 2 -> 'same')
_PAD = _K // 2    # halo positions on each side
_C = 64           # kernel-side channel width of every stage (conv2's 32 is zero-padded)


def textcnn_kernel(x_ref, w1_ref, b1_ref, w2_ref, b2_ref, w3_ref, b3_ref,
                   wfc_ref, bfc_ref, o_ref, halo_ref, col_ref):
    M, Cin = x_ref.shape            # M = L * B rows (position-major, sample-minor)
    B, _ = o_ref.shape              # batch tile
    L = M // B
    H = _PAD * B                    # halo rows on each side
    CH = halo_ref.shape[1]

    # Zero the halo rows (never written by the stage stores below).  Scratch is
    # per-core and uninitialized, and with a "parallel" grid axis program_id()==0
    # may never run on the second TensorCore (v7x), so do this every step (tiny).
    halo_ref[pl.ds(0, H), :] = jnp.zeros((H, CH), halo_ref.dtype)
    halo_ref[pl.ds(H + M, H), :] = jnp.zeros((H, CH), halo_ref.dtype)

    def conv_relu_pool(src_c, w_ref, b_ref):
        # Source activations live in halo_ref rows [H, H+M), lanes [0, src_c);
        # halo rows are zero.  Conv1d(k=5, padding=2) as ONE im2col MXU matmul:
        # build the (M, 5*src_c) operand in the reusable col scratch with 5 static,
        # sublane-aligned copies (no rolls, no masks, no concatenate).
        for k in range(_K):
            col_ref[:, k * src_c:(k + 1) * src_c] = halo_ref[pl.ds(k * B, M), :src_c]
        y = jnp.dot(col_ref[:, :_K * src_c], w_ref[...],
                    preferred_element_type=jnp.float32)            # (M, 64) f32
        y = jnp.maximum(y + b_ref[...], 0.0).astype(jnp.bfloat16)  # bias+ReLU -> bf16
        # MaxPool1d(kernel=3, stride=1, padding=1): ReLU output >= 0, so the zero
        # halo rows are equivalent to -inf padding for the max.
        halo_ref[pl.ds(H, M), :_C] = y
        p = jnp.maximum(y, halo_ref[pl.ds(H - B, M), :_C])
        p = jnp.maximum(p, halo_ref[pl.ds(H + B, M), :_C])
        halo_ref[pl.ds(H, M), :_C] = p      # becomes the next stage's input

    # All stages flow through the halo scratch; activations stay bf16 end-to-end.
    halo_ref[pl.ds(H, M), :Cin] = x_ref[...]
    conv_relu_pool(Cin, w1_ref, b1_ref)     # vec_dim -> 64
    conv_relu_pool(_C, w2_ref, b2_ref)      # 64 -> 64 (32 real + 32 zero-padded)
    conv_relu_pool(_C, w3_ref, b3_ref)      # 64 -> 64

    # TODO(synk): nn.Dropout(0.5) is treated as identity (inference mode); no RNG mask.
    # Flatten to (B, L*64): position-major rows make each per-position (B, 64) slab a
    # contiguous sublane slice, so the whole classifier is a single MXU matmul.
    flat = jnp.concatenate(
        [halo_ref[pl.ds(H + l * B, B), :_C] for l in range(L)], axis=-1)
    out = jnp.dot(flat, wfc_ref[...], preferred_element_type=jnp.float32) + bfc_ref[...]
    o_ref[...] = out.astype(o_ref.dtype)


def _round_up(x, m):
    return ((x + m - 1) // m) * m


def _pick_b_tile(N, L, Cin, requested):
    """Batch-tile heuristic: big blocks, multiple of 16, VMEM-budgeted, >=2 blocks."""
    ch = max(_C, Cin)
    bt = 256 if requested is None else int(requested)
    bt = max(16, min(512, _round_up(bt, 16)))     # 16: bf16 sublane packing alignment
    bt = min(bt, _round_up(max(N, 1), 16))        # don't exceed the (padded) batch
    if N >= 32:
        # v7x megacore: keep >= 2 grid blocks so the "parallel" batch axis can shard
        # across both TensorCores (harmless on 1-TC v5e/v6e).
        bt = min(bt, _round_up((N + 1) // 2, 16))

    # Per-step VMEM estimate (v7x has only 64 MiB physical): double-buffered input
    # block + halo + im2col scratch + f32/bf16 working copies + fc operand.
    budget = 28 * 1024 * 1024

    def est(b):
        m = L * b
        return (2 * m * Cin * 2                   # x block, double buffered (bf16)
                + (m + 2 * _PAD * 2 * b) * ch * 2  # halo scratch
                + m * _K * ch * 2                 # im2col scratch
                + m * _C * (4 + 2 + 2)            # y (f32) + pooled bf16 live values
                + b * L * _C * 2)                 # flat fc operand

    while bt > 16 and est(bt) > budget:
        bt -= 16
    return bt


def textcnn_forward(x_ncl, kparams, *, b_tile=None):
    """Forward pass.  x_ncl: (N, vec_dim, sentence_size), PyTorch Conv1d layout."""
    w1, b1, w2, b2, w3, b3, wfc, bfc = kparams
    N, Cin, L = x_ncl.shape
    label = wfc.shape[-1]

    bt = _pick_b_tile(N, L, Cin, b_tile)
    n_pad = _round_up(max(N, 1), bt)
    nb = n_pad // bt
    M = L * bt
    ch = max(_C, Cin)                     # halo / im2col lane width

    x = x_ncl.astype(jnp.bfloat16)        # bf16 end-to-end: half the HBM DMA bytes
    if n_pad != N:
        x = jnp.pad(x, ((0, n_pad - N), (0, 0), (0, 0)))
    # (N, C, L) -> per-block position-major rows (l*bt + b, C); one XLA transpose.
    x_lm = x.reshape(nb, bt, Cin, L).transpose(0, 3, 1, 2).reshape(nb * M, Cin)

    out = pl.pallas_call(
        textcnn_kernel,
        out_shape=jax.ShapeDtypeStruct((n_pad, label), jnp.float32),
        grid_spec=pltpu.PrefetchScalarGridSpec(
            num_scalar_prefetch=0,
            grid=(nb,),
            in_specs=[
                pl.BlockSpec((M, Cin), lambda n: (n, 0)),
                pl.BlockSpec(w1.shape, lambda n: (0, 0)),
                pl.BlockSpec(b1.shape, lambda n: (0, 0)),
                pl.BlockSpec(w2.shape, lambda n: (0, 0)),
                pl.BlockSpec(b2.shape, lambda n: (0, 0)),
                pl.BlockSpec(w3.shape, lambda n: (0, 0)),
                pl.BlockSpec(b3.shape, lambda n: (0, 0)),
                pl.BlockSpec(wfc.shape, lambda n: (0, 0)),
                pl.BlockSpec(bfc.shape, lambda n: (0, 0)),
            ],
            out_specs=pl.BlockSpec((bt, label), lambda n: (n, 0)),
            scratch_shapes=[
                pltpu.VMEM(((L + 2 * _PAD) * bt, ch), jnp.bfloat16),  # halo-padded acts
                pltpu.VMEM((M, _K * ch), jnp.bfloat16),               # im2col operand
            ],
        ),
        compiler_params=pltpu.CompilerParams(
            # Batch blocks are independent -> megacore-shardable on v7x.
            dimension_semantics=("parallel",),
            # Raise scoped VMEM (v5e default is 16 MiB), stay under v7x's 64 MiB.
            vmem_limit_bytes=48 * 1024 * 1024),
    )(x_lm, w1, b1, w2, b2, w3, b3, wfc, bfc)
    return out[:N]


def init_params(key, vec_dim, sentence_size, label_size):
    """Deterministic synthetic parameters in PyTorch layout (default uniform init)."""
    def conv(k, cin, cout):
        kw, kb = jax.random.split(k)
        bound = 1.0 / (cin * _K) ** 0.5
        w = jax.random.uniform(kw, (cout, cin, _K), jnp.float32, -bound, bound)
        b = jax.random.uniform(kb, (cout,), jnp.float32, -bound, bound)
        return w, b

    k1, k2, k3, k4 = jax.random.split(key, 4)
    w1, b1 = conv(k1, vec_dim, 64)
    w2, b2 = conv(k2, 64, 32)
    w3, b3 = conv(k3, 32, 64)            # intended conv3 (see NOTE at top)
    kfw, kfb = jax.random.split(k4)
    fan_in = sentence_size * 64
    bound = 1.0 / fan_in ** 0.5
    wfc = jax.random.uniform(kfw, (label_size, fan_in), jnp.float32, -bound, bound)
    bfc = jax.random.uniform(kfb, (label_size,), jnp.float32, -bound, bound)
    return (w1, b1, w2, b2, w3, b3, wfc, bfc)


def prepare_params(pt_params, sentence_size):
    """Convert PyTorch-layout params to the kernel's im2col / flattened layouts."""
    w1, b1, w2, b2, w3, b3, wfc, bfc = pt_params

    def im2col(w_pt):   # (Cout, Cin, K) -> (K*Cin, Cout), rows ordered (k, ci)
        return jnp.transpose(w_pt, (2, 1, 0)).reshape(-1, w_pt.shape[0])

    # Zero-pad conv2's output channels (and conv3's matching input channels) 32 -> 64.
    # Padded channels have weight 0 and bias 0, stay exactly 0 through ReLU + maxpool
    # and hit zero rows of conv3's weight, so results are unchanged.
    w2p = jnp.pad(w2, ((0, _C - w2.shape[0]), (0, 0), (0, 0)))
    b2p = jnp.pad(b2, (0, _C - b2.shape[0]))
    w3p = jnp.pad(w3, ((0, 0), (0, _C - w3.shape[1]), (0, 0)))

    kw1 = im2col(w1).astype(jnp.bfloat16)
    kw2 = im2col(w2p).astype(jnp.bfloat16)
    kw3 = im2col(w3p).astype(jnp.bfloat16)
    kb1 = b1.reshape(1, -1).astype(jnp.float32)
    kb2 = b2p.reshape(1, -1).astype(jnp.float32)
    kb3 = b3.reshape(1, -1).astype(jnp.float32)

    label = wfc.shape[0]
    # PyTorch x.view(N, -1) flattens (N, 64, L) channel-major: flat[c*L + l].
    # The kernel flattens position-major: flat[l*64 + c]; permute the fc weight so
    # both orderings hit the same coefficients.
    kwfc = jnp.transpose(wfc.reshape(label, _C, sentence_size), (2, 1, 0))
    kwfc = kwfc.reshape(sentence_size * _C, label).astype(jnp.bfloat16)
    kbfc = bfc.reshape(1, -1).astype(jnp.float32)
    return (kw1, kb1, kw2, kb2, kw3, kb3, kwfc, kbfc)


def reference_forward(x_ncl, pt_params):
    """Pure-JAX f32 reference mirroring the PyTorch forward (NCL layout)."""
    w1, b1, w2, b2, w3, b3, wfc, bfc = pt_params

    def block(x, w, b):
        y = lax.conv_general_dilated(x, w, (1,), [(2, 2)],
                                     dimension_numbers=('NCH', 'OIH', 'NCH'))
        y = jnp.maximum(y + b.reshape(1, -1, 1), 0.0)
        return lax.reduce_window(y, -jnp.inf, lax.max, (1, 1, 3), (1, 1, 1),
                                 [(0, 0), (0, 0), (1, 1)])

    h = block(x_ncl, w1, b1)
    h = block(h, w2, b2)
    h = block(h, w3, b3)
    flat = h.reshape(h.shape[0], -1)            # x.view(N, -1): channel-major flatten
    return flat @ wfc.T + bfc.reshape(1, -1)


if __name__ == "__main__":
    vec_dim, sentence_size, label_size, batch = 16, 16, 8, 2
    key = jax.random.PRNGKey(0)
    kx, kp = jax.random.split(key)
    # PyTorch Conv1d input layout: (N, C=vec_dim, L=sentence_size)
    x = jax.random.normal(kx, (batch, vec_dim, sentence_size), jnp.float32)
    pt_params = init_params(kp, vec_dim, sentence_size, label_size)
    kparams = prepare_params(pt_params, sentence_size)

    y = jax.block_until_ready(jax.jit(textcnn_forward)(x, kparams))
    y_ref = reference_forward(x, pt_params)

    assert y.shape == (batch, label_size), y.shape
    assert bool(jnp.all(jnp.isfinite(y)))
    # bf16 matmul operands (f32 accumulation) vs. the f32 reference -> loose tolerance.
    assert jnp.allclose(y, y_ref, rtol=5e-2, atol=5e-2), (y, y_ref)
    print("KERNEL_OK")
</pallas_src>

<mosaic_0001>
module attributes {stable_mosaic.version = 11 : i64} {
  func.func @textcnn_kernel(%arg0: i32, %arg1: memref<256x16xbf16, #tpu.memory_space<vmem>>, %arg2: memref<80x64xbf16, #tpu.memory_space<vmem>>, %arg3: memref<1x64xf32, #tpu.memory_space<vmem>>, %arg4: memref<320x64xbf16, #tpu.memory_space<vmem>>, %arg5: memref<1x64xf32, #tpu.memory_space<vmem>>, %arg6: memref<320x64xbf16, #tpu.memory_space<vmem>>, %arg7: memref<1x64xf32, #tpu.memory_space<vmem>>, %arg8: memref<1024x8xbf16, #tpu.memory_space<vmem>>, %arg9: memref<1x8xf32, #tpu.memory_space<vmem>>, %arg10: memref<16x8xf32, #tpu.memory_space<vmem>>, %arg11: memref<320x64xbf16, #tpu.memory_space<vmem>>, %arg12: memref<256x320xbf16, #tpu.memory_space<vmem>>) attributes {dimension_semantics = [#tpu.dimension_semantics<parallel>], iteration_bounds = array<i64: 1>, scalar_prefetch = 0 : i64, scratch_operands = 2 : i64, tpu.core_type = #tpu.core_type<tc>, window_params = [{transform_indices = @transform_0, window_bounds = array<i64: 256, 16>}, {pipeline_mode = #tpu.pipeline_mode<synchronous>, transform_indices = @transform_1, window_bounds = array<i64: 80, 64>}, {pipeline_mode = #tpu.pipeline_mode<synchronous>, transform_indices = @transform_2, window_bounds = array<i64: 1, 64>}, {pipeline_mode = #tpu.pipeline_mode<synchronous>, transform_indices = @transform_3, window_bounds = array<i64: 320, 64>}, {pipeline_mode = #tpu.pipeline_mode<synchronous>, transform_indices = @transform_4, window_bounds = array<i64: 1, 64>}, {pipeline_mode = #tpu.pipeline_mode<synchronous>, transform_indices = @transform_5, window_bounds = array<i64: 320, 64>}, {pipeline_mode = #tpu.pipeline_mode<synchronous>, transform_indices = @transform_6, window_bounds = array<i64: 1, 64>}, {pipeline_mode = #tpu.pipeline_mode<synchronous>, transform_indices = @transform_7, window_bounds = array<i64: 1024, 8>}, {pipeline_mode = #tpu.pipeline_mode<synchronous>, transform_indices = @transform_8, window_bounds = array<i64: 1, 8>}, {transform_indices = @transform_9, window_bounds = array<i64: 16, 8>}]} {
    %cst = arith.constant 0.000000e+00 : bf16
    %0 = vector.broadcast %cst : bf16 to vector<32x64xbf16>
    %c0 = arith.constant 0 : index
    %c0_0 = arith.constant 0 : index
    %1 = vector.load %arg11[%c0, %c0_0] : memref<320x64xbf16, #tpu.memory_space<vmem>>, vector<32x64xbf16>
    tpu.vector_store %arg11[%c0, %c0_0], %0 {strides = array<i32>} : memref<320x64xbf16, #tpu.memory_space<vmem>>, vector<32x64xbf16>,
    %cst_1 = arith.constant 0.000000e+00 : bf16
    %2 = vector.broadcast %cst_1 : bf16 to vector<32x64xbf16>
    %c288 = arith.constant 288 : index
    %c0_2 = arith.constant 0 : index
    %3 = vector.load %arg11[%c288, %c0_2] : memref<320x64xbf16, #tpu.memory_space<vmem>>, vector<32x64xbf16>
    tpu.vector_store %arg11[%c288, %c0_2], %2 {strides = array<i32>} : memref<320x64xbf16, #tpu.memory_space<vmem>>, vector<32x64xbf16>,
    %c0_3 = arith.constant 0 : index
    %c0_4 = arith.constant 0 : index
    %4 = vector.load %arg1[%c0_3, %c0_4] : memref<256x16xbf16, #tpu.memory_space<vmem>>, vector<256x16xbf16>
    %c32 = arith.constant 32 : index
    %c0_5 = arith.constant 0 : index
    %5 = vector.load %arg11[%c32, %c0_5] : memref<320x64xbf16, #tpu.memory_space<vmem>>, vector<256x16xbf16>
    tpu.vector_store %arg11[%c32, %c0_5], %4 {strides = array<i32>} : memref<320x64xbf16, #tpu.memory_space<vmem>>, vector<256x16xbf16>,
    %c0_6 = arith.constant 0 : index
    %c0_7 = arith.constant 0 : index
    %6 = vector.load %arg11[%c0_6, %c0_7] : memref<320x64xbf16, #tpu.memory_space<vmem>>, vector<256x16xbf16>
    %c0_8 = arith.constant 0 : index
    %c0_9 = arith.constant 0 : index
    %7 = vector.load %arg12[%c0_8, %c0_9] : memref<256x320xbf16, #tpu.memory_space<vmem>>, vector<256x16xbf16>
    tpu.vector_store %arg12[%c0_8, %c0_9], %6 {strides = array<i32>} : memref<256x320xbf16, #tpu.memory_space<vmem>>, vector<256x16xbf16>,
    %c16 = arith.constant 16 : index
    %c0_10 = arith.constant 0 : index
    %8 = vector.load %arg11[%c16, %c0_10] : memref<320x64xbf16, #tpu.memory_space<vmem>>, vector<256x16xbf16>
    %c0_11 = arith.constant 0 : index
    %c16_12 = arith.constant 16 : index
    %9 = vector.load %arg12[%c0_11, %c16_12] : memref<256x320xbf16, #tpu.memory_space<vmem>>, vector<256x16xbf16>
    tpu.vector_store %arg12[%c0_11, %c16_12], %8 {strides = array<i32>} : memref<256x320xbf16, #tpu.memory_space<vmem>>, vector<256x16xbf16>,
    %c32_13 = arith.constant 32 : index
    %c0_14 = arith.constant 0 : index
    %10 = vector.load %arg11[%c32_13, %c0_14] : memref<320x64xbf16, #tpu.memory_space<vmem>>, vector<256x16xbf16>
    %c0_15 = arith.constant 0 : index
    %c32_16 = arith.constant 32 : index
    %11 = vector.load %arg12[%c0_15, %c32_16] : memref<256x320xbf16, #tpu.memory_space<vmem>>, vector<256x16xbf16>
    tpu.vector_store %arg12[%c0_15, %c32_16], %10 {strides = array<i32>} : memref<256x320xbf16, #tpu.memory_space<vmem>>, vector<256x16xbf16>,
    %c48 = arith.constant 48 : index
    %c0_17 = arith.constant 0 : index
    %12 = vector.load %arg11[%c48, %c0_17] : memref<320x64xbf16, #tpu.memory_space<vmem>>, vector<256x16xbf16>
    %c0_18 = arith.constant 0 : index
    %c48_19 = arith.constant 48 : index
    %13 = vector.load %arg12[%c0_18, %c48_19] : memref<256x320xbf16, #tpu.memory_space<vmem>>, vector<256x16xbf16>
    tpu.vector_store %arg12[%c0_18, %c48_19], %12 {strides = array<i32>} : memref<256x320xbf16, #tpu.memory_space<vmem>>, vector<256x16xbf16>,
    %c64 = arith.constant 64 : index
    %c0_20 = arith.constant 0 : index
    %14 = vector.load %arg11[%c64, %c0_20] : memref<320x64xbf16, #tpu.memory_space<vmem>>, vector<256x16xbf16>
    %c0_21 = arith.constant 0 : index
    %c64_22 = arith.constant 64 : index
    %15 = vector.load %arg12[%c0_21, %c64_22] : memref<256x320xbf16, #tpu.memory_space<vmem>>, vector<256x16xbf16>
    tpu.vector_store %arg12[%c0_21, %c64_22], %14 {strides = array<i32>} : memref<256x320xbf16, #tpu.memory_space<vmem>>, vector<256x16xbf16>,
    %c0_23 = arith.constant 0 : index
    %c0_24 = arith.constant 0 : index
    %16 = vector.load %arg12[%c0_23, %c0_24] : memref<256x320xbf16, #tpu.memory_space<vmem>>, vector<256x80xbf16>
    %c0_25 = arith.constant 0 : index
    %c0_26 = arith.constant 0 : index
    %17 = vector.load %arg2[%c0_25, %c0_26] : memref<80x64xbf16, #tpu.memory_space<vmem>>, vector<80x64xbf16>
    %cst_27 = arith.constant dense<0.000000e+00> : vector<256x64xf32>
    %18 = tpu.matmul %16, %17, %cst_27 {dimension_numbers = #tpu.dot_dimension_numbers<[1], [0], [0], [1], [0, 0, 1, 1], [], []>} : vector<256x80xbf16>, vector<80x64xbf16>, vector<256x64xf32> -> vector<256x64xf32>
    %c0_28 = arith.constant 0 : index
    %c0_29 = arith.constant 0 : index
    %19 = vector.load %arg3[%c0_28, %c0_29] : memref<1x64xf32, #tpu.memory_space<vmem>>, vector<1x64xf32>
    %20 = vector.broadcast %19 : vector<1x64xf32> to vector<256x64xf32>
    %21 = arith.addf %18, %20 : vector<256x64xf32>
    %cst_30 = arith.constant 0.000000e+00 : f32
    %22 = vector.broadcast %cst_30 : f32 to vector<256x64xf32>
    %23 = arith.maximumf %21, %22 : vector<256x64xf32>
    %24 = arith.truncf %23 : vector<256x64xf32> to vector<256x64xbf16>
    %c32_31 = arith.constant 32 : index
    %c0_32 = arith.constant 0 : index
    %25 = vector.load %arg11[%c32_31, %c0_32] : memref<320x64xbf16, #tpu.memory_space<vmem>>, vector<256x64xbf16>
    tpu.vector_store %arg11[%c32_31, %c0_32], %24 {strides = array<i32>} : memref<320x64xbf16, #tpu.memory_space<vmem>>, vector<256x64xbf16>,
    %c16_33 = arith.constant 16 : index
    %c0_34 = arith.constant 0 : index
    %26 = vector.load %arg11[%c16_33, %c0_34] : memref<320x64xbf16, #tpu.memory_space<vmem>>, vector<256x64xbf16>
    %27 = arith.maximumf %24, %26 : vector<256x64xbf16>
    %c48_35 = arith.constant 48 : index
    %c0_36 = arith.constant 0 : index
    %28 = vector.load %arg11[%c48_35, %c0_36] : memref<320x64xbf16, #tpu.memory_space<vmem>>, vector<256x64xbf16>
    %29 = arith.maximumf %27, %28 : vector<256x64xbf16>
    %c32_37 = arith.constant 32 : index
    %c0_38 = arith.constant 0 : index
    %30 = vector.load %arg11[%c32_37, %c0_38] : memref<320x64xbf16, #tpu.memory_space<vmem>>, vector<256x64xbf16>
    tpu.vector_store %arg11[%c32_37, %c0_38], %29 {strides = array<i32>} : memref<320x64xbf16, #tpu.memory_space<vmem>>, vector<256x64xbf16>,
    %c0_39 = arith.constant 0 : index
    %c0_40 = arith.constant 0 : index
    %31 = vector.load %arg11[%c0_39, %c0_40] : memref<320x64xbf16, #tpu.memory_space<vmem>>, vector<256x64xbf16>
    %c0_41 = arith.constant 0 : index
    %c0_42 = arith.constant 0 : index
    %32 = vector.load %arg12[%c0_41, %c0_42] : memref<256x320xbf16, #tpu.memory_space<vmem>>, vector<256x64xbf16>
    tpu.vector_store %arg12[%c0_41, %c0_42], %31 {strides = array<i32>} : memref<256x320xbf16, #tpu.memory_space<vmem>>, vector<256x64xbf16>,
    %c16_43 = arith.constant 16 : index
    %c0_44 = arith.constant 0 : index
    %33 = vector.load %arg11[%c16_43, %c0_44] : memref<320x64xbf16, #tpu.memory_space<vmem>>, vector<256x64xbf16>
    %c0_45 = arith.constant 0 : index
    %c64_46 = arith.constant 64 : index
    %34 = vector.load %arg12[%c0_45, %c64_46] : memref<256x320xbf16, #tpu.memory_space<vmem>>, vector<256x64xbf16>
    tpu.vector_store %arg12[%c0_45, %c64_46], %33 {strides = array<i32>} : memref<256x320xbf16, #tpu.memory_space<vmem>>, vector<256x64xbf16>,
    %c32_47 = arith.constant 32 : index
    %c0_48 = arith.constant 0 : index
    %35 = vector.load %arg11[%c32_47, %c0_48] : memref<320x64xbf16, #tpu.memory_space<vmem>>, vector<256x64xbf16>
    %c0_49 = arith.constant 0 : index
    %c128 = arith.constant 128 : index
    %36 = vector.load %arg12[%c0_49, %c128] : memref<256x320xbf16, #tpu.memory_space<vmem>>, vector<256x64xbf16>
    tpu.vector_store %arg12[%c0_49, %c128], %35 {strides = array<i32>} : memref<256x320xbf16, #tpu.memory_space<vmem>>, vector<256x64xbf16>,
    %c48_50 = arith.constant 48 : index
    %c0_51 = arith.constant 0 : index
    %37 = vector.load %arg11[%c48_50, %c0_51] : memref<320x64xbf16, #tpu.memory_space<vmem>>, vector<256x64xbf16>
    %c0_52 = arith.constant 0 : index
    %c192 = arith.constant 192 : index
    %38 = vector.load %arg12[%c0_52, %c192] : memref<256x320xbf16, #tpu.memory_space<vmem>>, vector<256x64xbf16>
    tpu.vector_store %arg12[%c0_52, %c192], %37 {strides = array<i32>} : memref<256x320xbf16, #tpu.memory_space<vmem>>, vector<256x64xbf16>,
    %c64_53 = arith.constant 64 : index
    %c0_54 = arith.constant 0 : index
    %39 = vector.load %arg11[%c64_53, %c0_54] : memref<320x64xbf16, #tpu.memory_space<vmem>>, vector<256x64xbf16>
    %c0_55 = arith.constant 0 : index
    %c256 = arith.constant 256 : index
    %40 = vector.load %arg12[%c0_55, %c256] : memref<256x320xbf16, #tpu.memory_space<vmem>>, vector<256x64xbf16>
    tpu.vector_store %arg12[%c0_55, %c256], %39 {strides = array<i32>} : memref<256x320xbf16, #tpu.memory_space<vmem>>, vector<256x64xbf16>,
    %c0_56 = arith.constant 0 : index
    %c0_57 = arith.constant 0 : index
    %41 = vector.load %arg12[%c0_56, %c0_57] : memref<256x320xbf16, #tpu.memory_space<vmem>>, vector<256x320xbf16>
    %c0_58 = arith.constant 0 : index
    %c0_59 = arith.constant 0 : index
    %42 = vector.load %arg4[%c0_58, %c0_59] : memref<320x64xbf16, #tpu.memory_space<vmem>>, vector<320x64xbf16>
    %cst_60 = arith.constant dense<0.000000e+00> : vector<256x64xf32>
    %43 = tpu.matmul %41, %42, %cst_60 {dimension_numbers = #tpu.dot_dimension_numbers<[1], [0], [0], [1], [0, 0, 1, 1], [], []>} : vector<256x320xbf16>, vector<320x64xbf16>, vector<256x64xf32> -> vector<256x64xf32>
    %c0_61 = arith.constant 0 : index
    %c0_62 = arith.constant 0 : index
    %44 = vector.load %arg5[%c0_61, %c0_62] : memref<1x64xf32, #tpu.memory_space<vmem>>, vector<1x64xf32>
    %45 = vector.broadcast %44 : vector<1x64xf32> to vector<256x64xf32>
    %46 = arith.addf %43, %45 : vector<256x64xf32>
    %cst_63 = arith.constant 0.000000e+00 : f32
    %47 = vector.broadcast %cst_63 : f32 to vector<256x64xf32>
    %48 = arith.maximumf %46, %47 : vector<256x64xf32>
    %49 = arith.truncf %48 : vector<256x64xf32> to vector<256x64xbf16>
    %c32_64 = arith.constant 32 : index
    %c0_65 = arith.constant 0 : index
    %50 = vector.load %arg11[%c32_64, %c0_65] : memref<320x64xbf16, #tpu.memory_space<vmem>>, vector<256x64xbf16>
    tpu.vector_store %arg11[%c32_64, %c0_65], %49 {strides = array<i32>} : memref<320x64xbf16, #tpu.memory_space<vmem>>, vector<256x64xbf16>,
    %c16_66 = arith.constant 16 : index
    %c0_67 = arith.constant 0 : index
    %51 = vector.load %arg11[%c16_66, %c0_67] : memref<320x64xbf16, #tpu.memory_space<vmem>>, vector<256x64xbf16>
    %52 = arith.maximumf %49, %51 : vector<256x64xbf16>
    %c48_68 = arith.constant 48 : index
    %c0_69 = arith.constant 0 : index
    %53 = vector.load %arg11[%c48_68, %c0_69] : memref<320x64xbf16, #tpu.memory_space<vmem>>, vector<256x64xbf16>
    %54 = arith.maximumf %52, %53 : vector<256x64xbf16>
    %c32_70 = arith.constant 32 : index
    %c0_71 = arith.constant 0 : index
    %55 = vector.load %arg11[%c32_70, %c0_71] : memref<320x64xbf16, #tpu.memory_space<vmem>>, vector<256x64xbf16>
    tpu.vector_store %arg11[%c32_70, %c0_71], %54 {strides = array<i32>} : memref<320x64xbf16, #tpu.memory_space<vmem>>, vector<256x64xbf16>,
    %c0_72 = arith.constant 0 : index
    %c0_73 = arith.constant 0 : index
    %56 = vector.load %arg11[%c0_72, %c0_73] : memref<320x64xbf16, #tpu.memory_space<vmem>>, vector<256x64xbf16>
    %c0_74 = arith.constant 0 : index
    %c0_75 = arith.constant 0 : index
    %57 = vector.load %arg12[%c0_74, %c0_75] : memref<256x320xbf16, #tpu.memory_space<vmem>>, vector<256x64xbf16>
    tpu.vector_store %arg12[%c0_74, %c0_75], %56 {strides = array<i32>} : memref<256x320xbf16, #tpu.memory_space<vmem>>, vector<256x64xbf16>,
    %c16_76 = arith.constant 16 : index
    %c0_77 = arith.constant 0 : index
    %58 = vector.load %arg11[%c16_76, %c0_77] : memref<320x64xbf16, #tpu.memory_space<vmem>>, vector<256x64xbf16>
    %c0_78 = arith.constant 0 : index
    %c64_79 = arith.constant 64 : index
    %59 = vector.load %arg12[%c0_78, %c64_79] : memref<256x320xbf16, #tpu.memory_space<vmem>>, vector<256x64xbf16>
    tpu.vector_store %arg12[%c0_78, %c64_79], %58 {strides = array<i32>} : memref<256x320xbf16, #tpu.memory_space<vmem>>, vector<256x64xbf16>,
    %c32_80 = arith.constant 32 : index
    %c0_81 = arith.constant 0 : index
    %60 = vector.load %arg11[%c32_80, %c0_81] : memref<320x64xbf16, #tpu.memory_space<vmem>>, vector<256x64xbf16>
    %c0_82 = arith.constant 0 : index
    %c128_83 = arith.constant 128 : index
    %61 = vector.load %arg12[%c0_82, %c128_83] : memref<256x320xbf16, #tpu.memory_space<vmem>>, vector<256x64xbf16>
    tpu.vector_store %arg12[%c0_82, %c128_83], %60 {strides = array<i32>} : memref<256x320xbf16, #tpu.memory_space<vmem>>, vector<256x64xbf16>,
    %c48_84 = arith.constant 48 : index
    %c0_85 = arith.constant 0 : index
    %62 = vector.load %arg11[%c48_84, %c0_85] : memref<320x64xbf16, #tpu.memory_space<vmem>>, vector<256x64xbf16>
    %c0_86 = arith.constant 0 : index
    %c192_87 = arith.constant 192 : index
    %63 = vector.load %arg12[%c0_86, %c192_87] : memref<256x320xbf16, #tpu.memory_space<vmem>>, vector<256x64xbf16>
    tpu.vector_store %arg12[%c0_86, %c192_87], %62 {strides = array<i32>} : memref<256x320xbf16, #tpu.memory_space<vmem>>, vector<256x64xbf16>,
    %c64_88 = arith.constant 64 : index
    %c0_89 = arith.constant 0 : index
    %64 = vector.load %arg11[%c64_88, %c0_89] : memref<320x64xbf16, #tpu.memory_space<vmem>>, vector<256x64xbf16>
    %c0_90 = arith.constant 0 : index
    %c256_91 = arith.constant 256 : index
    %65 = vector.load %arg12[%c0_90, %c256_91] : memref<256x320xbf16, #tpu.memory_space<vmem>>, vector<256x64xbf16>
    tpu.vector_store %arg12[%c0_90, %c256_91], %64 {strides = array<i32>} : memref<256x320xbf16, #tpu.memory_space<vmem>>, vector<256x64xbf16>,
    %c0_92 = arith.constant 0 : index
    %c0_93 = arith.constant 0 : index
    %66 = vector.load %arg12[%c0_92, %c0_93] : memref<256x320xbf16, #tpu.memory_space<vmem>>, vector<256x320xbf16>
    %c0_94 = arith.constant 0 : index
    %c0_95 = arith.constant 0 : index
    %67 = vector.load %arg6[%c0_94, %c0_95] : memref<320x64xbf16, #tpu.memory_space<vmem>>, vector<320x64xbf16>
    %cst_96 = arith.constant dense<0.000000e+00> : vector<256x64xf32>
    %68 = tpu.matmul %66, %67, %cst_96 {dimension_numbers = #tpu.dot_dimension_numbers<[1], [0], [0], [1], [0, 0, 1, 1], [], []>} : vector<256x320xbf16>, vector<320x64xbf16>, vector<256x64xf32> -> vector<256x64xf32>
    %c0_97 = arith.constant 0 : index
    %c0_98 = arith.constant 0 : index
    %69 = vector.load %arg7[%c0_97, %c0_98] : memref<1x64xf32, #tpu.memory_space<vmem>>, vector<1x64xf32>
    %70 = vector.broadcast %69 : vector<1x64xf32> to vector<256x64xf32>
    %71 = arith.addf %68, %70 : vector<256x64xf32>
    %cst_99 = arith.constant 0.000000e+00 : f32
    %72 = vector.broadcast %cst_99 : f32 to vector<256x64xf32>
    %73 = arith.maximumf %71, %72 : vector<256x64xf32>
    %74 = arith.truncf %73 : vector<256x64xf32> to vector<256x64xbf16>
    %c32_100 = arith.constant 32 : index
    %c0_101 = arith.constant 0 : index
    %75 = vector.load %arg11[%c32_100, %c0_101] : memref<320x64xbf16, #tpu.memory_space<vmem>>, vector<256x64xbf16>
    tpu.vector_store %arg11[%c32_100, %c0_101], %74 {strides = array<i32>} : memref<320x64xbf16, #tpu.memory_space<vmem>>, vector<256x64xbf16>,
    %c16_102 = arith.constant 16 : index
    %c0_103 = arith.constant 0 : index
    %76 = vector.load %arg11[%c16_102, %c0_103] : memref<320x64xbf16, #tpu.memory_space<vmem>>, vector<256x64xbf16>
    %77 = arith.maximumf %74, %76 : vector<256x64xbf16>
    %c48_104 = arith.constant 48 : index
    %c0_105 = arith.constant 0 : index
    %78 = vector.load %arg11[%c48_104, %c0_105] : memref<320x64xbf16, #tpu.memory_space<vmem>>, vector<256x64xbf16>
    %79 = arith.maximumf %77, %78 : vector<256x64xbf16>
    %c32_106 = arith.constant 32 : index
    %c0_107 = arith.constant 0 : index
    %80 = vector.load %arg11[%c32_106, %c0_107] : memref<320x64xbf16, #tpu.memory_space<vmem>>, vector<256x64xbf16>
    tpu.vector_store %arg11[%c32_106, %c0_107], %79 {strides = array<i32>} : memref<320x64xbf16, #tpu.memory_space<vmem>>, vector<256x64xbf16>,
    %c32_108 = arith.constant 32 : index
    %c0_109 = arith.constant 0 : index
    %81 = vector.load %arg11[%c32_108, %c0_109] : memref<320x64xbf16, #tpu.memory_space<vmem>>, vector<16x64xbf16>
    %c48_110 = arith.constant 48 : index
    %c0_111 = arith.constant 0 : index
    %82 = vector.load %arg11[%c48_110, %c0_111] : memref<320x64xbf16, #tpu.memory_space<vmem>>, vector<16x64xbf16>
    %c64_112 = arith.constant 64 : index
    %c0_113 = arith.constant 0 : index
    %83 = vector.load %arg11[%c64_112, %c0_113] : memref<320x64xbf16, #tpu.memory_space<vmem>>, vector<16x64xbf16>
    %c80 = arith.constant 80 : index
    %c0_114 = arith.constant 0 : index
    %84 = vector.load %arg11[%c80, %c0_114] : memref<320x64xbf16, #tpu.memory_space<vmem>>, vector<16x64xbf16>
    %c96 = arith.constant 96 : index
    %c0_115 = arith.constant 0 : index
    %85 = vector.load %arg11[%c96, %c0_115] : memref<320x64xbf16, #tpu.memory_space<vmem>>, vector<16x64xbf16>
    %c112 = arith.constant 112 : index
    %c0_116 = arith.constant 0 : index
    %86 = vector.load %arg11[%c112, %c0_116] : memref<320x64xbf16, #tpu.memory_space<vmem>>, vector<16x64xbf16>
    %c128_117 = arith.constant 128 : index
    %c0_118 = arith.constant 0 : index
    %87 = vector.load %arg11[%c128_117, %c0_118] : memref<320x64xbf16, #tpu.memory_space<vmem>>, vector<16x64xbf16>
    %c144 = arith.constant 144 : index
    %c0_119 = arith.constant 0 : index
    %88 = vector.load %arg11[%c144, %c0_119] : memref<320x64xbf16, #tpu.memory_space<vmem>>, vector<16x64xbf16>
    %c160 = arith.constant 160 : index
    %c0_120 = arith.constant 0 : index
    %89 = vector.load %arg11[%c160, %c0_120] : memref<320x64xbf16, #tpu.memory_space<vmem>>, vector<16x64xbf16>
    %c176 = arith.constant 176 : index
    %c0_121 = arith.constant 0 : index
    %90 = vector.load %arg11[%c176, %c0_121] : memref<320x64xbf16, #tpu.memory_space<vmem>>, vector<16x64xbf16>
    %c192_122 = arith.constant 192 : index
    %c0_123 = arith.constant 0 : index
    %91 = vector.load %arg11[%c192_122, %c0_123] : memref<320x64xbf16, #tpu.memory_space<vmem>>, vector<16x64xbf16>
    %c208 = arith.constant 208 : index
    %c0_124 = arith.constant 0 : index
    %92 = vector.load %arg11[%c208, %c0_124] : memref<320x64xbf16, #tpu.memory_space<vmem>>, vector<16x64xbf16>
    %c224 = arith.constant 224 : index
    %c0_125 = arith.constant 0 : index
    %93 = vector.load %arg11[%c224, %c0_125] : memref<320x64xbf16, #tpu.memory_space<vmem>>, vector<16x64xbf16>
    %c240 = arith.constant 240 : index
    %c0_126 = arith.constant 0 : index
    %94 = vector.load %arg11[%c240, %c0_126] : memref<320x64xbf16, #tpu.memory_space<vmem>>, vector<16x64xbf16>
    %c256_127 = arith.constant 256 : index
    %c0_128 = arith.constant 0 : index
    %95 = vector.load %arg11[%c256_127, %c0_128] : memref<320x64xbf16, #tpu.memory_space<vmem>>, vector<16x64xbf16>
    %c272 = arith.constant 272 : index
    %c0_129 = arith.constant 0 : index
    %96 = vector.load %arg11[%c272, %c0_129] : memref<320x64xbf16, #tpu.memory_space<vmem>>, vector<16x64xbf16>
    %97 = tpu.concatenate %81, %82, %83, %84, %85, %86, %87, %88, %89, %90, %91, %92, %93, %94, %95, %96 in 1 : vector<16x64xbf16>, vector<16x64xbf16>, vector<16x64xbf16>, vector<16x64xbf16>, vector<16x64xbf16>, vector<16x64xbf16>, vector<16x64xbf16>, vector<16x64xbf16>, vector<16x64xbf16>, vector<16x64xbf16>, vector<16x64xbf16>, vector<16x64xbf16>, vector<16x64xbf16>, vector<16x64xbf16>, vector<16x64xbf16>, vector<16x64xbf16> -> vector<16x1024xbf16>
    %c0_130 = arith.constant 0 : index
    %c0_131 = arith.constant 0 : index
    %98 = vector.load %arg8[%c0_130, %c0_131] : memref<1024x8xbf16, #tpu.memory_space<vmem>>, vector<1024x8xbf16>
    %cst_132 = arith.constant dense<0.000000e+00> : vector<16x8xf32>
    %99 = tpu.matmul %97, %98, %cst_132 {dimension_numbers = #tpu.dot_dimension_numbers<[1], [0], [0], [1], [0, 0, 1, 1], [], []>} : vector<16x1024xbf16>, vector<1024x8xbf16>, vector<16x8xf32> -> vector<16x8xf32>
    %c0_133 = arith.constant 0 : index
    %c0_134 = arith.constant 0 : index
    %100 = vector.load %arg9[%c0_133, %c0_134] : memref<1x8xf32, #tpu.memory_space<vmem>>, vector<1x8xf32>
    %101 = vector.broadcast %100 : vector<1x8xf32> to vector<16x8xf32>
    %102 = arith.addf %99, %101 : vector<16x8xf32>
    %c0_135 = arith.constant 0 : index
    %c0_136 = arith.constant 0 : index
    %103 = vector.load %arg10[%c0_135, %c0_136] : memref<16x8xf32, #tpu.memory_space<vmem>>, vector<16x8xf32>
    tpu.vector_store %arg10[%c0_135, %c0_136], %102 {strides = array<i32>} : memref<16x8xf32, #tpu.memory_space<vmem>>, vector<16x8xf32>,
    return
  }
  func.func @transform_0(%arg0: i32) -> (i32, i32) {
    %c0_i32 = arith.constant 0 : i32
    %c0_i32_0 = arith.constant 0 : i32
    return %arg0, %c0_i32 : i32, i32
  }
  func.func @transform_1(%arg0: i32) -> (i32, i32) {
    %c0_i32 = arith.constant 0 : i32
    %c0_i32_0 = arith.constant 0 : i32
    %c0_i32_1 = arith.constant 0 : i32
    return %c0_i32, %c0_i32_0 : i32, i32
  }
  func.func @transform_2(%arg0: i32) -> (i32, i32) {
    %c0_i32 = arith.constant 0 : i32
    %c0_i32_0 = arith.constant 0 : i32
    %c0_i32_1 = arith.constant 0 : i32
    return %c0_i32, %c0_i32_0 : i32, i32
  }
  func.func @transform_3(%arg0: i32) -> (i32, i32) {
    %c0_i32 = arith.constant 0 : i32
    %c0_i32_0 = arith.constant 0 : i32
    %c0_i32_1 = arith.constant 0 : i32
    return %c0_i32, %c0_i32_0 : i32, i32
  }
  func.func @transform_4(%arg0: i32) -> (i32, i32) {
    %c0_i32 = arith.constant 0 : i32
    %c0_i32_0 = arith.constant 0 : i32
    %c0_i32_1 = arith.constant 0 : i32
    return %c0_i32, %c0_i32_0 : i32, i32
  }
  func.func @transform_5(%arg0: i32) -> (i32, i32) {
    %c0_i32 = arith.constant 0 : i32
    %c0_i32_0 = arith.constant 0 : i32
    %c0_i32_1 = arith.constant 0 : i32
    return %c0_i32, %c0_i32_0 : i32, i32
  }
  func.func @transform_6(%arg0: i32) -> (i32, i32) {
    %c0_i32 = arith.constant 0 : i32
    %c0_i32_0 = arith.constant 0 : i32
    %c0_i32_1 = arith.constant 0 : i32
    return %c0_i32, %c0_i32_0 : i32, i32
  }
  func.func @transform_7(%arg0: i32) -> (i32, i32) {
    %c0_i32 = arith.constant 0 : i32
    %c0_i32_0 = arith.constant 0 : i32
    %c0_i32_1 = arith.constant 0 : i32
    return %c0_i32, %c0_i32_0 : i32, i32
  }
  func.func @transform_8(%arg0: i32) -> (i32, i32) {
    %c0_i32 = arith.constant 0 : i32
    %c0_i32_0 = arith.constant 0 : i32
    %c0_i32_1 = arith.constant 0 : i32
    return %c0_i32, %c0_i32_0 : i32, i32
  }
  func.func @transform_9(%arg0: i32) -> (i32, i32) {
    %c0_i32 = arith.constant 0 : i32
    %c0_i32_0 = arith.constant 0 : i32
    return %arg0, %c0_i32 : i32, i32
  }
}

</mosaic_0001>

<bundles_post_ra>
// kernel: textcnn_forward.1
= control target key start
LH: loop header
LB: loop body
LE: loop exit
PB: predicated region body
PF: predicated region fallthrough
CT: control target
= control target key end

     0   :  { %vm33_vm0 = vcmask 523264   ;;  %vm166_vm1 = vcmask 130048   ;;  %v4578_v0 = vmov 0   ;;  %s4579_s23 = smov 16   ;;  %s4580_s28 = smov 32   ;;  %vm295_vm2 = vcmask 261248   ;;  %s5944_s0 = inlined_call_operand.vmem [shape: bf16[256,16], index: 0, kind: input, shape index: {}]   ;;  %s5945_s1 = inlined_call_operand.vmem [shape: bf16[80,64], index: 1, kind: input, shape index: {}]   ;;  %s5946_s3 = inlined_call_operand.vmem [shape: bf16[320,64], index: 3, kind: input, shape index: {}]   ;;  %s5947_s2 = inlined_call_operand.vmem [shape: f32[1,64], index: 2, kind: input, shape index: {}]   ;;  %s5948_s5 = inlined_call_operand.vmem [shape: bf16[320,64], index: 5, kind: input, shape index: {}]   ;;  %s5949_s4 = inlined_call_operand.vmem [shape: f32[1,64], index: 4, kind: input, shape index: {}]   ;;  %s5950_s6 = inlined_call_operand.vmem [shape: f32[1,64], index: 6, kind: input, shape index: {}]   ;;  %s5951_s7 = inlined_call_operand.vmem [shape: bf16[1024,8], index: 7, kind: input, shape index: {}]   ;;  %s5952_s8 = inlined_call_operand.vmem [shape: f32[1,8], index: 8, kind: input, shape index: {}]   ;;  %s5953_s9 = inlined_call_operand.vmem [shape: f32[16,8], index: 9, kind: output, shape index: {}]  }
   0x1   :  { %35 = vst.msk [vmem:[#allocation2 + $0x8] sm:$0xff] %vm33_vm0, %v4578_v0  ;;  %34 = vst.msk [vmem:[#allocation2] sm:$0xff] %vm33_vm0, %v4578_v0  ;;  %v4452_v1 = vld [vmem:[%s5944_s0] sm:$0xff]   ;;  %v4453_v2 = vld [vmem:[%s5944_s0 + $0x8] sm:$0xff]   ;;  %s4581_s16 = smov 48   ;;  %s4582_s24 = smov 64  }
   0x2   :  { %36 = vst.msk [vmem:[#allocation2 + $0x90] sm:$0xff] %vm33_vm0, %v4578_v0  ;;  %37 = vst.msk [vmem:[#allocation2 + $0x98] sm:$0xff] %vm33_vm0, %v4578_v0  ;;  %v4454_v3 = vld [vmem:[%s5944_s0 + $0x10] sm:$0xff]   ;;  %v4455_v4 = vld [vmem:[%s5944_s0 + $0x18] sm:$0xff]   ;;  %vm392_vm3 = vcmask 392448   ;;  %vm489_vm4 = vcmask 523648  }
   0x3   :  { %167 = vst.msk [vmem:[#allocation2 + $0x10] sm:$0xff] %vm166_vm1, %v4452_v1  ;;  %168 = vst.msk [vmem:[#allocation2 + $0x18] sm:$0xff] %vm166_vm1, %v4453_v2  ;;  %v4456_v5 = vld [vmem:[%s5944_s0 + $0x20] sm:$0xff]   ;;  %v4457_v6 = vld [vmem:[%s5944_s0 + $0x28] sm:$0xff]   ;;  %vm586_vm5 = vcmask 654848   ;;  %vm666_vm6 = vcmask 654336  }
   0x4   :  { %169 = vst.msk [vmem:[#allocation2 + $0x20] sm:$0xff] %vm166_vm1, %v4454_v3  ;;  %170 = vst.msk [vmem:[#allocation2 + $0x28] sm:$0xff] %vm166_vm1, %v4455_v4  ;;  %v4458_v7 = vld [vmem:[%s5944_s0 + $0x30] sm:$0xff]   ;;  %v4459_v9 = vld [vmem:[%s5944_s0 + $0x38] sm:$0xff]   ;;  %vm1118_vm7 = vcmask 1048064   ;;  %vm3768_vm8 = vcmask 64512  }
   0x5   :  { %171 = vst.msk [vmem:[#allocation2 + $0x30] sm:$0xff] %vm166_vm1, %v4456_v5  ;;  %172 = vst.msk [vmem:[#allocation2 + $0x38] sm:$0xff] %vm166_vm1, %v4457_v6  ;;  %v4460_v11 = vld [vmem:[%s5944_s0 + $0x40] sm:$0xff]   ;;  %v4461_v13 = vld [vmem:[%s5944_s0 + $0x48] sm:$0xff]  }
   0x6   :  { %173 = vst.msk [vmem:[#allocation2 + $0x40] sm:$0xff] %vm166_vm1, %v4458_v7  ;;  %174 = vst.msk [vmem:[#allocation2 + $0x48] sm:$0xff] %vm166_vm1, %v4459_v9  ;;  %v4462_v16 = vld [vmem:[%s5944_s0 + $0x50] sm:$0xff]   ;;  %v4463_v18 = vld [vmem:[%s5944_s0 + $0x58] sm:$0xff]  }
   0x7   :  { %175 = vst.msk [vmem:[#allocation2 + $0x50] sm:$0xff] %vm166_vm1, %v4460_v11  ;;  %176 = vst.msk [vmem:[#allocation2 + $0x58] sm:$0xff] %vm166_vm1, %v4461_v13  ;;  %v4464_v21 = vld [vmem:[%s5944_s0 + $0x60] sm:$0xff]   ;;  %v4465_v22 = vld [vmem:[%s5944_s0 + $0x68] sm:$0xff]  }
   0x8   :  { %v4663_v8 = vld [vmem:[#allocation2 + $0x8] sm:$0xff]  ;;  %177 = vst.msk [vmem:[#allocation2 + $0x60] sm:$0xff] %vm166_vm1, %v4462_v16  ;;  %178 = vst.msk [vmem:[#allocation2 + $0x68] sm:$0xff] %vm166_vm1, %v4463_v18  ;;  %v4466_v24 = vld [vmem:[%s5944_s0 + $0x70] sm:$0xff]  }
   0x9   :  { %247 = vrot.lane.b32.xlu0 %v4663_v8, %s4579_s23  ;;  %200 = vst.msk [vmem:[#allocation3 + $0x18] sm:$0xff] %vm166_vm1, %v4663_v8  ;;  %179 = vst.msk [vmem:[#allocation2 + $0x70] sm:$0xff] %vm166_vm1, %v4464_v21  ;;  %v4467_v27 = vld [vmem:[%s5944_s0 + $0x78] sm:$0xff]   ;;  %v183_v28 = vld [vmem:[#allocation2] sm:$0xff] }
   0xa   :  { %v312_v10 = vld [vmem:[#allocation2 + $0x10] sm:$0xff]  ;;  %v313_v12 = vld [vmem:[#allocation2 + $0x18] sm:$0xff]  ;;  %180 = vst.msk [vmem:[#allocation2 + $0x78] sm:$0xff] %vm166_vm1, %v4465_v22  ;;  %181 = vst.msk [vmem:[#allocation2 + $0x80] sm:$0xff] %vm166_vm1, %v4466_v24 }
   0xb   :  { %344 = vrot.lane.b32.xlu1 %v312_v10, %s4580_s28  ;;  %201 = vst.msk [vmem:[#allocation3 + $0x30] sm:$0xff] %vm166_vm1, %v312_v10  ;;  %v410_v14 = vld [vmem:[#allocation2 + $0x20] sm:$0xff]  ;;  %202 = vst.msk [vmem:[#allocation3 + $0x48] sm:$0xff] %vm166_vm1, %v313_v12  ;;  %v4686_v15 = vld [vmem:[#allocation2 + $0x28] sm:$0xff] }
   0xc   :  { %203 = vst.msk [vmem:[#allocation3 + $0x60] sm:$0xff] %vm166_vm1, %v410_v14  ;;  %v4693_v17 = vld [vmem:[#allocation2 + $0x30] sm:$0xff]  ;;  %204 = vst.msk [vmem:[#allocation3 + $0x78] sm:$0xff] %vm166_vm1, %v4686_v15  ;;  %v4701_v19 = vld [vmem:[#allocation2 + $0x38] sm:$0xff] }
   0xd   :  { %249 = vrot.lane.b32.xlu0 %v312_v10, %s4579_s23  ;;  %205 = vst.msk [vmem:[#allocation3 + $0x90] sm:$0xff] %vm166_vm1, %v4693_v17  ;;  %v4706_v20 = vld [vmem:[#allocation2 + $0x40] sm:$0xff]  ;;  %206 = vst.msk [vmem:[#allocation3 + $0xa8] sm:$0xff] %vm166_vm1, %v4701_v19  ;;  %v4720_v23 = vld [vmem:[#allocation2 + $0x48] sm:$0xff] }
   0xe   :  { %207 = vst.msk [vmem:[#allocation3 + $0xc0] sm:$0xff] %vm166_vm1, %v4706_v20  ;;  %v416_v25 = vld [vmem:[#allocation2 + $0x50] sm:$0xff]  ;;  %208 = vst.msk [vmem:[#allocation3 + $0xd8] sm:$0xff] %vm166_vm1, %v4720_v23  ;;  %v4730_v26 = vld [vmem:[#allocation2 + $0x58] sm:$0xff] }
   0xf   :  { %346 = vrot.lane.b32.xlu1 %v313_v12, %s4580_s28  ;;  %209 = vst.msk [vmem:[#allocation3 + $0xf0] sm:$0xff] %vm166_vm1, %v416_v25  ;;  %199 = vst.msk [vmem:[#allocation3] sm:$0xff] %vm166_vm1, %v183_v28  ;;  %v4468_v29 = vld [vmem:[%s5945_s1] sm:$0xff]   ;;  %v515_v31 = vld [vmem:[#allocation2 + $0x68] sm:$0xff] }
  0x10   :  { %210 = vst.msk [vmem:[#allocation3 + $0x108] sm:$0xff] %vm166_vm1, %v4730_v26  ;;  %v418_v30 = vld [vmem:[#allocation2 + $0x60] sm:$0xff]  ;;  %182 = vst.msk [vmem:[#allocation2 + $0x88] sm:$0xff] %vm166_vm1, %v4467_v27  ;;  %4325 = vmatprep.subr.bf16.mxu0 %v4468_v29  ;;  %v4469_v32 = vld [vmem:[%s5945_s1 + $0x8] sm:$0xff]  }
  0x11   :  { %441 = vrot.lane.b32.xlu0 %v313_v12, %s4581_s16  ;;  %211 = vst.msk [vmem:[#allocation3 + $0x120] sm:$0xff] %vm166_vm1, %v418_v30  ;;  %4326 = vmatpush3.bf16.msra.mxu0 %v4468_v29  ;;  %212 = vst.msk [vmem:[#allocation3 + $0x138] sm:$0xff] %vm166_vm1, %v515_v31  ;;  %v420_v33 = vld [vmem:[#allocation2 + $0x70] sm:$0xff]  ;;  %v517_v35 = vld [vmem:[#allocation2 + $0x78] sm:$0xff] }
  0x12   :  { %4327 = vmatprep.subr.bf16.mxu0 %v4469_v32  ;;  %v4470_v34 = vld [vmem:[%s5945_s1 + $0x10] sm:$0xff]   ;;  %213 = vst.msk [vmem:[#allocation3 + $0x150] sm:$0xff] %vm166_vm1, %v420_v33  ;;  %214 = vst.msk [vmem:[#allocation3 + $0x168] sm:$0xff] %vm166_vm1, %v517_v35  ;;  %v4471_v36 = vld [vmem:[%s5945_s1 + $0x18] sm:$0xff]  }
  0x13   :  { %443 = vrot.lane.b32.xlu1 %v410_v14, %s4581_s16  ;;  %v4472_v37 = vld [vmem:[%s5945_s1 + $0x20] sm:$0xff]   ;;  %v424_v43 = vld [vmem:[#allocation2 + $0x90] sm:$0xff]  ;;  %v521_v46 = vld [vmem:[#allocation2 + $0x98] sm:$0xff] }
  0x14   :  { %v422_v38 = vld [vmem:[#allocation2 + $0x80] sm:$0xff] }
  0x15   :  { %538 = vrot.lane.b32.xlu0 %v410_v14, %s4582_s24  ;;  %4328 = vmatpush3.bf16.msra.mxu0 %v4469_v32 }
  0x16   :  { %4329 = vmatprep.subr.bf16.mxu0 %v4470_v34 }
  0x17   :  { %540 = vrot.lane.b32.xlu1 %v4686_v15, %s4582_s24  ;;  %v519_v39 = vld [vmem:[#allocation2 + $0x88] sm:$0xff] }
  0x19   :  { %251 = vrot.lane.b32.xlu0 %v313_v12, %s4579_s23  ;;  %4330 = vmatpush3.bf16.msra.mxu0 %v4470_v34 }
  0x1a   :  { %4331 = vmatprep.subr.bf16.mxu0 %v4471_v36 }
  0x1b   :  { %253 = vrot.lane.b32.xlu1 %v410_v14, %s4579_s23 }
  0x1d   :  { %348 = vrot.lane.b32.xlu0 %v410_v14, %s4580_s28  ;;  %4332 = vmatpush3.bf16.msra.mxu0 %v4471_v36 }
  0x1e   :  { %4333 = vmatprep.subr.bf16.mxu0 %v4472_v37 }
  0x1f   :  { %350 = vrot.lane.b32.xlu1 %v4686_v15, %s4580_s28 }
  0x21   :  { %445 = vrot.lane.b32.xlu0 %v4686_v15, %s4581_s16  ;;  %4334 = vmatpush3.bf16.msra.mxu0 %v4472_v37 }
  0x23   :  { %447 = vrot.lane.b32.xlu1 %v4693_v17, %s4581_s16 }
  0x25   :  { %542 = vrot.lane.b32.xlu0 %v4693_v17, %s4582_s24 }
  0x27   :  { %544 = vrot.lane.b32.xlu1 %v4701_v19, %s4582_s24 }
  0x29   :  { %255 = vrot.lane.b32.xlu0 %v4686_v15, %s4579_s23 }
  0x2b   :  { %257 = vrot.lane.b32.xlu1 %v4693_v17, %s4579_s23 }
  0x2d   :  { %352 = vrot.lane.b32.xlu0 %v4693_v17, %s4580_s28 }
  0x2f   :  { %354 = vrot.lane.b32.xlu1 %v4701_v19, %s4580_s28 }
  0x31   :  { %449 = vrot.lane.b32.xlu0 %v4701_v19, %s4581_s16 }
  0x33   :  { %451 = vrot.lane.b32.xlu1 %v4706_v20, %s4581_s16 }
  0x35   :  { %546 = vrot.lane.b32.xlu0 %v4706_v20, %s4582_s24 }
  0x37   :  { %548 = vrot.lane.b32.xlu1 %v4720_v23, %s4582_s24 }
  0x39   :  { %259 = vrot.lane.b32.xlu0 %v4701_v19, %s4579_s23 }
  0x3b   :  { %261 = vrot.lane.b32.xlu1 %v4706_v20, %s4579_s23 }
  0x3d   :  { %356 = vrot.lane.b32.xlu0 %v4706_v20, %s4580_s28 }
  0x3f   :  { %358 = vrot.lane.b32.xlu1 %v4720_v23, %s4580_s28 }
  0x41   :  { %453 = vrot.lane.b32.xlu0 %v4720_v23, %s4581_s16 }
  0x43   :  { %455 = vrot.lane.b32.xlu1 %v416_v25, %s4581_s16 }
  0x45   :  { %550 = vrot.lane.b32.xlu0 %v416_v25, %s4582_s24 }
  0x47   :  { %552 = vrot.lane.b32.xlu1 %v4730_v26, %s4582_s24 }
  0x49   :  { %263 = vrot.lane.b32.xlu0 %v4720_v23, %s4579_s23 }
  0x4b   :  { %265 = vrot.lane.b32.xlu1 %v416_v25, %s4579_s23 }
  0x4d   :  { %360 = vrot.lane.b32.xlu0 %v416_v25, %s4580_s28 }
  0x4f   :  { %362 = vrot.lane.b32.xlu1 %v4730_v26, %s4580_s28 }
  0x51   :  { %457 = vrot.lane.b32.xlu0 %v4730_v26, %s4581_s16 }
  0x53   :  { %459 = vrot.lane.b32.xlu1 %v418_v30, %s4581_s16 }
  0x55   :  { %554 = vrot.lane.b32.xlu0 %v418_v30, %s4582_s24 }
  0x57   :  { %556 = vrot.lane.b32.xlu1 %v515_v31, %s4582_s24 }
  0x59   :  { %267 = vrot.lane.b32.xlu0 %v4730_v26, %s4579_s23 }
  0x5b   :  { %269 = vrot.lane.b32.xlu1 %v418_v30, %s4579_s23 }
  0x5d   :  { %364 = vrot.lane.b32.xlu0 %v418_v30, %s4580_s28 }
  0x5f   :  { %366 = vrot.lane.b32.xlu1 %v515_v31, %s4580_s28 }
  0x61   :  { %461 = vrot.lane.b32.xlu0 %v515_v31, %s4581_s16 }
  0x63   :  { %463 = vrot.lane.b32.xlu1 %v420_v33, %s4581_s16 }
  0x65   :  { %558 = vrot.lane.b32.xlu0 %v420_v33, %s4582_s24 }
  0x67   :  { %560 = vrot.lane.b32.xlu1 %v517_v35, %s4582_s24 }
  0x69   :  { %271 = vrot.lane.b32.xlu0 %v515_v31, %s4579_s23 }
  0x6b   :  { %273 = vrot.lane.b32.xlu1 %v420_v33, %s4579_s23 }
  0x6d   :  { %368 = vrot.lane.b32.xlu0 %v420_v33, %s4580_s28 }
  0x6f   :  { %370 = vrot.lane.b32.xlu1 %v517_v35, %s4580_s28 }
  0x71   :  { %465 = vrot.lane.b32.xlu0 %v517_v35, %s4581_s16 }
  0x73   :  { %467 = vrot.lane.b32.xlu1 %v422_v38, %s4581_s16 }
  0x75   :  { %562 = vrot.lane.b32.xlu0 %v422_v38, %s4582_s24 }
  0x77   :  { %564 = vrot.lane.b32.xlu1 %v519_v39, %s4582_s24 }
  0x79   :  { %275 = vrot.lane.b32.xlu0 %v517_v35, %s4579_s23 }
  0x7b   :  { %277 = vrot.lane.b32.xlu1 %v422_v38, %s4579_s23  ;;  %v248_v40 = vpop.permute.xlu0 %247 }
  0x7c   :  { %296 = vst.msk [vmem:[#allocation3] sm:$0xff] %vm295_vm2, %v248_v40 }
  0x7d   :  { %v345_v41 = vpop.permute.xlu1 %344  ;;  %372 = vrot.lane.b32.xlu0 %v422_v38, %s4580_s28 }
  0x7e   :  { %393 = vst.msk [vmem:[#allocation3] sm:$0xff] %vm392_vm3, %v345_v41 }
  0x7f   :  { %374 = vrot.lane.b32.xlu1 %v519_v39, %s4580_s28  ;;  %v250_v42 = vpop.permute.xlu0 %249 }
  0x80   :  { %297 = vst.msk [vmem:[#allocation3 + $0x18] sm:$0xff] %vm295_vm2, %v250_v42 }
  0x81   :  { %v347_v44 = vpop.permute.xlu1 %346  ;;  %469 = vrot.lane.b32.xlu0 %v519_v39, %s4581_s16 }
  0x82   :  { %394 = vst.msk [vmem:[#allocation3 + $0x18] sm:$0xff] %vm392_vm3, %v347_v44 }
  0x83   :  { %471 = vrot.lane.b32.xlu1 %v424_v43, %s4581_s16  ;;  %v442_v45 = vpop.permute.xlu0 %441 }
  0x84   :  { %490 = vst.msk [vmem:[#allocation3] sm:$0xff] %vm489_vm4, %v442_v45 }
  0x85   :  { %v444_v47 = vpop.permute.xlu1 %443  ;;  %566 = vrot.lane.b32.xlu0 %v424_v43, %s4582_s24 }
  0x86   :  { %491 = vst.msk [vmem:[#allocation3 + $0x18] sm:$0xff] %vm489_vm4, %v444_v47 }
  0x87   :  { %568 = vrot.lane.b32.xlu1 %v521_v46, %s4582_s24  ;;  %v539_v48 = vpop.permute.xlu0 %538 }
  0x88   :  { %587 = vst.msk [vmem:[#allocation3] sm:$0xff] %vm586_vm5, %v539_v48 }
  0x89   :  { %v541_v49 = vpop.permute.xlu1 %540 }
  0x8a   :  { %588 = vst.msk [vmem:[#allocation3 + $0x18] sm:$0xff] %vm586_vm5, %v541_v49 }
  0x8b   :  { %v252_v50 = vpop.permute.xlu0 %251  ;;  %1070 = vrot.lane.b32.xlu1 %v4663_v8, %s4582_s24 }
  0x8c   :  { %298 = vst.msk [vmem:[#allocation3 + $0x30] sm:$0xff] %vm295_vm2, %v252_v50 }
  0x8d   :  { %v254_v51 = vpop.permute.xlu1 %253 }
  0x8e   :  { %299 = vst.msk [vmem:[#allocation3 + $0x48] sm:$0xff] %vm295_vm2, %v254_v51 }
  0x8f   :  { %v349_v52 = vpop.permute.xlu0 %348  ;;  %v603_v53 = vld [vmem:[#allocation3] sm:$0xff] }
  0x90   :  { %395 = vst.msk [vmem:[#allocation3 + $0x30] sm:$0xff] %vm392_vm3, %v349_v52  ;;  %4335 = vmatprep.mubr.msk.bf16.mxu0 %vm666_vm6, %v603_v53 }
  0x91   :  { %v351_v54 = vpop.permute.xlu1 %350  ;;  %v604_v55 = vld [vmem:[#allocation3 + $0x18] sm:$0xff] }
  0x92   :  { %396 = vst.msk [vmem:[#allocation3 + $0x48] sm:$0xff] %vm392_vm3, %v351_v54  ;;  %4336 = vmatmul.mubr.msk.bf16.vlgmr.msra.gmra.mrb[0].mxu0 %vm666_vm6, %v604_v55 }
  0x93   :  { %v446_v56 = vpop.permute.xlu0 %445 }
  0x94   :  { %492 = vst.msk [vmem:[#allocation3 + $0x30] sm:$0xff] %vm489_vm4, %v446_v56 }
  0x95   :  { %v448_v57 = vpop.permute.xlu1 %447 }
  0x96   :  { %493 = vst.msk [vmem:[#allocation3 + $0x48] sm:$0xff] %vm489_vm4, %v448_v57 }
  0x97   :  { %v543_v58 = vpop.permute.xlu0 %542 }
  0x98   :  { %589 = vst.msk [vmem:[#allocation3 + $0x30] sm:$0xff] %vm586_vm5, %v543_v58 }
  0x99   :  { %v545_v59 = vpop.permute.xlu1 %544 }
  0x9a   :  { %590 = vst.msk [vmem:[#allocation3 + $0x48] sm:$0xff] %vm586_vm5, %v545_v59  ;;  %v4473_v59 = vld [vmem:[%s5946_s3 + $0x80] sm:$0xff]  }
  0x9b   :  { %v256_v60 = vpop.permute.xlu0 %255  ;;  %4367 = vmatprep.subr.bf16.mxu0 %v4473_v59 }
  0x9c   :  { %300 = vst.msk [vmem:[#allocation3 + $0x60] sm:$0xff] %vm295_vm2, %v256_v60  ;;  %4368 = vmatpush3.bf16.msra.mxu0 %v4473_v59  ;;  %v4474_v60 = vld [vmem:[%s5946_s3 + $0x88] sm:$0xff]  }
  0x9d   :  { %v258_v61 = vpop.permute.xlu1 %257  ;;  %4369 = vmatprep.subr.bf16.mxu0 %v4474_v60 }
  0x9e   :  { %301 = vst.msk [vmem:[#allocation3 + $0x78] sm:$0xff] %vm295_vm2, %v258_v61  ;;  %v4475_v61 = vld [vmem:[%s5946_s3 + $0x90] sm:$0xff]  }
  0x9f   :  { %v353_v62 = vpop.permute.xlu0 %352  ;;  %v605_v63 = vld [vmem:[#allocation3 + $0x30] sm:$0xff] }
  0xa0   :  { %397 = vst.msk [vmem:[#allocation3 + $0x60] sm:$0xff] %vm392_vm3, %v353_v62  ;;  %4339 = vmatprep.mubr.msk.bf16.mxu0 %vm666_vm6, %v605_v63  ;;  %4370 = vmatpush3.bf16.msra.mxu0 %v4474_v60  ;;  %v4476_v62 = vld [vmem:[%s5946_s3 + $0x98] sm:$0xff]   ;;  %v4939_v63 = vld [vmem:[%s5947_s2] ss:$0 sm:$0xff] }
  0xa1   :  { %v355_v0 = vpop.permute.xlu1 %354  ;;  %v606_v1 = vld [vmem:[#allocation3 + $0x48] sm:$0xff]  ;;  %4371 = vmatprep.subr.bf16.mxu0 %v4475_v61 }
  0xa2   :  { %398 = vst.msk [vmem:[#allocation3 + $0x78] sm:$0xff] %vm392_vm3, %v355_v0  ;;  %4340 = vmatmul.mubr.msk.bf16.gmra.mrb[4].mxu0 %vm666_vm6, %v606_v1 }
  0xa3   :  { %v450_v2 = vpop.permute.xlu0 %449 }
  0xa4   :  { %494 = vst.msk [vmem:[#allocation3 + $0x60] sm:$0xff] %vm489_vm4, %v450_v2  ;;  %4372 = vmatpush3.bf16.msra.mxu0 %v4475_v61  ;;  %v4491_v61 = vld [vmem:[%s5946_s3 + $0x78] sm:$0xff]  }
  0xa5   :  { %v452_v3 = vpop.permute.xlu1 %451  ;;  %4373 = vmatprep.subr.bf16.mxu0 %v4476_v62 }
  0xa6   :  { %495 = vst.msk [vmem:[#allocation3 + $0x78] sm:$0xff] %vm489_vm4, %v452_v3 }
  0xa7   :  { %v547_v4 = vpop.permute.xlu0 %546 }
  0xa8   :  { %591 = vst.msk [vmem:[#allocation3 + $0x60] sm:$0xff] %vm586_vm5, %v547_v4  ;;  %4374 = vmatpush3.bf16.msra.mxu0 %v4476_v62 }
  0xa9   :  { %v549_v5 = vpop.permute.xlu1 %548 }
  0xaa   :  { %592 = vst.msk [vmem:[#allocation3 + $0x78] sm:$0xff] %vm586_vm5, %v549_v5 }
  0xab   :  { %v260_v6 = vpop.permute.xlu0 %259 }
  0xac   :  { %302 = vst.msk [vmem:[#allocation3 + $0x90] sm:$0xff] %vm295_vm2, %v260_v6 }
  0xad   :  { %v262_v7 = vpop.permute.xlu1 %261 }
  0xae   :  { %303 = vst.msk [vmem:[#allocation3 + $0xa8] sm:$0xff] %vm295_vm2, %v262_v7 }
  0xaf   :  { %v357_v9 = vpop.permute.xlu0 %356  ;;  %v607_v10 = vld [vmem:[#allocation3 + $0x60] sm:$0xff] }
  0xb0   :  { %399 = vst.msk [vmem:[#allocation3 + $0x90] sm:$0xff] %vm392_vm3, %v357_v9  ;;  %4343 = vmatprep.mubr.msk.bf16.mxu0 %vm666_vm6, %v607_v10 }
  0xb1   :  { %v359_v11 = vpop.permute.xlu1 %358  ;;  %v608_v12 = vld [vmem:[#allocation3 + $0x78] sm:$0xff] }
  0xb2   :  { %400 = vst.msk [vmem:[#allocation3 + $0xa8] sm:$0xff] %vm392_vm3, %v359_v11  ;;  %4344 = vmatmul.mubr.msk.bf16.gmra.mrb[8].mxu0 %vm666_vm6, %v608_v12 }
  0xb3   :  { %v454_v13 = vpop.permute.xlu0 %453 }
  0xb4   :  { %496 = vst.msk [vmem:[#allocation3 + $0x90] sm:$0xff] %vm489_vm4, %v454_v13  ;;  %v4477_v13 = vld [vmem:[%s5946_s3 + $0x40] sm:$0xff]  }
  0xb5   :  { %v456_v14 = vpop.permute.xlu1 %455  ;;  %3973 = vmatprep.subr.bf16.mxu1 %v4477_v13 }
  0xb6   :  { %497 = vst.msk [vmem:[#allocation3 + $0xa8] sm:$0xff] %vm489_vm4, %v456_v14  ;;  %v4478_v14 = vld [vmem:[%s5946_s3] sm:$0xff]  }
  0xb7   :  { %v551_v15 = vpop.permute.xlu0 %550  ;;  %3974 = vmatpush3.bf16.msra.mxu1 %v4478_v14 }
  0xb8   :  { %593 = vst.msk [vmem:[#allocation3 + $0x90] sm:$0xff] %vm586_vm5, %v551_v15  ;;  %v1006_v15 = vld [vmem:[#allocation2] sm:$0xff] }
  0xb9   :  { %v553_v16 = vpop.permute.xlu1 %552  ;;  %1022 = vst.msk [vmem:[#allocation3] sm:$0xff] %vm33_vm0, %v1006_v15 }
  0xba   :  { %594 = vst.msk [vmem:[#allocation3 + $0xa8] sm:$0xff] %vm586_vm5, %v553_v16 }
  0xbb   :  { %v264_v17 = vpop.permute.xlu0 %263 }
  0xbc   :  { %304 = vst.msk [vmem:[#allocation3 + $0xc0] sm:$0xff] %vm295_vm2, %v264_v17 }
  0xbd   :  { %v266_v18 = vpop.permute.xlu1 %265 }
  0xbe   :  { %305 = vst.msk [vmem:[#allocation3 + $0xd8] sm:$0xff] %vm295_vm2, %v266_v18  ;;  %v4479_v18 = vld [vmem:[%s5946_s3 + $0x48] sm:$0xff]  }
  0xbf   :  { %v361_v19 = vpop.permute.xlu0 %360  ;;  %v609_v20 = vld [vmem:[#allocation3 + $0x90] sm:$0xff]  ;;  %3975 = vmatprep.subr.bf16.mxu1 %v4479_v18 }
  0xc0   :  { %401 = vst.msk [vmem:[#allocation3 + $0xc0] sm:$0xff] %vm392_vm3, %v361_v19  ;;  %4347 = vmatprep.mubr.msk.bf16.mxu0 %vm666_vm6, %v609_v20  ;;  %v4480_v20 = vld [vmem:[%s5946_s3 + $0x8] sm:$0xff]  }
  0xc1   :  { %v363_v21 = vpop.permute.xlu1 %362  ;;  %v610_v22 = vld [vmem:[#allocation3 + $0xa8] sm:$0xff]  ;;  %3976 = vmatpush3.bf16.msra.mxu1 %v4480_v20 }
  0xc2   :  { %402 = vst.msk [vmem:[#allocation3 + $0xd8] sm:$0xff] %vm392_vm3, %v363_v21  ;;  %4348 = vmatmul.mubr.msk.bf16.gmra.mrb[12].mxu0 %vm666_vm6, %v610_v22  ;;  %v4964_v21 = vld [vmem:[#allocation2 + $0x8] sm:$0xff]  ;;  %v4481_v22 = vld [vmem:[%s5946_s3 + $0x50] sm:$0xff]  }
  0xc3   :  { %v458_v23 = vpop.permute.xlu0 %457  ;;  %1023 = vst.msk [vmem:[#allocation3 + $0x18] sm:$0xff] %vm33_vm0, %v4964_v21  ;;  %3977 = vmatprep.subr.bf16.mxu1 %v4481_v22 }
  0xc4   :  { %498 = vst.msk [vmem:[#allocation3 + $0xc0] sm:$0xff] %vm489_vm4, %v458_v23 }
  0xc5   :  { %v460_v24 = vpop.permute.xlu1 %459 }
  0xc6   :  { %499 = vst.msk [vmem:[#allocation3 + $0xd8] sm:$0xff] %vm489_vm4, %v460_v24  ;;  %v4482_v24 = vld [vmem:[%s5946_s3 + $0x10] sm:$0xff]  }
  0xc7   :  { %v555_v25 = vpop.permute.xlu0 %554  ;;  %3978 = vmatpush3.bf16.msra.mxu1 %v4482_v24 }
  0xc8   :  { %595 = vst.msk [vmem:[#allocation3 + $0xc0] sm:$0xff] %vm586_vm5, %v555_v25 }
  0xc9   :  { %v557_v26 = vpop.permute.xlu1 %556 }
  0xca   :  { %596 = vst.msk [vmem:[#allocation3 + $0xd8] sm:$0xff] %vm586_vm5, %v557_v26 }
  0xcb   :  { %v268_v27 = vpop.permute.xlu0 %267 }
  0xcc   :  { %306 = vst.msk [vmem:[#allocation3 + $0xf0] sm:$0xff] %vm295_vm2, %v268_v27  ;;  %v4483_v27 = vld [vmem:[%s5946_s3 + $0x58] sm:$0xff]  }
  0xcd   :  { %v270_v28 = vpop.permute.xlu1 %269  ;;  %3979 = vmatprep.subr.bf16.mxu1 %v4483_v27 }
  0xce   :  { %307 = vst.msk [vmem:[#allocation3 + $0x108] sm:$0xff] %vm295_vm2, %v270_v28 }
  0xcf   :  { %v365_v29 = vpop.permute.xlu0 %364  ;;  %v611_v30 = vld [vmem:[#allocation3 + $0xc0] sm:$0xff] }
  0xd0   :  { %403 = vst.msk [vmem:[#allocation3 + $0xf0] sm:$0xff] %vm392_vm3, %v365_v29  ;;  %4351 = vmatprep.mubr.msk.bf16.mxu0 %vm666_vm6, %v611_v30 }
  0xd1   :  { %v367_v31 = vpop.permute.xlu1 %366  ;;  %v612_v32 = vld [vmem:[#allocation3 + $0xd8] sm:$0xff] }
  0xd2   :  { %404 = vst.msk [vmem:[#allocation3 + $0x108] sm:$0xff] %vm392_vm3, %v367_v31  ;;  %4352 = vmatmul.mubr.msk.bf16.gmra.mrb[16].mxu0 %vm666_vm6, %v612_v32 }
  0xd3   :  { %v462_v33 = vpop.permute.xlu0 %461 }
  0xd4   :  { %500 = vst.msk [vmem:[#allocation3 + $0xf0] sm:$0xff] %vm489_vm4, %v462_v33 }
  0xd5   :  { %v464_v34 = vpop.permute.xlu1 %463 }
  0xd6   :  { %501 = vst.msk [vmem:[#allocation3 + $0x108] sm:$0xff] %vm489_vm4, %v464_v34 }
  0xd7   :  { %v559_v35 = vpop.permute.xlu0 %558 }
  0xd8   :  { %597 = vst.msk [vmem:[#allocation3 + $0xf0] sm:$0xff] %vm586_vm5, %v559_v35  ;;  %v4484_v35 = vld [vmem:[%s5946_s3 + $0x18] sm:$0xff]  }
  0xd9   :  { %v561_v36 = vpop.permute.xlu1 %560  ;;  %3980 = vmatpush3.bf16.msra.mxu1 %v4484_v35 }
  0xda   :  { %598 = vst.msk [vmem:[#allocation3 + $0x108] sm:$0xff] %vm586_vm5, %v561_v36 }
  0xdb   :  { %v272_v37 = vpop.permute.xlu0 %271 }
  0xdc   :  { %308 = vst.msk [vmem:[#allocation3 + $0x120] sm:$0xff] %vm295_vm2, %v272_v37 }
  0xdd   :  { %v274_v38 = vpop.permute.xlu1 %273 }
  0xde   :  { %309 = vst.msk [vmem:[#allocation3 + $0x138] sm:$0xff] %vm295_vm2, %v274_v38 }
  0xdf   :  { %v369_v39 = vpop.permute.xlu0 %368  ;;  %v613_v40 = vld [vmem:[#allocation3 + $0xf0] sm:$0xff] }
  0xe0   :  { %405 = vst.msk [vmem:[#allocation3 + $0x120] sm:$0xff] %vm392_vm3, %v369_v39  ;;  %4355 = vmatprep.mubr.msk.bf16.mxu0 %vm666_vm6, %v613_v40  ;;  %v4485_v39 = vld [vmem:[%s5946_s3 + $0x60] sm:$0xff]  }
  0xe1   :  { %v371_v41 = vpop.permute.xlu1 %370  ;;  %v614_v42 = vld [vmem:[#allocation3 + $0x108] sm:$0xff]  ;;  %v4486_v40 = vld [vmem:[%s5946_s3 + $0x20] sm:$0xff]   ;;  %3981 = vmatprep.subr.bf16.mxu1 %v4485_v39 }
  0xe2   :  { %406 = vst.msk [vmem:[#allocation3 + $0x138] sm:$0xff] %vm392_vm3, %v371_v41  ;;  %4356 = vmatmul.mubr.msk.bf16.gmra.mrb[20].mxu0 %vm666_vm6, %v614_v42  ;;  %3982 = vmatpush3.bf16.msra.mxu1 %v4486_v40 }
  0xe3   :  { %v466_v43 = vpop.permute.xlu0 %465 }
  0xe4   :  { %502 = vst.msk [vmem:[#allocation3 + $0x120] sm:$0xff] %vm489_vm4, %v466_v43  ;;  %v4487_v43 = vld [vmem:[%s5946_s3 + $0x68] sm:$0xff]  }
  0xe5   :  { %v468_v44 = vpop.permute.xlu1 %467  ;;  %3983 = vmatprep.subr.bf16.mxu1 %v4487_v43 }
  0xe6   :  { %503 = vst.msk [vmem:[#allocation3 + $0x138] sm:$0xff] %vm489_vm4, %v468_v44 }
  0xe7   :  { %v563_v45 = vpop.permute.xlu0 %562 }
  0xe8   :  { %599 = vst.msk [vmem:[#allocation3 + $0x120] sm:$0xff] %vm586_vm5, %v563_v45 }
  0xe9   :  { %v565_v46 = vpop.permute.xlu1 %564 }
  0xea   :  { %600 = vst.msk [vmem:[#allocation3 + $0x138] sm:$0xff] %vm586_vm5, %v565_v46 }
  0xeb   :  { %v276_v47 = vpop.permute.xlu0 %275 }
  0xec   :  { %310 = vst.msk [vmem:[#allocation3 + $0x150] sm:$0xff] %vm295_vm2, %v276_v47  ;;  %v4488_v47 = vld [vmem:[%s5946_s3 + $0x28] sm:$0xff]  }
  0xed   :  { %v278_v48 = vpop.permute.xlu1 %277  ;;  %3984 = vmatpush3.bf16.msra.mxu1 %v4488_v47 }
  0xee   :  { %311 = vst.msk [vmem:[#allocation3 + $0x168] sm:$0xff] %vm295_vm2, %v278_v48  ;;  %v4489_v48 = vld [vmem:[%s5946_s3 + $0x70] sm:$0xff]  }
  0xef   :  { %v373_v49 = vpop.permute.xlu0 %372  ;;  %v615_v50 = vld [vmem:[#allocation3 + $0x120] sm:$0xff]  ;;  %3985 = vmatprep.subr.bf16.mxu1 %v4489_v48 }
  0xf0   :  { %407 = vst.msk [vmem:[#allocation3 + $0x150] sm:$0xff] %vm392_vm3, %v373_v49  ;;  %4359 = vmatprep.mubr.msk.bf16.mxu0 %vm666_vm6, %v615_v50  ;;  %v4490_v50 = vld [vmem:[%s5946_s3 + $0x30] sm:$0xff]  }
  0xf1   :  { %v375_v51 = vpop.permute.xlu1 %374  ;;  %v616_v52 = vld [vmem:[#allocation3 + $0x138] sm:$0xff]  ;;  %3986 = vmatpush3.bf16.msra.mxu1 %v4490_v50 }
  0xf2   :  { %408 = vst.msk [vmem:[#allocation3 + $0x168] sm:$0xff] %vm392_vm3, %v375_v51  ;;  %4360 = vmatmul.mubr.msk.bf16.gmra.mrb[24].mxu0 %vm666_vm6, %v616_v52  ;;  %3987 = vmatprep.subr.bf16.mxu1 %v4491_v61 }
  0xf3   :  { %v470_v53 = vpop.permute.xlu0 %469 }
  0xf4   :  { %504 = vst.msk [vmem:[#allocation3 + $0x150] sm:$0xff] %vm489_vm4, %v470_v53 }
  0xf5   :  { %v472_v54 = vpop.permute.xlu1 %471 }
  0xf6   :  { %505 = vst.msk [vmem:[#allocation3 + $0x168] sm:$0xff] %vm489_vm4, %v472_v54 }
  0xf7   :  { %v567_v55 = vpop.permute.xlu0 %566 }
  0xf8   :  { %601 = vst.msk [vmem:[#allocation3 + $0x150] sm:$0xff] %vm586_vm5, %v567_v55 }
  0xf9   :  { %v569_v56 = vpop.permute.xlu1 %568 }
  0xfa   :  { %602 = vst.msk [vmem:[#allocation3 + $0x168] sm:$0xff] %vm586_vm5, %v569_v56 }
  0xfd   :  { %v1071_v17 = vpop.permute.xlu1 %1070 }
  0xfe   :  { %1119 = vst.msk [vmem:[#allocation3] sm:$0xff] %vm1118_vm7, %v1071_v17 }
  0xff   :  { %v617_v57 = vld [vmem:[#allocation3 + $0x150] sm:$0xff] }
 0x100   :  { %4363 = vmatprep.mubr.msk.bf16.mxu0 %vm666_vm6, %v617_v57 }
 0x101   :  { %v618_v58 = vld [vmem:[#allocation3 + $0x168] sm:$0xff] }
 0x102   :  { %4364 = vmatmul.mubr.msk.bf16.gmra.mrb[28].mxu0 %vm666_vm6, %v618_v58 }
 0x165   :  { %v4337_v0 = vpop.f32.mrb[0].mxu0 }
 0x166   :  { %v758_v1 = vadd.f32 %v4337_v0, %v4939_v63  ;;  %v749_v2 = vpop.f32.mrb[1].mxu0 }
 0x167   :  { %v750_v3 = vadd.f32 %v4939_v63, %v749_v2  ;;  %v4338_v4 = vpop.f32.mrb[2].mxu0  ;;  %v4492_v2 = vld [vmem:[%s5946_s3 + $0x38] sm:$0xff]  }
 0x168   :  { %v761_v5 = vadd.f32 %v4338_v4, %v4939_v63  ;;  %v752_v6 = vpop.f32.mrb[3].mxu0  ;;  %v878_v9 = vmax.f32 %v758_v1, 0.0  ;;  %v5020_v1 = vld [vmem:[#allocation2 + $0x90] sm:$0xff]  ;;  %3988 = vmatpush3.bf16.msra.mxu1 %v4492_v2 }
 0x169   :  { %v753_v7 = vadd.f32 %v4939_v63, %v752_v6  ;;  %v876_v11 = vmax.f32 %v750_v3, 0.0  ;;  %1293 = vst.msk [vmem:[#allocation3 + $0x160] sm:$0xff] %vm33_vm0, %v5020_v1 }
 0x16a   :  { %v879_v10 = vmax.f32 %v761_v5, 0.0 }
 0x16b   :  { %v877_v12 = vmax.f32 %v753_v7, 0.0 }
 0x16c   :  { %v4951_v16 = vpack.c.bf16 %v879_v10, %v878_v9 }
 0x16d   :  { %v908_v19 = vpack.c.bf16 %v877_v12, %v876_v11 }
 0x16e   :  { %925 = vst.msk [vmem:[#allocation2 + $0x18] sm:$0xff] %vm33_vm0, %v4951_v16 }
 0x16f   :  { %924 = vst.msk [vmem:[#allocation2 + $0x10] sm:$0xff] %vm33_vm0, %v908_v19  ;;  %v956_v23 = vmax.bf16 %v908_v19, %v4663_v8 }
 0x175   :  { %v942_v25 = vld [vmem:[#allocation2 + $0x18] sm:$0xff]  ;;  %v4341_v26 = vpop.f32.mrb[4].mxu0 }
 0x176   :  { %v941_v28 = vld [vmem:[#allocation2 + $0x10] sm:$0xff]  ;;  %v974_v29 = vmax.bf16 %v956_v23, %v942_v25  ;;  %v774_v30 = vadd.f32 %v4341_v26, %v4939_v63  ;;  %v765_v31 = vpop.f32.mrb[5].mxu0 }
 0x177   :  { %v766_v32 = vadd.f32 %v4939_v63, %v765_v31  ;;  %v4342_v8 = vpop.f32.mrb[6].mxu0  ;;  %v957_v51 = vmax.bf16 %v941_v28, %v4951_v16 }
 0x178   :  { %990 = vst.msk [vmem:[#allocation2 + $0x10] sm:$0xff] %vm33_vm0, %v974_v29  ;;  %v777_v33 = vadd.f32 %v4342_v8, %v4939_v63  ;;  %v768_v34 = vpop.f32.mrb[7].mxu0  ;;  %v882_v37 = vmax.f32 %v774_v30, 0.0 }
 0x179   :  { %v769_v36 = vadd.f32 %v4939_v63, %v768_v34  ;;  %v880_v41 = vmax.f32 %v766_v32, 0.0 }
 0x17a   :  { %v883_v38 = vmax.f32 %v777_v33, 0.0 }
 0x17b   :  { %v881_v42 = vmax.f32 %v769_v36, 0.0 }
 0x17c   :  { %v4995_v44 = vpack.c.bf16 %v883_v38, %v882_v37 }
 0x17d   :  { %v910_v45 = vpack.c.bf16 %v881_v42, %v880_v41 }
 0x17e   :  { %927 = vst.msk [vmem:[#allocation2 + $0x28] sm:$0xff] %vm33_vm0, %v4995_v44 }
 0x17f   :  { %926 = vst.msk [vmem:[#allocation2 + $0x20] sm:$0xff] %vm33_vm0, %v910_v45  ;;  %v1039_v46 = vld [vmem:[#allocation2 + $0x10] sm:$0xff]  ;;  %v958_v49 = vmax.bf16 %v942_v25, %v910_v45 }
 0x180   :  { %1072 = vrot.lane.b32.xlu1 %v1039_v46, %s4582_s24  ;;  %1151 = vst.msk [vmem:[#allocation3 + $0x8] sm:$0xff] %vm33_vm0, %v1039_v46  ;;  %1024 = vst.msk [vmem:[#allocation3 + $0x30] sm:$0xff] %vm33_vm0, %v1039_v46 }
 0x185   :  { %v944_v52 = vld [vmem:[#allocation2 + $0x28] sm:$0xff]  ;;  %v4345_v53 = vpop.f32.mrb[8].mxu0 }
 0x186   :  { %v943_v54 = vld [vmem:[#allocation2 + $0x20] sm:$0xff]  ;;  %v976_v55 = vmax.bf16 %v958_v49, %v944_v52  ;;  %v790_v56 = vadd.f32 %v4345_v53, %v4939_v63  ;;  %v781_v57 = vpop.f32.mrb[9].mxu0 }
 0x187   :  { %v975_v58 = vmax.bf16 %v957_v51, %v943_v54  ;;  %v782_v59 = vadd.f32 %v4939_v63, %v781_v57  ;;  %v4346_v60 = vpop.f32.mrb[10].mxu0  ;;  %v959_v14 = vmax.bf16 %v943_v54, %v4995_v44 }
 0x188   :  { %992 = vst.msk [vmem:[#allocation2 + $0x20] sm:$0xff] %vm33_vm0, %v976_v55  ;;  %v793_v62 = vadd.f32 %v4346_v60, %v4939_v63  ;;  %v784_v0 = vpop.f32.mrb[11].mxu0  ;;  %v886_v4 = vmax.f32 %v790_v56, 0.0 }
 0x189   :  { %991 = vst.msk [vmem:[#allocation2 + $0x18] sm:$0xff] %vm33_vm0, %v975_v58  ;;  %v785_v3 = vadd.f32 %v4939_v63, %v784_v0  ;;  %v884_v6 = vmax.f32 %v782_v59, 0.0 }
 0x18a   :  { %v887_v5 = vmax.f32 %v793_v62, 0.0 }
 0x18b   :  { %v885_v7 = vmax.f32 %v785_v3, 0.0 }
 0x18c   :  { %v913_v9 = vpack.c.bf16 %v887_v5, %v886_v4 }
 0x18d   :  { %v912_v10 = vpack.c.bf16 %v885_v7, %v884_v6 }
 0x18e   :  { %929 = vst.msk [vmem:[#allocation2 + $0x38] sm:$0xff] %vm33_vm0, %v913_v9 }
 0x18f   :  { %928 = vst.msk [vmem:[#allocation2 + $0x30] sm:$0xff] %vm33_vm0, %v912_v10  ;;  %v1168_v11 = vld [vmem:[#allocation2 + $0x20] sm:$0xff]  ;;  %v960_v13 = vmax.bf16 %v944_v52, %v912_v10 }
 0x190   :  { %v1167_v12 = vld [vmem:[#allocation2 + $0x18] sm:$0xff]  ;;  %1279 = vst.msk [vmem:[#allocation3 + $0x10] sm:$0xff] %vm33_vm0, %v1168_v11  ;;  %1153 = vst.msk [vmem:[#allocation3 + $0x38] sm:$0xff] %vm33_vm0, %v1168_v11 }
 0x191   :  { %1026 = vst.msk [vmem:[#allocation3 + $0x60] sm:$0xff] %vm33_vm0, %v1168_v11  ;;  %1199 = vrot.lane.b32.xlu0 %v1167_v12, %s4582_s24  ;;  %1074 = vrot.lane.b32.xlu1 %v1167_v12, %s4582_s24  ;;  %1152 = vst.msk [vmem:[#allocation3 + $0x20] sm:$0xff] %vm33_vm0, %v1167_v12 }
 0x192   :  { %1025 = vst.msk [vmem:[#allocation3 + $0x48] sm:$0xff] %vm33_vm0, %v1167_v12 }
 0x195   :  { %v946_v15 = vld [vmem:[#allocation2 + $0x38] sm:$0xff]  ;;  %v4349_v16 = vpop.f32.mrb[12].mxu0  ;;  %1201 = vrot.lane.b32.xlu0 %v1168_v11, %s4582_s24  ;;  %1076 = vrot.lane.b32.xlu1 %v1168_v11, %s4582_s24 }
 0x196   :  { %v945_v17 = vld [vmem:[#allocation2 + $0x30] sm:$0xff]  ;;  %v978_v18 = vmax.bf16 %v960_v13, %v946_v15  ;;  %v806_v19 = vadd.f32 %v4349_v16, %v4939_v63  ;;  %v797_v20 = vpop.f32.mrb[13].mxu0 }
 0x197   :  { %v977_v22 = vmax.bf16 %v959_v14, %v945_v17  ;;  %v798_v23 = vadd.f32 %v4939_v63, %v797_v20  ;;  %v4350_v24 = vpop.f32.mrb[14].mxu0  ;;  %v1297_v25 = vld [vmem:[#allocation3 + $0x10] sm:$0xff]  ;;  %v961_v37 = vmax.bf16 %v945_v17, %v913_v9 }
 0x198   :  { %994 = vst.msk [vmem:[#allocation2 + $0x30] sm:$0xff] %vm33_vm0, %v978_v18  ;;  %v809_v26 = vadd.f32 %v4350_v24, %v4939_v63  ;;  %v800_v27 = vpop.f32.mrb[15].mxu0  ;;  %4375 = vmatprep.mubr.msk.bf16.mxu0 %vm33_vm0, %v1297_v25  ;;  %v890_v29 = vmax.f32 %v806_v19, 0.0 }
 0x199   :  { %993 = vst.msk [vmem:[#allocation2 + $0x28] sm:$0xff] %vm33_vm0, %v977_v22  ;;  %v801_v28 = vadd.f32 %v4939_v63, %v800_v27  ;;  %v888_v31 = vmax.f32 %v798_v23, 0.0 }
 0x19a   :  { %v891_v30 = vmax.f32 %v809_v26, 0.0 }
 0x19b   :  { %v889_v32 = vmax.f32 %v801_v28, 0.0 }
 0x19c   :  { %v5048_v8 = vpack.c.bf16 %v891_v30, %v890_v29 }
 0x19d   :  { %v914_v33 = vpack.c.bf16 %v889_v32, %v888_v31 }
 0x19e   :  { %931 = vst.msk [vmem:[#allocation2 + $0x48] sm:$0xff] %vm33_vm0, %v5048_v8 }
 0x19f   :  { %930 = vst.msk [vmem:[#allocation2 + $0x40] sm:$0xff] %vm33_vm0, %v914_v33  ;;  %v1170_v34 = vld [vmem:[#allocation2 + $0x30] sm:$0xff]  ;;  %v962_v36 = vmax.bf16 %v946_v15, %v914_v33 }
 0x1a0   :  { %v1169_v35 = vld [vmem:[#allocation2 + $0x28] sm:$0xff]  ;;  %1281 = vst.msk [vmem:[#allocation3 + $0x40] sm:$0xff] %vm33_vm0, %v1170_v34  ;;  %1155 = vst.msk [vmem:[#allocation3 + $0x68] sm:$0xff] %vm33_vm0, %v1170_v34 }
 0x1a1   :  { %1028 = vst.msk [vmem:[#allocation3 + $0x90] sm:$0xff] %vm33_vm0, %v1170_v34  ;;  %1203 = vrot.lane.b32.xlu0 %v1169_v35, %s4582_s24  ;;  %1078 = vrot.lane.b32.xlu1 %v1169_v35, %s4582_s24  ;;  %1280 = vst.msk [vmem:[#allocation3 + $0x28] sm:$0xff] %vm33_vm0, %v1169_v35 }
 0x1a2   :  { %1154 = vst.msk [vmem:[#allocation3 + $0x50] sm:$0xff] %vm33_vm0, %v1169_v35  ;;  %1027 = vst.msk [vmem:[#allocation3 + $0x78] sm:$0xff] %vm33_vm0, %v1169_v35 }
 0x1a5   :  { %v948_v38 = vld [vmem:[#allocation2 + $0x48] sm:$0xff]  ;;  %v4353_v39 = vpop.f32.mrb[16].mxu0  ;;  %1205 = vrot.lane.b32.xlu0 %v1170_v34, %s4582_s24  ;;  %1080 = vrot.lane.b32.xlu1 %v1170_v34, %s4582_s24 }
 0x1a6   :  { %v947_v40 = vld [vmem:[#allocation2 + $0x40] sm:$0xff]  ;;  %v980_v41 = vmax.bf16 %v962_v36, %v948_v38  ;;  %v822_v42 = vadd.f32 %v4353_v39, %v4939_v63  ;;  %v813_v43 = vpop.f32.mrb[17].mxu0 }
 0x1a7   :  { %v979_v44 = vmax.bf16 %v961_v37, %v947_v40  ;;  %v814_v45 = vadd.f32 %v4939_v63, %v813_v43  ;;  %v4354_v46 = vpop.f32.mrb[18].mxu0  ;;  %v1303_v51 = vld [vmem:[#allocation3 + $0x40] sm:$0xff]  ;;  %v963_v61 = vmax.bf16 %v947_v40, %v5048_v8 }
 0x1a8   :  { %996 = vst.msk [vmem:[#allocation2 + $0x40] sm:$0xff] %vm33_vm0, %v980_v41  ;;  %v825_v47 = vadd.f32 %v4354_v46, %v4939_v63  ;;  %v816_v48 = vpop.f32.mrb[19].mxu0  ;;  %v1300_v49 = vld [vmem:[#allocation3 + $0x28] sm:$0xff]  ;;  %v894_v52 = vmax.f32 %v822_v42, 0.0 }
 0x1a9   :  { %995 = vst.msk [vmem:[#allocation2 + $0x38] sm:$0xff] %vm33_vm0, %v979_v44  ;;  %v817_v50 = vadd.f32 %v4939_v63, %v816_v48  ;;  %4376 = vmatmul.mubr.msk.bf16.vlgmr.msra.gmra.mrb[32].mxu0 %vm33_vm0, %v1300_v49  ;;  %v892_v54 = vmax.f32 %v814_v45, 0.0 }
 0x1aa   :  { %v895_v53 = vmax.f32 %v825_v47, 0.0  ;;  %4379 = vmatprep.mubr.msk.bf16.mxu0 %vm33_vm0, %v1303_v51 }
 0x1ab   :  { %v893_v55 = vmax.f32 %v817_v50, 0.0 }
 0x1ac   :  { %v5071_v56 = vpack.c.bf16 %v895_v53, %v894_v52 }
 0x1ad   :  { %v916_v57 = vpack.c.bf16 %v893_v55, %v892_v54 }
 0x1ae   :  { %933 = vst.msk [vmem:[#allocation2 + $0x58] sm:$0xff] %vm33_vm0, %v5071_v56 }
 0x1af   :  { %932 = vst.msk [vmem:[#allocation2 + $0x50] sm:$0xff] %vm33_vm0, %v916_v57  ;;  %v1172_v58 = vld [vmem:[#allocation2 + $0x40] sm:$0xff]  ;;  %v964_v60 = vmax.bf16 %v948_v38, %v916_v57 }
 0x1b0   :  { %v1171_v59 = vld [vmem:[#allocation2 + $0x38] sm:$0xff]  ;;  %1283 = vst.msk [vmem:[#allocation3 + $0x70] sm:$0xff] %vm33_vm0, %v1172_v58  ;;  %1157 = vst.msk [vmem:[#allocation3 + $0x98] sm:$0xff] %vm33_vm0, %v1172_v58 }
 0x1b1   :  { %1030 = vst.msk [vmem:[#allocation3 + $0xc0] sm:$0xff] %vm33_vm0, %v1172_v58  ;;  %1207 = vrot.lane.b32.xlu0 %v1171_v59, %s4582_s24  ;;  %1082 = vrot.lane.b32.xlu1 %v1171_v59, %s4582_s24  ;;  %1282 = vst.msk [vmem:[#allocation3 + $0x58] sm:$0xff] %vm33_vm0, %v1171_v59 }
 0x1b2   :  { %1156 = vst.msk [vmem:[#allocation3 + $0x80] sm:$0xff] %vm33_vm0, %v1171_v59  ;;  %1029 = vst.msk [vmem:[#allocation3 + $0xa8] sm:$0xff] %vm33_vm0, %v1171_v59 }
 0x1b5   :  { %v950_v62 = vld [vmem:[#allocation2 + $0x58] sm:$0xff]  ;;  %v4357_v0 = vpop.f32.mrb[20].mxu0  ;;  %1209 = vrot.lane.b32.xlu0 %v1172_v58, %s4582_s24  ;;  %1084 = vrot.lane.b32.xlu1 %v1172_v58, %s4582_s24 }
 0x1b6   :  { %v949_v2 = vld [vmem:[#allocation2 + $0x50] sm:$0xff]  ;;  %v982_v3 = vmax.bf16 %v964_v60, %v950_v62  ;;  %v838_v4 = vadd.f32 %v4357_v0, %v4939_v63  ;;  %v829_v5 = vpop.f32.mrb[21].mxu0 }
 0x1b7   :  { %v981_v6 = vmax.bf16 %v963_v61, %v949_v2  ;;  %v830_v7 = vadd.f32 %v4939_v63, %v829_v5  ;;  %v4358_v9 = vpop.f32.mrb[22].mxu0  ;;  %v1309_v14 = vld [vmem:[#allocation3 + $0x70] sm:$0xff]  ;;  %v965_v25 = vmax.bf16 %v949_v2, %v5071_v56 }
 0x1b8   :  { %998 = vst.msk [vmem:[#allocation2 + $0x50] sm:$0xff] %vm33_vm0, %v982_v3  ;;  %v841_v10 = vadd.f32 %v4358_v9, %v4939_v63  ;;  %v832_v11 = vpop.f32.mrb[23].mxu0  ;;  %v1306_v12 = vld [vmem:[#allocation3 + $0x58] sm:$0xff]  ;;  %v898_v15 = vmax.f32 %v838_v4, 0.0 }
 0x1b9   :  { %997 = vst.msk [vmem:[#allocation2 + $0x48] sm:$0xff] %vm33_vm0, %v981_v6  ;;  %v833_v13 = vadd.f32 %v4939_v63, %v832_v11  ;;  %4380 = vmatmul.mubr.msk.bf16.gmra.mrb[36].mxu0 %vm33_vm0, %v1306_v12  ;;  %v896_v17 = vmax.f32 %v830_v7, 0.0 }
 0x1ba   :  { %v899_v16 = vmax.f32 %v841_v10, 0.0  ;;  %4383 = vmatprep.mubr.msk.bf16.mxu0 %vm33_vm0, %v1309_v14 }
 0x1bb   :  { %v897_v18 = vmax.f32 %v833_v13, 0.0 }
 0x1bc   :  { %v5095_v19 = vpack.c.bf16 %v899_v16, %v898_v15 }
 0x1bd   :  { %v918_v20 = vpack.c.bf16 %v897_v18, %v896_v17  ;;  %v4577_v17 = vld [vmem:[#allocation2 + $0x90] sm:$0xff] }
 0x1be   :  { %935 = vst.msk [vmem:[#allocation2 + $0x68] sm:$0xff] %vm33_vm0, %v5095_v19 }
 0x1bf   :  { %934 = vst.msk [vmem:[#allocation2 + $0x60] sm:$0xff] %vm33_vm0, %v918_v20  ;;  %v1174_v22 = vld [vmem:[#allocation2 + $0x50] sm:$0xff]  ;;  %v966_v24 = vmax.bf16 %v950_v62, %v918_v20 }
 0x1c0   :  { %v1173_v23 = vld [vmem:[#allocation2 + $0x48] sm:$0xff]  ;;  %1285 = vst.msk [vmem:[#allocation3 + $0xa0] sm:$0xff] %vm33_vm0, %v1174_v22  ;;  %1159 = vst.msk [vmem:[#allocation3 + $0xc8] sm:$0xff] %vm33_vm0, %v1174_v22 }
 0x1c1   :  { %1032 = vst.msk [vmem:[#allocation3 + $0xf0] sm:$0xff] %vm33_vm0, %v1174_v22  ;;  %1211 = vrot.lane.b32.xlu0 %v1173_v23, %s4582_s24  ;;  %1086 = vrot.lane.b32.xlu1 %v1173_v23, %s4582_s24  ;;  %1284 = vst.msk [vmem:[#allocation3 + $0x88] sm:$0xff] %vm33_vm0, %v1173_v23 }
 0x1c2   :  { %1158 = vst.msk [vmem:[#allocation3 + $0xb0] sm:$0xff] %vm33_vm0, %v1173_v23  ;;  %1031 = vst.msk [vmem:[#allocation3 + $0xd8] sm:$0xff] %vm33_vm0, %v1173_v23 }
 0x1c5   :  { %v952_v26 = vld [vmem:[#allocation2 + $0x68] sm:$0xff]  ;;  %v4361_v27 = vpop.f32.mrb[24].mxu0  ;;  %1213 = vrot.lane.b32.xlu0 %v1174_v22, %s4582_s24  ;;  %1088 = vrot.lane.b32.xlu1 %v1174_v22, %s4582_s24 }
 0x1c6   :  { %v951_v28 = vld [vmem:[#allocation2 + $0x60] sm:$0xff]  ;;  %v984_v29 = vmax.bf16 %v966_v24, %v952_v26  ;;  %v854_v30 = vadd.f32 %v4361_v27, %v4939_v63  ;;  %v845_v31 = vpop.f32.mrb[25].mxu0 }
 0x1c7   :  { %v983_v32 = vmax.bf16 %v965_v25, %v951_v28  ;;  %v846_v8 = vadd.f32 %v4939_v63, %v845_v31  ;;  %v4362_v33 = vpop.f32.mrb[26].mxu0  ;;  %v1315_v38 = vld [vmem:[#allocation3 + $0xa0] sm:$0xff]  ;;  %v967_v48 = vmax.bf16 %v951_v28, %v5095_v19  ;;  %v1278_v25 = vld [vmem:[#allocation2 + $0x98] sm:$0xff] }
 0x1c8   :  { %1000 = vst.msk [vmem:[#allocation2 + $0x60] sm:$0xff] %vm33_vm0, %v984_v29  ;;  %v857_v34 = vadd.f32 %v4362_v33, %v4939_v63  ;;  %v848_v35 = vpop.f32.mrb[27].mxu0  ;;  %v1312_v36 = vld [vmem:[#allocation3 + $0x88] sm:$0xff]  ;;  %v902_v39 = vmax.f32 %v854_v30, 0.0  ;;  %1294 = vst.msk [vmem:[#allocation3 + $0x178] sm:$0xff] %vm33_vm0, %v1278_v25  ;;  %v1339_v28 = vld [vmem:[#allocation3 + $0x160] sm:$0xff] }
 0x1c9   :  { %999 = vst.msk [vmem:[#allocation2 + $0x58] sm:$0xff] %vm33_vm0, %v983_v32  ;;  %v849_v37 = vadd.f32 %v4939_v63, %v848_v35  ;;  %4384 = vmatmul.mubr.msk.bf16.gmra.mrb[40].mxu0 %vm33_vm0, %v1312_v36  ;;  %v900_v41 = vmax.f32 %v846_v8, 0.0  ;;  %2296 = vst.msk [vmem:[#allocation3 + $0x160] sm:$0xff] %vm33_vm0, %v5020_v1 }
 0x1ca   :  { %v903_v40 = vmax.f32 %v857_v34, 0.0  ;;  %4387 = vmatprep.mubr.msk.bf16.mxu0 %vm33_vm0, %v1315_v38 }
 0x1cb   :  { %v901_v42 = vmax.f32 %v849_v37, 0.0 }
 0x1cc   :  { %v5119_v43 = vpack.c.bf16 %v903_v40, %v902_v39 }
 0x1cd   :  { %v920_v44 = vpack.c.bf16 %v901_v42, %v900_v41 }
 0x1ce   :  { %937 = vst.msk [vmem:[#allocation2 + $0x78] sm:$0xff] %vm33_vm0, %v5119_v43 }
 0x1cf   :  { %936 = vst.msk [vmem:[#allocation2 + $0x70] sm:$0xff] %vm33_vm0, %v920_v44  ;;  %v1176_v45 = vld [vmem:[#allocation2 + $0x60] sm:$0xff]  ;;  %v968_v47 = vmax.bf16 %v952_v26, %v920_v44  ;;  %v1342_v29 = vld [vmem:[#allocation3 + $0x178] sm:$0xff] }
 0x1d0   :  { %v1175_v46 = vld [vmem:[#allocation2 + $0x58] sm:$0xff]  ;;  %1287 = vst.msk [vmem:[#allocation3 + $0xd0] sm:$0xff] %vm33_vm0, %v1176_v45  ;;  %1161 = vst.msk [vmem:[#allocation3 + $0xf8] sm:$0xff] %vm33_vm0, %v1176_v45 }
 0x1d1   :  { %1034 = vst.msk [vmem:[#allocation3 + $0x120] sm:$0xff] %vm33_vm0, %v1176_v45  ;;  %1215 = vrot.lane.b32.xlu0 %v1175_v46, %s4582_s24  ;;  %1090 = vrot.lane.b32.xlu1 %v1175_v46, %s4582_s24  ;;  %1286 = vst.msk [vmem:[#allocation3 + $0xb8] sm:$0xff] %vm33_vm0, %v1175_v46 }
 0x1d2   :  { %1160 = vst.msk [vmem:[#allocation3 + $0xe0] sm:$0xff] %vm33_vm0, %v1175_v46  ;;  %1033 = vst.msk [vmem:[#allocation3 + $0x108] sm:$0xff] %vm33_vm0, %v1175_v46 }
 0x1d3   :  { %2297 = vst.msk [vmem:[#allocation3 + $0x178] sm:$0xff] %vm33_vm0, %v1278_v25 }
 0x1d5   :  { %v954_v49 = vld [vmem:[#allocation2 + $0x78] sm:$0xff]  ;;  %v4365_v50 = vpop.f32.mrb[28].mxu0  ;;  %1217 = vrot.lane.b32.xlu0 %v1176_v45, %s4582_s24  ;;  %1092 = vrot.lane.b32.xlu1 %v1176_v45, %s4582_s24 }
 0x1d6   :  { %v953_v51 = vld [vmem:[#allocation2 + $0x70] sm:$0xff]  ;;  %v986_v52 = vmax.bf16 %v968_v47, %v954_v49  ;;  %v870_v53 = vadd.f32 %v4365_v50, %v4939_v63  ;;  %v861_v54 = vpop.f32.mrb[29].mxu0 }
 0x1d7   :  { %v985_v55 = vmax.bf16 %v967_v48, %v953_v51  ;;  %v862_v56 = vadd.f32 %v4939_v63, %v861_v54  ;;  %v4366_v57 = vpop.f32.mrb[30].mxu0  ;;  %v1321_v62 = vld [vmem:[#allocation3 + $0xd0] sm:$0xff]  ;;  %v969_v10 = vmax.bf16 %v953_v51, %v5119_v43 }
 0x1d8   :  { %1002 = vst.msk [vmem:[#allocation2 + $0x70] sm:$0xff] %vm33_vm0, %v986_v52  ;;  %v873_v58 = vadd.f32 %v4366_v57, %v4939_v63  ;;  %v864_v59 = vpop.f32.mrb[31].mxu0  ;;  %v1318_v60 = vld [vmem:[#allocation3 + $0xb8] sm:$0xff]  ;;  %v906_v0 = vmax.f32 %v870_v53, 0.0 }
 0x1d9   :  { %1001 = vst.msk [vmem:[#allocation2 + $0x68] sm:$0xff] %vm33_vm0, %v985_v55  ;;  %v865_v61 = vadd.f32 %v4939_v63, %v864_v59  ;;  %4388 = vmatmul.mubr.msk.bf16.gmra.mrb[44].mxu0 %vm33_vm0, %v1318_v60  ;;  %v904_v3 = vmax.f32 %v862_v56, 0.0 }
 0x1da   :  { %v907_v2 = vmax.f32 %v873_v58, 0.0  ;;  %4391 = vmatprep.mubr.msk.bf16.mxu0 %vm33_vm0, %v1321_v62 }
 0x1db   :  { %v905_v4 = vmax.f32 %v865_v61, 0.0 }
 0x1dc   :  { %v923_v5 = vpack.c.bf16 %v907_v2, %v906_v0 }
 0x1dd   :  { %v922_v6 = vpack.c.bf16 %v905_v4, %v904_v3 }
 0x1de   :  { %939 = vst.msk [vmem:[#allocation2 + $0x88] sm:$0xff] %vm33_vm0, %v923_v5 }
 0x1df   :  { %938 = vst.msk [vmem:[#allocation2 + $0x80] sm:$0xff] %vm33_vm0, %v922_v6  ;;  %v1178_v7 = vld [vmem:[#allocation2 + $0x70] sm:$0xff]  ;;  %v970_v63 = vmax.bf16 %v954_v49, %v922_v6 }
 0x1e0   :  { %v1177_v9 = vld [vmem:[#allocation2 + $0x68] sm:$0xff]  ;;  %1289 = vst.msk [vmem:[#allocation3 + $0x100] sm:$0xff] %vm33_vm0, %v1178_v7  ;;  %1163 = vst.msk [vmem:[#allocation3 + $0x128] sm:$0xff] %vm33_vm0, %v1178_v7 }
 0x1e1   :  { %1036 = vst.msk [vmem:[#allocation3 + $0x150] sm:$0xff] %vm33_vm0, %v1178_v7  ;;  %1219 = vrot.lane.b32.xlu0 %v1177_v9, %s4582_s24  ;;  %1094 = vrot.lane.b32.xlu1 %v1177_v9, %s4582_s24  ;;  %1288 = vst.msk [vmem:[#allocation3 + $0xe8] sm:$0xff] %vm33_vm0, %v1177_v9 }
 0x1e2   :  { %1162 = vst.msk [vmem:[#allocation3 + $0x110] sm:$0xff] %vm33_vm0, %v1177_v9  ;;  %1035 = vst.msk [vmem:[#allocation3 + $0x138] sm:$0xff] %vm33_vm0, %v1177_v9 }
 0x1e5   :  { %v972_v11 = vld [vmem:[#allocation2 + $0x88] sm:$0xff]  ;;  %1221 = vrot.lane.b32.xlu0 %v1178_v7, %s4582_s24  ;;  %1096 = vrot.lane.b32.xlu1 %v1178_v7, %s4582_s24 }
 0x1e6   :  { %v955_v12 = vld [vmem:[#allocation2 + $0x80] sm:$0xff]  ;;  %v988_v13 = vmax.bf16 %v972_v11, %v970_v63 }
 0x1e7   :  { %v971_v14 = vmax.bf16 %v955_v12, %v923_v5  ;;  %v987_v15 = vmax.bf16 %v969_v10, %v955_v12  ;;  %v1327_v19 = vld [vmem:[#allocation3 + $0x100] sm:$0xff] }
 0x1e8   :  { %1004 = vst.msk [vmem:[#allocation2 + $0x80] sm:$0xff] %vm33_vm0, %v988_v13  ;;  %v1324_v16 = vld [vmem:[#allocation3 + $0xe8] sm:$0xff] }
 0x1e9   :  { %v989_v18 = vmax.bf16 %v4577_v17, %v971_v14  ;;  %1003 = vst.msk [vmem:[#allocation2 + $0x78] sm:$0xff] %vm33_vm0, %v987_v15  ;;  %4392 = vmatmul.mubr.msk.bf16.gmra.mrb[48].mxu0 %vm33_vm0, %v1324_v16 }
 0x1ea   :  { %4395 = vmatprep.mubr.msk.bf16.mxu0 %vm33_vm0, %v1327_v19 }
 0x1eb   :  { %1005 = vst.msk [vmem:[#allocation2 + $0x88] sm:$0xff] %vm33_vm0, %v989_v18 }
 0x1ef   :  { %v1180_v20 = vld [vmem:[#allocation2 + $0x80] sm:$0xff] }
 0x1f0   :  { %v1179_v22 = vld [vmem:[#allocation2 + $0x78] sm:$0xff]  ;;  %1291 = vst.msk [vmem:[#allocation3 + $0x130] sm:$0xff] %vm33_vm0, %v1180_v20  ;;  %1165 = vst.msk [vmem:[#allocation3 + $0x158] sm:$0xff] %vm33_vm0, %v1180_v20 }
 0x1f1   :  { %1223 = vrot.lane.b32.xlu0 %v1179_v22, %s4582_s24  ;;  %1098 = vrot.lane.b32.xlu1 %v1179_v22, %s4582_s24  ;;  %1290 = vst.msk [vmem:[#allocation3 + $0x118] sm:$0xff] %vm33_vm0, %v1179_v22  ;;  %1164 = vst.msk [vmem:[#allocation3 + $0x140] sm:$0xff] %vm33_vm0, %v1179_v22 }
 0x1f2   :  { %1037 = vst.msk [vmem:[#allocation3 + $0x168] sm:$0xff] %vm33_vm0, %v1179_v22  ;;  %v1073_v23 = vpop.permute.xlu1 %1072  ;;  %v1181_v24 = vld [vmem:[#allocation2 + $0x88] sm:$0xff] }
 0x1f3   :  { %1120 = vst.msk [vmem:[#allocation3 + $0x18] sm:$0xff] %vm1118_vm7, %v1073_v23 }
 0x1f4   :  { %1292 = vst.msk [vmem:[#allocation3 + $0x148] sm:$0xff] %vm33_vm0, %v1181_v24  ;;  %1166 = vst.msk [vmem:[#allocation3 + $0x170] sm:$0xff] %vm33_vm0, %v1181_v24 }
 0x1f5   :  { %1225 = vrot.lane.b32.xlu0 %v1180_v20, %s4582_s24  ;;  %1100 = vrot.lane.b32.xlu1 %v1180_v20, %s4582_s24 }
 0x1f7   :  { %v1333_v27 = vld [vmem:[#allocation3 + $0x130] sm:$0xff] }
 0x1f8   :  { %v1330_v26 = vld [vmem:[#allocation3 + $0x118] sm:$0xff] }
 0x1f9   :  { %4396 = vmatmul.mubr.msk.bf16.gmra.mrb[52].mxu0 %vm33_vm0, %v1330_v26  ;;  %1227 = vrot.lane.b32.xlu0 %v1181_v24, %s4582_s24 }
 0x1fa   :  { %4399 = vmatprep.mubr.msk.bf16.mxu0 %vm33_vm0, %v1333_v27  ;;  %2074 = vrot.lane.b32.xlu1 %v4964_v21, %s4582_s24  ;;  %v1298_v38 = vld [vmem:[#allocation3 + $0x18] sm:$0xff] }
 0x1fb   :  { %v1336_v30 = vld [vmem:[#allocation3 + $0x148] sm:$0xff] }
 0x1fd   :  { %1229 = vrot.lane.b32.xlu0 %v5020_v1, %s4582_s24  ;;  %v1295_v1 = vld [vmem:[#allocation3] sm:$0xff] }
 0x201   :  { %4400 = vmatmul.mubr.msk.bf16.gmra.mrb[56].mxu0 %vm33_vm0, %v1336_v30 }
 0x202   :  { %4403 = vmatprep.mubr.msk.bf16.mxu0 %vm33_vm0, %v1339_v28 }
 0x203   :  { %v1200_v31 = vpop.permute.xlu0 %1199  ;;  %v1075_v32 = vpop.permute.xlu1 %1074 }
 0x204   :  { %1247 = vst.msk [vmem:[#allocation3 + $0x8] sm:$0xff] %vm1118_vm7, %v1200_v31  ;;  %1121 = vst.msk [vmem:[#allocation3 + $0x30] sm:$0xff] %vm1118_vm7, %v1075_v32 }
 0x207   :  { %v1202_v8 = vpop.permute.xlu0 %1201  ;;  %v1077_v33 = vpop.permute.xlu1 %1076 }
 0x208   :  { %1248 = vst.msk [vmem:[#allocation3 + $0x20] sm:$0xff] %vm1118_vm7, %v1202_v8  ;;  %1122 = vst.msk [vmem:[#allocation3 + $0x48] sm:$0xff] %vm1118_vm7, %v1077_v33 }
 0x209   :  { %4404 = vmatmul.mubr.msk.bf16.gmra.mrb[60].mxu0 %vm33_vm0, %v1342_v29 }
 0x20b   :  { %v1296_v34 = vld [vmem:[#allocation3 + $0x8] sm:$0xff]  ;;  %v1301_v42 = vld [vmem:[#allocation3 + $0x30] sm:$0xff] }
 0x20c   :  { %1590 = vmatprep.mubr.bf16.mxu1 %v1296_v34 }
 0x20d   :  { %1591 = vmatmul.mubr.bf16.vlgmr.msra.gmra.mrb[0].mxu1 %v1295_v1 }
 0x20f   :  { %v1299_v35 = vld [vmem:[#allocation3 + $0x20] sm:$0xff]  ;;  %v1304_v46 = vld [vmem:[#allocation3 + $0x48] sm:$0xff] }
 0x210   :  { %1598 = vmatprep.mubr.bf16.mxu1 %v1299_v35 }
 0x213   :  { %v1204_v36 = vpop.permute.xlu0 %1203  ;;  %v1079_v37 = vpop.permute.xlu1 %1078 }
 0x214   :  { %1249 = vst.msk [vmem:[#allocation3 + $0x38] sm:$0xff] %vm1118_vm7, %v1204_v36  ;;  %1123 = vst.msk [vmem:[#allocation3 + $0x60] sm:$0xff] %vm1118_vm7, %v1079_v37  ;;  %v4493_v36 = vld [vmem:[%s5948_s5 + $0x80] sm:$0xff]   ;;  %v4494_v37 = vld [vmem:[%s5948_s5 + $0x88] sm:$0xff]  }
 0x215   :  { %1599 = vmatmul.mubr.bf16.gmra.mrb[4].mxu1 %v1298_v38  ;;  %4407 = vmatprep.subr.bf16.mxu1 %v4493_v36 }
 0x216   :  { %4408 = vmatpush3.bf16.msra.mxu1 %v4493_v36  ;;  %v4501_v36 = vld [vmem:[%s5948_s5 + $0x50] sm:$0xff]  }
 0x217   :  { %v1206_v39 = vpop.permute.xlu0 %1205  ;;  %v1081_v40 = vpop.permute.xlu1 %1080  ;;  %4409 = vmatprep.subr.bf16.mxu1 %v4494_v37 }
 0x218   :  { %1250 = vst.msk [vmem:[#allocation3 + $0x50] sm:$0xff] %vm1118_vm7, %v1206_v39  ;;  %1124 = vst.msk [vmem:[#allocation3 + $0x78] sm:$0xff] %vm1118_vm7, %v1081_v40 }
 0x21a   :  { %4410 = vmatpush3.bf16.msra.mxu1 %v4494_v37  ;;  %v4502_v37 = vld [vmem:[%s5948_s5 + $0x10] sm:$0xff]  }
 0x21b   :  { %v1302_v41 = vld [vmem:[#allocation3 + $0x38] sm:$0xff]  ;;  %v1307_v50 = vld [vmem:[#allocation3 + $0x60] sm:$0xff] }
 0x21c   :  { %1606 = vmatprep.mubr.bf16.mxu1 %v1302_v41  ;;  %v4495_v41 = vld [vmem:[%s5948_s5 + $0x90] sm:$0xff]  }
 0x21d   :  { %1607 = vmatmul.mubr.bf16.gmra.mrb[8].mxu1 %v1301_v42  ;;  %4411 = vmatprep.subr.bf16.mxu1 %v4495_v41 }
 0x21e   :  { %4412 = vmatpush3.bf16.msra.mxu1 %v4495_v41  ;;  %v4503_v41 = vld [vmem:[%s5948_s5 + $0x58] sm:$0xff]  }
 0x21f   :  { %v1305_v43 = vld [vmem:[#allocation3 + $0x50] sm:$0xff]  ;;  %v1310_v54 = vld [vmem:[#allocation3 + $0x78] sm:$0xff] }
 0x220   :  { %1614 = vmatprep.mubr.bf16.mxu1 %v1305_v43  ;;  %v4496_v43 = vld [vmem:[%s5948_s5 + $0x98] sm:$0xff]  }
 0x221   :  { %4413 = vmatprep.subr.bf16.mxu1 %v4496_v43 }
 0x222   :  { %4414 = vmatpush3.bf16.msra.mxu1 %v4496_v43 }
 0x223   :  { %v1208_v44 = vpop.permute.xlu0 %1207  ;;  %v1083_v45 = vpop.permute.xlu1 %1082 }
 0x224   :  { %1251 = vst.msk [vmem:[#allocation3 + $0x68] sm:$0xff] %vm1118_vm7, %v1208_v44  ;;  %1125 = vst.msk [vmem:[#allocation3 + $0x90] sm:$0xff] %vm1118_vm7, %v1083_v45 }
 0x225   :  { %1615 = vmatmul.mubr.bf16.gmra.mrb[12].mxu1 %v1304_v46 }
 0x227   :  { %v1210_v47 = vpop.permute.xlu0 %1209  ;;  %v1085_v48 = vpop.permute.xlu1 %1084 }
 0x228   :  { %1252 = vst.msk [vmem:[#allocation3 + $0x80] sm:$0xff] %vm1118_vm7, %v1210_v47  ;;  %1126 = vst.msk [vmem:[#allocation3 + $0xa8] sm:$0xff] %vm1118_vm7, %v1085_v48 }
 0x22b   :  { %v1308_v49 = vld [vmem:[#allocation3 + $0x68] sm:$0xff]  ;;  %v1313_v58 = vld [vmem:[#allocation3 + $0x90] sm:$0xff] }
 0x22c   :  { %1622 = vmatprep.mubr.bf16.mxu1 %v1308_v49 }
 0x22d   :  { %1623 = vmatmul.mubr.bf16.gmra.mrb[16].mxu1 %v1307_v50 }
 0x22f   :  { %v1311_v51 = vld [vmem:[#allocation3 + $0x80] sm:$0xff]  ;;  %v1316_v62 = vld [vmem:[#allocation3 + $0xa8] sm:$0xff] }
 0x230   :  { %1630 = vmatprep.mubr.bf16.mxu1 %v1311_v51 }
 0x233   :  { %v1212_v52 = vpop.permute.xlu0 %1211  ;;  %v1087_v53 = vpop.permute.xlu1 %1086 }
 0x234   :  { %1253 = vst.msk [vmem:[#allocation3 + $0x98] sm:$0xff] %vm1118_vm7, %v1212_v52  ;;  %1127 = vst.msk [vmem:[#allocation3 + $0xc0] sm:$0xff] %vm1118_vm7, %v1087_v53 }
 0x235   :  { %1631 = vmatmul.mubr.bf16.gmra.mrb[20].mxu1 %v1310_v54 }
 0x237   :  { %v1214_v55 = vpop.permute.xlu0 %1213  ;;  %v1089_v56 = vpop.permute.xlu1 %1088 }
 0x238   :  { %1254 = vst.msk [vmem:[#allocation3 + $0xb0] sm:$0xff] %vm1118_vm7, %v1214_v55  ;;  %1128 = vst.msk [vmem:[#allocation3 + $0xd8] sm:$0xff] %vm1118_vm7, %v1089_v56 }
 0x23b   :  { %v1314_v57 = vld [vmem:[#allocation3 + $0x98] sm:$0xff]  ;;  %v1319_v4 = vld [vmem:[#allocation3 + $0xc0] sm:$0xff] }
 0x23c   :  { %1638 = vmatprep.mubr.bf16.mxu1 %v1314_v57 }
 0x23d   :  { %1639 = vmatmul.mubr.bf16.gmra.mrb[24].mxu1 %v1313_v58 }
 0x23f   :  { %v1317_v59 = vld [vmem:[#allocation3 + $0xb0] sm:$0xff]  ;;  %v1322_v9 = vld [vmem:[#allocation3 + $0xd8] sm:$0xff] }
 0x240   :  { %1646 = vmatprep.mubr.bf16.mxu1 %v1317_v59 }
 0x243   :  { %v1216_v60 = vpop.permute.xlu0 %1215  ;;  %v1091_v61 = vpop.permute.xlu1 %1090 }
 0x244   :  { %1255 = vst.msk [vmem:[#allocation3 + $0xc8] sm:$0xff] %vm1118_vm7, %v1216_v60  ;;  %1129 = vst.msk [vmem:[#allocation3 + $0xf0] sm:$0xff] %vm1118_vm7, %v1091_v61  ;;  %v4497_v60 = vld [vmem:[%s5948_s5 + $0x40] sm:$0xff]  }
 0x245   :  { %1647 = vmatmul.mubr.bf16.gmra.mrb[28].mxu1 %v1316_v62  ;;  %v4498_v61 = vld [vmem:[%s5948_s5] sm:$0xff]   ;;  %v4499_v62 = vld [vmem:[%s5948_s5 + $0x48] sm:$0xff]   ;;  %4105 = vmatprep.subr.bf16.mxu0 %v4497_v60 }
 0x246   :  { %4106 = vmatpush3.bf16.msra.mxu0 %v4498_v61 }
 0x247   :  { %v1218_v0 = vpop.permute.xlu0 %1217  ;;  %v1093_v2 = vpop.permute.xlu1 %1092  ;;  %4107 = vmatprep.subr.bf16.mxu0 %v4499_v62 }
 0x248   :  { %1256 = vst.msk [vmem:[#allocation3 + $0xe0] sm:$0xff] %vm1118_vm7, %v1218_v0  ;;  %1130 = vst.msk [vmem:[#allocation3 + $0x108] sm:$0xff] %vm1118_vm7, %v1093_v2 }
 0x24b   :  { %v1320_v3 = vld [vmem:[#allocation3 + $0xc8] sm:$0xff]  ;;  %v1325_v12 = vld [vmem:[#allocation3 + $0xf0] sm:$0xff] }
 0x24c   :  { %1654 = vmatprep.mubr.bf16.mxu1 %v1320_v3 }
 0x24d   :  { %1655 = vmatmul.mubr.bf16.gmra.mrb[32].mxu1 %v1319_v4 }
 0x24f   :  { %v1323_v5 = vld [vmem:[#allocation3 + $0xe0] sm:$0xff]  ;;  %v1328_v16 = vld [vmem:[#allocation3 + $0x108] sm:$0xff] }
 0x250   :  { %1662 = vmatprep.mubr.bf16.mxu1 %v1323_v5 }
 0x253   :  { %v1220_v6 = vpop.permute.xlu0 %1219  ;;  %v1095_v7 = vpop.permute.xlu1 %1094 }
 0x254   :  { %1257 = vst.msk [vmem:[#allocation3 + $0xf8] sm:$0xff] %vm1118_vm7, %v1220_v6  ;;  %1131 = vst.msk [vmem:[#allocation3 + $0x120] sm:$0xff] %vm1118_vm7, %v1095_v7  ;;  %v5301_v6 = vld [vmem:[%s5949_s4] ss:$0 sm:$0xff] }
 0x255   :  { %1663 = vmatmul.mubr.bf16.gmra.mrb[36].mxu1 %v1322_v9 }
 0x257   :  { %v1222_v63 = vpop.permute.xlu0 %1221  ;;  %v1097_v10 = vpop.permute.xlu1 %1096 }
 0x258   :  { %1258 = vst.msk [vmem:[#allocation3 + $0x110] sm:$0xff] %vm1118_vm7, %v1222_v63  ;;  %1132 = vst.msk [vmem:[#allocation3 + $0x138] sm:$0xff] %vm1118_vm7, %v1097_v10 }
 0x25b   :  { %v1326_v11 = vld [vmem:[#allocation3 + $0xf8] sm:$0xff]  ;;  %v1331_v22 = vld [vmem:[#allocation3 + $0x120] sm:$0xff] }
 0x25c   :  { %1670 = vmatprep.mubr.bf16.mxu1 %v1326_v11 }
 0x25d   :  { %1671 = vmatmul.mubr.bf16.gmra.mrb[40].mxu1 %v1325_v12 }
 0x25f   :  { %v1329_v13 = vld [vmem:[#allocation3 + $0x110] sm:$0xff]  ;;  %v1334_v25 = vld [vmem:[#allocation3 + $0x138] sm:$0xff] }
 0x260   :  { %1678 = vmatprep.mubr.bf16.mxu1 %v1329_v13 }
 0x263   :  { %v1224_v14 = vpop.permute.xlu0 %1223  ;;  %v1099_v15 = vpop.permute.xlu1 %1098 }
 0x264   :  { %1259 = vst.msk [vmem:[#allocation3 + $0x128] sm:$0xff] %vm1118_vm7, %v1224_v14  ;;  %1133 = vst.msk [vmem:[#allocation3 + $0x150] sm:$0xff] %vm1118_vm7, %v1099_v15 }
 0x265   :  { %1679 = vmatmul.mubr.bf16.gmra.mrb[44].mxu1 %v1328_v16 }
 0x267   :  { %v1226_v17 = vpop.permute.xlu0 %1225  ;;  %v1101_v18 = vpop.permute.xlu1 %1100 }
 0x268   :  { %1260 = vst.msk [vmem:[#allocation3 + $0x140] sm:$0xff] %vm1118_vm7, %v1226_v17  ;;  %1134 = vst.msk [vmem:[#allocation3 + $0x168] sm:$0xff] %vm1118_vm7, %v1101_v18  ;;  %v4500_v17 = vld [vmem:[%s5948_s5 + $0x8] sm:$0xff]  }
 0x269   :  { %4108 = vmatpush3.bf16.msra.mxu0 %v4500_v17 }
 0x26a   :  { %4109 = vmatprep.subr.bf16.mxu0 %v4501_v36 }
 0x26b   :  { %v1228_v19 = vpop.permute.xlu0 %1227  ;;  %v1332_v20 = vld [vmem:[#allocation3 + $0x128] sm:$0xff]  ;;  %v1337_v29 = vld [vmem:[#allocation3 + $0x150] sm:$0xff] }
 0x26c   :  { %1261 = vst.msk [vmem:[#allocation3 + $0x158] sm:$0xff] %vm1118_vm7, %v1228_v19  ;;  %1686 = vmatprep.mubr.bf16.mxu1 %v1332_v20 }
 0x26d   :  { %1687 = vmatmul.mubr.bf16.gmra.mrb[48].mxu1 %v1331_v22  ;;  %4110 = vmatpush3.bf16.msra.mxu0 %v4502_v37 }
 0x26e   :  { %4111 = vmatprep.subr.bf16.mxu0 %v4503_v41 }
 0x26f   :  { %v1335_v23 = vld [vmem:[#allocation3 + $0x140] sm:$0xff]  ;;  %v1230_v24 = vpop.permute.xlu0 %1229  ;;  %v1340_v8 = vld [vmem:[#allocation3 + $0x168] sm:$0xff] }
 0x270   :  { %1694 = vmatprep.mubr.bf16.mxu1 %v1335_v23  ;;  %1262 = vst.msk [vmem:[#allocation3 + $0x170] sm:$0xff] %vm1118_vm7, %v1230_v24 }
 0x273   :  { %v1338_v26 = vld [vmem:[#allocation3 + $0x158] sm:$0xff] }
 0x275   :  { %1695 = vmatmul.mubr.bf16.gmra.mrb[52].mxu1 %v1334_v25 }
 0x276   :  { %1702 = vmatprep.mubr.bf16.mxu1 %v1338_v26 }
 0x277   :  { %v1341_v27 = vld [vmem:[#allocation3 + $0x170] sm:$0xff] }
 0x27c   :  { %v5217_v28 = vpop.f32.mrb[32].mxu0 }
 0x27d   :  { %1703 = vmatmul.mubr.bf16.gmra.mrb[56].mxu1 %v1337_v29  ;;  %v1753_v30 = vpop.f32.mrb[33].mxu0 }
 0x27e   :  { %v5219_v31 = vpop.f32.mrb[34].mxu0  ;;  %1710 = vmatprep.mubr.bf16.mxu1 %v1341_v27 }
 0x27f   :  { %v1756_v32 = vpop.f32.mrb[35].mxu0 }
 0x285   :  { %1711 = vmatmul.mubr.bf16.gmra.mrb[60].mxu1 %v1340_v8 }
 0x28c   :  { %v5221_v33 = vpop.f32.mrb[36].mxu0 }
 0x28d   :  { %v5223_v1 = vpop.f32.mrb[37].mxu0 }
 0x28e   :  { %v5225_v34 = vpop.f32.mrb[38].mxu0 }
 0x28f   :  { %v5227_v35 = vpop.f32.mrb[39].mxu0 }
 0x29c   :  { %v5235_v38 = vpop.f32.mrb[40].mxu0 }
 0x29d   :  { %v5237_v39 = vpop.f32.mrb[41].mxu0 }
 0x29e   :  { %v5239_v40 = vpop.f32.mrb[42].mxu0 }
 0x29f   :  { %v5244_v42 = vpop.f32.mrb[43].mxu0 }
 0x2ac   :  { %v5249_v44 = vpop.f32.mrb[44].mxu0 }
 0x2ad   :  { %v5251_v45 = vpop.f32.mrb[45].mxu0 }
 0x2ae   :  { %v5253_v46 = vpop.f32.mrb[46].mxu0 }
 0x2af   :  { %v5255_v47 = vpop.f32.mrb[47].mxu0 }
 0x2bc   :  { %v5257_v48 = vpop.f32.mrb[48].mxu0 }
 0x2bd   :  { %v5259_v49 = vpop.f32.mrb[49].mxu0 }
 0x2be   :  { %v5261_v50 = vpop.f32.mrb[50].mxu0 }
 0x2bf   :  { %v5263_v51 = vpop.f32.mrb[51].mxu0 }
 0x2cc   :  { %v5265_v52 = vpop.f32.mrb[52].mxu0 }
 0x2cd   :  { %v5267_v53 = vpop.f32.mrb[53].mxu0 }
 0x2ce   :  { %v5269_v54 = vpop.f32.mrb[54].mxu0 }
 0x2cf   :  { %v5271_v55 = vpop.f32.mrb[55].mxu0 }
 0x2d4   :  { %v5273_v56 = vpop.f32.mrb[56].mxu0 }
 0x2d5   :  { %v5275_v57 = vpop.f32.mrb[57].mxu0 }
 0x2d6   :  { %v5277_v58 = vpop.f32.mrb[58].mxu0 }
 0x2d7   :  { %v5279_v59 = vpop.f32.mrb[59].mxu0 }
 0x2dc   :  { %v5290_v0 = vpop.f32.mrb[60].mxu0 }
 0x2dd   :  { %v5292_v2 = vpop.f32.mrb[61].mxu0 }
 0x2de   :  { %v5294_v3 = vpop.f32.mrb[62].mxu0 }
 0x2df   :  { %v5296_v4 = vpop.f32.mrb[63].mxu0 }
 0x2e0   :  { %v3989_v5 = vpop.f32.mrb[0].mxu1 }
 0x2e1   :  { %v3990_v7 = vpop.f32.mrb[1].mxu1 }
 0x2e2   :  { %v3991_v9 = vadd.f32 %v3990_v7, %v3989_v5  ;;  %v3992_v63 = vpop.f32.mrb[2].mxu1  ;;  %v4504_v7 = vld [vmem:[%s5948_s5 + $0x18] sm:$0xff]  }
 0x2e3   :  { %v3993_v10 = vpop.f32.mrb[3].mxu1  ;;  %4112 = vmatpush3.bf16.msra.mxu0 %v4504_v7 }
 0x2e4   :  { %v1593_v11 = vadd.f32 %v3991_v9, %v5301_v6  ;;  %v3994_v12 = vadd.f32 %v3993_v10, %v3992_v63  ;;  %v2075_v9 = vpop.permute.xlu1 %2074 }
 0x2e6   :  { %v1754_v13 = vadd.f32 %v1753_v30, %v1593_v11  ;;  %v1596_v14 = vadd.f32 %v3994_v12, %v5301_v6  ;;  %v4505_v12 = vld [vmem:[%s5948_s5 + $0x60] sm:$0xff]  }
 0x2e7   :  { %4113 = vmatprep.subr.bf16.mxu0 %v4505_v12 }
 0x2e8   :  { %v1757_v15 = vadd.f32 %v1756_v32, %v1596_v14  ;;  %v3995_v16 = vpop.f32.mrb[4].mxu1  ;;  %v1880_v19 = vmax.f32 %v1754_v13, 0.0 }
 0x2e9   :  { %v3996_v18 = vpop.f32.mrb[5].mxu1 }
 0x2ea   :  { %v1881_v20 = vmax.f32 %v1757_v15, 0.0  ;;  %v3997_v22 = vadd.f32 %v3996_v18, %v3995_v16  ;;  %v3998_v23 = vpop.f32.mrb[6].mxu1  ;;  %v4506_v15 = vld [vmem:[%s5948_s5 + $0x20] sm:$0xff]   ;;  %v4507_v18 = vld [vmem:[%s5948_s5 + $0x68] sm:$0xff]  }
 0x2eb   :  { %v3999_v24 = vpop.f32.mrb[7].mxu1  ;;  %4114 = vmatpush3.bf16.msra.mxu0 %v4506_v15 }
 0x2ec   :  { %v1912_v25 = vpack.c.bf16 %v1881_v20, %v1880_v19  ;;  %v1601_v26 = vadd.f32 %v3997_v22, %v5301_v6  ;;  %v4000_v27 = vadd.f32 %v3999_v24, %v3998_v23  ;;  %v5341_v20 = vld [vmem:[#allocation2 + $0x8] sm:$0xff]  ;;  %4115 = vmatprep.subr.bf16.mxu0 %v4507_v18 }
 0x2ed   :  { %2027 = vst.msk [vmem:[#allocation3 + $0x18] sm:$0xff] %vm33_vm0, %v5341_v20 }
 0x2ee   :  { %1928 = vst.msk [vmem:[#allocation2 + $0x10] sm:$0xff] %vm33_vm0, %v1912_v25  ;;  %v1762_v29 = vadd.f32 %v5217_v28, %v1601_v26  ;;  %v1604_v30 = vadd.f32 %v4000_v27, %v5301_v6  ;;  %v1960_v27 = vmax.bf16 %v1912_v25, %v4964_v21  ;;  %v4510_v21 = vld [vmem:[%s5948_s5 + $0x30] sm:$0xff]  }
 0x2f0   :  { %v1765_v32 = vadd.f32 %v5219_v31, %v1604_v30  ;;  %v4001_v8 = vpop.f32.mrb[8].mxu1  ;;  %v1882_v60 = vmax.f32 %v1762_v29, 0.0  ;;  %v2010_v31 = vld [vmem:[#allocation2] sm:$0xff] }
 0x2f1   :  { %v4002_v43 = vpop.f32.mrb[9].mxu1  ;;  %2026 = vst.msk [vmem:[#allocation3] sm:$0xff] %vm33_vm0, %v2010_v31 }
 0x2f2   :  { %v1883_v28 = vmax.f32 %v1765_v32, 0.0  ;;  %v4003_v61 = vadd.f32 %v4002_v43, %v4001_v8  ;;  %v4004_v62 = vpop.f32.mrb[10].mxu1  ;;  %2122 = vst.msk [vmem:[#allocation3] sm:$0xff] %vm1118_vm7, %v2075_v9  ;;  %v4509_v8 = vld [vmem:[%s5948_s5 + $0x70] sm:$0xff]   ;;  %v4511_v9 = vld [vmem:[%s5948_s5 + $0x78] sm:$0xff]  }
 0x2f3   :  { %v4005_v5 = vpop.f32.mrb[11].mxu1 }
 0x2f4   :  { %v1913_v63 = vpack.c.bf16 %v1883_v28, %v1882_v60  ;;  %v1609_v10 = vadd.f32 %v4003_v61, %v5301_v6  ;;  %v4006_v11 = vadd.f32 %v4005_v5, %v4004_v62 }
 0x2f5   :  { %v1945_v60 = vld [vmem:[#allocation2 + $0x10] sm:$0xff] }
 0x2f6   :  { %1929 = vst.msk [vmem:[#allocation2 + $0x18] sm:$0xff] %vm33_vm0, %v1913_v63  ;;  %v1770_v13 = vadd.f32 %v5223_v1, %v1609_v10  ;;  %v1612_v14 = vadd.f32 %v4006_v11, %v5301_v6  ;;  %v4512_v10 = vld [vmem:[%s5948_s5 + $0x38] sm:$0xff]   ;;  %v1961_v11 = vmax.bf16 %v1945_v60, %v1913_v63 }
 0x2f8   :  { %v1773_v16 = vadd.f32 %v5227_v35, %v1612_v14  ;;  %v4007_v17 = vpop.f32.mrb[12].mxu1  ;;  %v1884_v22 = vmax.f32 %v1770_v13, 0.0  ;;  %v4508_v35 = vld [vmem:[%s5948_s5 + $0x28] sm:$0xff]  }
 0x2f9   :  { %v4008_v19 = vpop.f32.mrb[13].mxu1  ;;  %4116 = vmatpush3.bf16.msra.mxu0 %v4508_v35 }
 0x2fa   :  { %v1885_v1 = vmax.f32 %v1773_v16, 0.0  ;;  %v4009_v23 = vadd.f32 %v4008_v19, %v4007_v17  ;;  %v4010_v24 = vpop.f32.mrb[14].mxu1  ;;  %4117 = vmatprep.subr.bf16.mxu0 %v4509_v8 }
 0x2fb   :  { %v4011_v26 = vpop.f32.mrb[15].mxu1 }
 0x2fc   :  { %v1914_v29 = vpack.c.bf16 %v1885_v1, %v1884_v22  ;;  %v1617_v30 = vadd.f32 %v4009_v23, %v5301_v6  ;;  %v4012_v32 = vadd.f32 %v4011_v26, %v4010_v24 }
 0x2fd   :  { %v1946_v36 = vld [vmem:[#allocation2 + $0x18] sm:$0xff]  ;;  %4118 = vmatpush3.bf16.msra.mxu0 %v4510_v21 }
 0x2fe   :  { %1930 = vst.msk [vmem:[#allocation2 + $0x20] sm:$0xff] %vm33_vm0, %v1914_v29  ;;  %v1978_v37 = vmax.bf16 %v1960_v27, %v1946_v36  ;;  %v1778_v41 = vadd.f32 %v5221_v33, %v1617_v30  ;;  %v1620_v43 = vadd.f32 %v4012_v32, %v5301_v6  ;;  %4119 = vmatprep.subr.bf16.mxu0 %v4511_v9 }
 0x2ff   :  { %v1962_v35 = vmax.bf16 %v1946_v36, %v1914_v29 }
 0x300   :  { %1994 = vst.msk [vmem:[#allocation2 + $0x10] sm:$0xff] %vm33_vm0, %v1978_v37  ;;  %v1781_v25 = vadd.f32 %v5225_v34, %v1620_v43  ;;  %v4013_v28 = vpop.f32.mrb[16].mxu1  ;;  %v1886_v62 = vmax.f32 %v1778_v41, 0.0 }
 0x301   :  { %v4014_v61 = vpop.f32.mrb[17].mxu1  ;;  %4120 = vmatpush3.bf16.msra.mxu0 %v4512_v10 }
 0x302   :  { %v1887_v31 = vmax.f32 %v1781_v25, 0.0  ;;  %v4015_v5 = vadd.f32 %v4014_v61, %v4013_v28  ;;  %v4016_v7 = vpop.f32.mrb[18].mxu1 }
 0x303   :  { %v4017_v33 = vpop.f32.mrb[19].mxu1 }
 0x304   :  { %v1915_v12 = vpack.c.bf16 %v1887_v31, %v1886_v62  ;;  %v1625_v34 = vadd.f32 %v4015_v5, %v5301_v6  ;;  %v4018_v13 = vadd.f32 %v4017_v33, %v4016_v7 }
 0x305   :  { %v1947_v14 = vld [vmem:[#allocation2 + $0x20] sm:$0xff] }
 0x306   :  { %1931 = vst.msk [vmem:[#allocation2 + $0x28] sm:$0xff] %vm33_vm0, %v1915_v12  ;;  %v1979_v15 = vmax.bf16 %v1961_v11, %v1947_v14  ;;  %v1786_v16 = vadd.f32 %v5237_v39, %v1625_v34  ;;  %v1628_v17 = vadd.f32 %v4018_v13, %v5301_v6  ;;  %v1963_v62 = vmax.bf16 %v1947_v14, %v1915_v12 }
 0x307   :  { %v2043_v18 = vld [vmem:[#allocation2 + $0x10] sm:$0xff] }
 0x308   :  { %1995 = vst.msk [vmem:[#allocation2 + $0x18] sm:$0xff] %vm33_vm0, %v1979_v15  ;;  %v1789_v19 = vadd.f32 %v5244_v42, %v1628_v17  ;;  %2076 = vrot.lane.b32.xlu1 %v2043_v18, %s4582_s24  ;;  %v4019_v63 = vpop.f32.mrb[20].mxu1  ;;  %2154 = vst.msk [vmem:[#allocation3 + $0x8] sm:$0xff] %vm33_vm0, %v2043_v18  ;;  %v1888_v1 = vmax.f32 %v1786_v16, 0.0 }
 0x309   :  { %2028 = vst.msk [vmem:[#allocation3 + $0x30] sm:$0xff] %vm33_vm0, %v2043_v18  ;;  %v4020_v22 = vpop.f32.mrb[21].mxu1 }
 0x30a   :  { %v1889_v23 = vmax.f32 %v1789_v19, 0.0  ;;  %v4021_v24 = vadd.f32 %v4020_v22, %v4019_v63  ;;  %v4022_v39 = vpop.f32.mrb[22].mxu1 }
 0x30b   :  { %v4023_v26 = vpop.f32.mrb[23].mxu1 }
 0x30c   :  { %v1916_v27 = vpack.c.bf16 %v1889_v23, %v1888_v1  ;;  %v1633_v30 = vadd.f32 %v4021_v24, %v5301_v6  ;;  %v4024_v32 = vadd.f32 %v4023_v26, %v4022_v39 }
 0x30d   :  { %v1948_v8 = vld [vmem:[#allocation2 + $0x28] sm:$0xff] }
 0x30e   :  { %1932 = vst.msk [vmem:[#allocation2 + $0x30] sm:$0xff] %vm33_vm0, %v1916_v27  ;;  %v1980_v42 = vmax.bf16 %v1962_v35, %v1948_v8  ;;  %v1794_v37 = vadd.f32 %v5235_v38, %v1633_v30  ;;  %v1636_v41 = vadd.f32 %v4024_v32, %v5301_v6  ;;  %v1964_v18 = vmax.bf16 %v1948_v8, %v1916_v27 }
 0x30f   :  { %v2170_v43 = vld [vmem:[#allocation2 + $0x18] sm:$0xff] }
 0x310   :  { %1996 = vst.msk [vmem:[#allocation2 + $0x20] sm:$0xff] %vm33_vm0, %v1980_v42  ;;  %v1797_v60 = vadd.f32 %v5239_v40, %v1636_v41  ;;  %2202 = vrot.lane.b32.xlu0 %v2170_v43, %s4582_s24  ;;  %2078 = vrot.lane.b32.xlu1 %v2170_v43, %s4582_s24  ;;  %v4025_v29 = vpop.f32.mrb[24].mxu1  ;;  %2155 = vst.msk [vmem:[#allocation3 + $0x20] sm:$0xff] %vm33_vm0, %v2170_v43  ;;  %v1890_v21 = vmax.f32 %v1794_v37, 0.0 }
 0x311   :  { %2029 = vst.msk [vmem:[#allocation3 + $0x48] sm:$0xff] %vm33_vm0, %v2170_v43  ;;  %v4026_v36 = vpop.f32.mrb[25].mxu1 }
 0x312   :  { %v1891_v25 = vmax.f32 %v1797_v60, 0.0  ;;  %v4027_v38 = vadd.f32 %v4026_v36, %v4025_v29  ;;  %v4028_v28 = vpop.f32.mrb[26].mxu1 }
 0x313   :  { %v4029_v61 = vpop.f32.mrb[27].mxu1 }
 0x314   :  { %v1917_v31 = vpack.c.bf16 %v1891_v25, %v1890_v21  ;;  %v1641_v5 = vadd.f32 %v4027_v38, %v5301_v6  ;;  %v4030_v40 = vadd.f32 %v4029_v61, %v4028_v28 }
 0x315   :  { %v1949_v7 = vld [vmem:[#allocation2 + $0x30] sm:$0xff] }
 0x316   :  { %1933 = vst.msk [vmem:[#allocation2 + $0x38] sm:$0xff] %vm33_vm0, %v1917_v31  ;;  %v1981_v33 = vmax.bf16 %v1963_v62, %v1949_v7  ;;  %v1802_v9 = vadd.f32 %v5251_v45, %v1641_v5  ;;  %v1644_v10 = vadd.f32 %v4030_v40, %v5301_v6 }
 0x317   :  { %v2171_v11 = vld [vmem:[#allocation2 + $0x20] sm:$0xff] }
 0x318   :  { %1997 = vst.msk [vmem:[#allocation2 + $0x28] sm:$0xff] %vm33_vm0, %v1981_v33  ;;  %v1805_v34 = vadd.f32 %v5255_v47, %v1644_v10  ;;  %2204 = vrot.lane.b32.xlu0 %v2171_v11, %s4582_s24  ;;  %2080 = vrot.lane.b32.xlu1 %v2171_v11, %s4582_s24  ;;  %v4031_v12 = vpop.f32.mrb[28].mxu1  ;;  %2282 = vst.msk [vmem:[#allocation3 + $0x10] sm:$0xff] %vm33_vm0, %v2171_v11  ;;  %v1892_v45 = vmax.f32 %v1802_v9, 0.0 }
 0x319   :  { %2156 = vst.msk [vmem:[#allocation3 + $0x38] sm:$0xff] %vm33_vm0, %v2171_v11  ;;  %2030 = vst.msk [vmem:[#allocation3 + $0x60] sm:$0xff] %vm33_vm0, %v2171_v11  ;;  %v4032_v13 = vpop.f32.mrb[29].mxu1 }
 0x31a   :  { %v1893_v14 = vmax.f32 %v1805_v34, 0.0  ;;  %v4033_v15 = vadd.f32 %v4032_v13, %v4031_v12  ;;  %v4034_v16 = vpop.f32.mrb[30].mxu1 }
 0x31b   :  { %v4035_v17 = vpop.f32.mrb[31].mxu1 }
 0x31c   :  { %v1918_v19 = vpack.c.bf16 %v1893_v14, %v1892_v45  ;;  %v1649_v47 = vadd.f32 %v4033_v15, %v5301_v6  ;;  %v4036_v63 = vadd.f32 %v4035_v17, %v4034_v16 }
 0x31d   :  { %v1950_v22 = vld [vmem:[#allocation2 + $0x38] sm:$0xff] }
 0x31e   :  { %1934 = vst.msk [vmem:[#allocation2 + $0x40] sm:$0xff] %vm33_vm0, %v1918_v19  ;;  %v1982_v1 = vmax.bf16 %v1964_v18, %v1950_v22  ;;  %v1810_v23 = vadd.f32 %v5249_v44, %v1649_v47  ;;  %v1652_v24 = vadd.f32 %v4036_v63, %v5301_v6 }
 0x31f   :  { %v2172_v39 = vld [vmem:[#allocation2 + $0x28] sm:$0xff]  ;;  %v2300_v26 = vld [vmem:[#allocation3 + $0x10] sm:$0xff] }
 0x320   :  { %1998 = vst.msk [vmem:[#allocation2 + $0x30] sm:$0xff] %vm33_vm0, %v1982_v1  ;;  %v1813_v35 = vadd.f32 %v5253_v46, %v1652_v24  ;;  %2206 = vrot.lane.b32.xlu0 %v2172_v39, %s4582_s24  ;;  %2082 = vrot.lane.b32.xlu1 %v2172_v39, %s4582_s24  ;;  %v4037_v27 = vpop.f32.mrb[32].mxu1  ;;  %2283 = vst.msk [vmem:[#allocation3 + $0x28] sm:$0xff] %vm33_vm0, %v2172_v39  ;;  %v1894_v30 = vmax.f32 %v1810_v23, 0.0  ;;  %v1965_v46 = vmax.bf16 %v1949_v7, %v1917_v31 }
 0x321   :  { %2157 = vst.msk [vmem:[#allocation3 + $0x50] sm:$0xff] %vm33_vm0, %v2172_v39  ;;  %2031 = vst.msk [vmem:[#allocation3 + $0x78] sm:$0xff] %vm33_vm0, %v2172_v39  ;;  %4415 = vmatprep.mubr.msk.bf16.mxu1 %vm33_vm0, %v2300_v26  ;;  %v4038_v44 = vpop.f32.mrb[33].mxu1 }
 0x322   :  { %v1895_v32 = vmax.f32 %v1813_v35, 0.0  ;;  %v4039_v8 = vadd.f32 %v4038_v44, %v4037_v27  ;;  %v4040_v42 = vpop.f32.mrb[34].mxu1 }
 0x323   :  { %v4041_v37 = vpop.f32.mrb[35].mxu1 }
 0x324   :  { %v1919_v41 = vpack.c.bf16 %v1895_v32, %v1894_v30  ;;  %v1657_v43 = vadd.f32 %v4039_v8, %v5301_v6  ;;  %v4042_v60 = vadd.f32 %v4041_v37, %v4040_v42 }
 0x325   :  { %v1951_v29 = vld [vmem:[#allocation2 + $0x40] sm:$0xff] }
 0x326   :  { %1935 = vst.msk [vmem:[#allocation2 + $0x48] sm:$0xff] %vm33_vm0, %v1919_v41  ;;  %v1983_v36 = vmax.bf16 %v1965_v46, %v1951_v29  ;;  %v1818_v21 = vadd.f32 %v5259_v49, %v1657_v43  ;;  %v1660_v25 = vadd.f32 %v4042_v60, %v5301_v6 }
 0x327   :  { %v2303_v38 = vld [vmem:[#allocation3 + $0x28] sm:$0xff]  ;;  %v2173_v28 = vld [vmem:[#allocation2 + $0x30] sm:$0xff] }
 0x328   :  { %1999 = vst.msk [vmem:[#allocation2 + $0x38] sm:$0xff] %vm33_vm0, %v1983_v36  ;;  %v1821_v61 = vadd.f32 %v5263_v51, %v1660_v25  ;;  %v4043_v62 = vpop.f32.mrb[36].mxu1  ;;  %4416 = vmatmul.mubr.msk.bf16.vlgmr.msra.gmra.mrb[64].mxu1 %vm33_vm0, %v2303_v38  ;;  %2208 = vrot.lane.b32.xlu0 %v2173_v28, %s4582_s24  ;;  %2284 = vst.msk [vmem:[#allocation3 + $0x40] sm:$0xff] %vm33_vm0, %v2173_v28  ;;  %v1896_v31 = vmax.f32 %v1818_v21, 0.0  ;;  %v1966_v51 = vmax.bf16 %v1950_v22, %v1918_v19 }
 0x329   :  { %2158 = vst.msk [vmem:[#allocation3 + $0x68] sm:$0xff] %vm33_vm0, %v2173_v28  ;;  %2032 = vst.msk [vmem:[#allocation3 + $0x90] sm:$0xff] %vm33_vm0, %v2173_v28  ;;  %2084 = vrot.lane.b32.xlu1 %v2173_v28, %s4582_s24  ;;  %v4044_v49 = vpop.f32.mrb[37].mxu1 }
 0x32a   :  { %v1897_v5 = vmax.f32 %v1821_v61, 0.0  ;;  %v4045_v40 = vadd.f32 %v4044_v49, %v4043_v62  ;;  %v4046_v7 = vpop.f32.mrb[38].mxu1 }
 0x32b   :  { %v4047_v33 = vpop.f32.mrb[39].mxu1 }
 0x32c   :  { %v1920_v9 = vpack.c.bf16 %v1897_v5, %v1896_v31  ;;  %v1665_v10 = vadd.f32 %v4045_v40, %v5301_v6  ;;  %v4048_v11 = vadd.f32 %v4047_v33, %v4046_v7 }
 0x32d   :  { %v1952_v34 = vld [vmem:[#allocation2 + $0x48] sm:$0xff] }
 0x32e   :  { %1936 = vst.msk [vmem:[#allocation2 + $0x50] sm:$0xff] %vm33_vm0, %v1920_v9  ;;  %v1984_v12 = vmax.bf16 %v1966_v51, %v1952_v34  ;;  %v1826_v13 = vadd.f32 %v5257_v48, %v1665_v10  ;;  %v1668_v45 = vadd.f32 %v4048_v11, %v5301_v6 }
 0x32f   :  { %v2306_v14 = vld [vmem:[#allocation3 + $0x40] sm:$0xff]  ;;  %v2174_v15 = vld [vmem:[#allocation2 + $0x38] sm:$0xff] }
 0x330   :  { %2000 = vst.msk [vmem:[#allocation2 + $0x40] sm:$0xff] %vm33_vm0, %v1984_v12  ;;  %v1829_v16 = vadd.f32 %v5261_v50, %v1668_v45  ;;  %v4049_v17 = vpop.f32.mrb[40].mxu1  ;;  %4419 = vmatprep.mubr.msk.bf16.mxu1 %vm33_vm0, %v2306_v14  ;;  %2210 = vrot.lane.b32.xlu0 %v2174_v15, %s4582_s24  ;;  %2285 = vst.msk [vmem:[#allocation3 + $0x58] sm:$0xff] %vm33_vm0, %v2174_v15  ;;  %v1898_v18 = vmax.f32 %v1826_v13, 0.0  ;;  %v1967_v50 = vmax.bf16 %v1951_v29, %v1919_v41 }
 0x331   :  { %2159 = vst.msk [vmem:[#allocation3 + $0x80] sm:$0xff] %vm33_vm0, %v2174_v15  ;;  %2033 = vst.msk [vmem:[#allocation3 + $0xa8] sm:$0xff] %vm33_vm0, %v2174_v15  ;;  %2086 = vrot.lane.b32.xlu1 %v2174_v15, %s4582_s24  ;;  %v4050_v48 = vpop.f32.mrb[41].mxu1 }
 0x332   :  { %v1899_v19 = vmax.f32 %v1829_v16, 0.0  ;;  %v4051_v47 = vadd.f32 %v4050_v48, %v4049_v17  ;;  %v4052_v63 = vpop.f32.mrb[42].mxu1 }
 0x333   :  { %v4053_v22 = vpop.f32.mrb[43].mxu1 }
 0x334   :  { %v1921_v1 = vpack.c.bf16 %v1899_v19, %v1898_v18  ;;  %v1673_v23 = vadd.f32 %v4051_v47, %v5301_v6  ;;  %v4054_v24 = vadd.f32 %v4053_v22, %v4052_v63 }
 0x335   :  { %v1953_v39 = vld [vmem:[#allocation2 + $0x50] sm:$0xff] }
 0x336   :  { %1937 = vst.msk [vmem:[#allocation2 + $0x58] sm:$0xff] %vm33_vm0, %v1921_v1  ;;  %v1985_v26 = vmax.bf16 %v1967_v50, %v1953_v39  ;;  %v1834_v35 = vadd.f32 %v5267_v53, %v1673_v23  ;;  %v1676_v27 = vadd.f32 %v4054_v24, %v5301_v6 }
 0x337   :  { %v2309_v44 = vld [vmem:[#allocation3 + $0x58] sm:$0xff]  ;;  %v2175_v30 = vld [vmem:[#allocation2 + $0x40] sm:$0xff] }
 0x338   :  { %2001 = vst.msk [vmem:[#allocation2 + $0x48] sm:$0xff] %vm33_vm0, %v1985_v26  ;;  %v1837_v32 = vadd.f32 %v5271_v55, %v1676_v27  ;;  %v4055_v8 = vpop.f32.mrb[44].mxu1  ;;  %4420 = vmatmul.mubr.msk.bf16.gmra.mrb[68].mxu1 %vm33_vm0, %v2309_v44  ;;  %2212 = vrot.lane.b32.xlu0 %v2175_v30, %s4582_s24  ;;  %2286 = vst.msk [vmem:[#allocation3 + $0x70] sm:$0xff] %vm33_vm0, %v2175_v30  ;;  %v1900_v42 = vmax.f32 %v1834_v35, 0.0  ;;  %v1968_v55 = vmax.bf16 %v1952_v34, %v1920_v9 }
 0x339   :  { %2160 = vst.msk [vmem:[#allocation3 + $0x98] sm:$0xff] %vm33_vm0, %v2175_v30  ;;  %2034 = vst.msk [vmem:[#allocation3 + $0xc0] sm:$0xff] %vm33_vm0, %v2175_v30  ;;  %2088 = vrot.lane.b32.xlu1 %v2175_v30, %s4582_s24  ;;  %v4056_v53 = vpop.f32.mrb[45].mxu1 }
 0x33a   :  { %v1901_v37 = vmax.f32 %v1837_v32, 0.0  ;;  %v4057_v46 = vadd.f32 %v4056_v53, %v4055_v8  ;;  %v4058_v41 = vpop.f32.mrb[46].mxu1 }
 0x33b   :  { %v4059_v43 = vpop.f32.mrb[47].mxu1 }
 0x33c   :  { %v1922_v60 = vpack.c.bf16 %v1901_v37, %v1900_v42  ;;  %v1681_v29 = vadd.f32 %v4057_v46, %v5301_v6  ;;  %v4060_v36 = vadd.f32 %v4059_v43, %v4058_v41 }
 0x33d   :  { %v1954_v21 = vld [vmem:[#allocation2 + $0x58] sm:$0xff] }
 0x33e   :  { %1938 = vst.msk [vmem:[#allocation2 + $0x60] sm:$0xff] %vm33_vm0, %v1922_v60  ;;  %v1986_v25 = vmax.bf16 %v1968_v55, %v1954_v21  ;;  %v1842_v38 = vadd.f32 %v5265_v52, %v1681_v29  ;;  %v1684_v28 = vadd.f32 %v4060_v36, %v5301_v6 }
 0x33f   :  { %v2312_v61 = vld [vmem:[#allocation3 + $0x70] sm:$0xff]  ;;  %v2176_v62 = vld [vmem:[#allocation2 + $0x48] sm:$0xff] }
 0x340   :  { %2002 = vst.msk [vmem:[#allocation2 + $0x50] sm:$0xff] %vm33_vm0, %v1986_v25  ;;  %v1845_v49 = vadd.f32 %v5269_v54, %v1684_v28  ;;  %v4061_v31 = vpop.f32.mrb[48].mxu1  ;;  %4423 = vmatprep.mubr.msk.bf16.mxu1 %vm33_vm0, %v2312_v61  ;;  %2214 = vrot.lane.b32.xlu0 %v2176_v62, %s4582_s24  ;;  %2287 = vst.msk [vmem:[#allocation3 + $0x88] sm:$0xff] %vm33_vm0, %v2176_v62  ;;  %v1902_v5 = vmax.f32 %v1842_v38, 0.0  ;;  %v1969_v54 = vmax.bf16 %v1953_v39, %v1921_v1 }
 0x341   :  { %2161 = vst.msk [vmem:[#allocation3 + $0xb0] sm:$0xff] %vm33_vm0, %v2176_v62  ;;  %2035 = vst.msk [vmem:[#allocation3 + $0xd8] sm:$0xff] %vm33_vm0, %v2176_v62  ;;  %2090 = vrot.lane.b32.xlu1 %v2176_v62, %s4582_s24  ;;  %v4062_v52 = vpop.f32.mrb[49].mxu1 }
 0x342   :  { %v1903_v40 = vmax.f32 %v1845_v49, 0.0  ;;  %v4063_v7 = vadd.f32 %v4062_v52, %v4061_v31  ;;  %v4064_v33 = vpop.f32.mrb[50].mxu1 }
 0x343   :  { %v4065_v51 = vpop.f32.mrb[51].mxu1 }
 0x344   :  { %v1923_v9 = vpack.c.bf16 %v1903_v40, %v1902_v5  ;;  %v1689_v10 = vadd.f32 %v4063_v7, %v5301_v6  ;;  %v4066_v11 = vadd.f32 %v4065_v51, %v4064_v33 }
 0x345   :  { %v1955_v34 = vld [vmem:[#allocation2 + $0x60] sm:$0xff] }
 0x346   :  { %1939 = vst.msk [vmem:[#allocation2 + $0x68] sm:$0xff] %vm33_vm0, %v1923_v9  ;;  %v1987_v12 = vmax.bf16 %v1969_v54, %v1955_v34  ;;  %v1850_v13 = vadd.f32 %v5275_v57, %v1689_v10  ;;  %v1692_v45 = vadd.f32 %v4066_v11, %v5301_v6 }
 0x347   :  { %v2315_v14 = vld [vmem:[#allocation3 + $0x88] sm:$0xff]  ;;  %v2177_v15 = vld [vmem:[#allocation2 + $0x50] sm:$0xff] }
 0x348   :  { %2003 = vst.msk [vmem:[#allocation2 + $0x58] sm:$0xff] %vm33_vm0, %v1987_v12  ;;  %v1853_v16 = vadd.f32 %v5279_v59, %v1692_v45  ;;  %v4067_v17 = vpop.f32.mrb[52].mxu1  ;;  %4424 = vmatmul.mubr.msk.bf16.gmra.mrb[72].mxu1 %vm33_vm0, %v2315_v14  ;;  %2216 = vrot.lane.b32.xlu0 %v2177_v15, %s4582_s24  ;;  %2288 = vst.msk [vmem:[#allocation3 + $0xa0] sm:$0xff] %vm33_vm0, %v2177_v15  ;;  %v1904_v48 = vmax.f32 %v1850_v13, 0.0  ;;  %v1970_v59 = vmax.bf16 %v1954_v21, %v1922_v60 }
 0x349   :  { %2162 = vst.msk [vmem:[#allocation3 + $0xc8] sm:$0xff] %vm33_vm0, %v2177_v15  ;;  %2036 = vst.msk [vmem:[#allocation3 + $0xf0] sm:$0xff] %vm33_vm0, %v2177_v15  ;;  %2092 = vrot.lane.b32.xlu1 %v2177_v15, %s4582_s24  ;;  %v4068_v57 = vpop.f32.mrb[53].mxu1 }
 0x34a   :  { %v1905_v18 = vmax.f32 %v1853_v16, 0.0  ;;  %v4069_v19 = vadd.f32 %v4068_v57, %v4067_v17  ;;  %v4070_v47 = vpop.f32.mrb[54].mxu1  ;;  %v1977_v17 = vld [vmem:[#allocation2 + $0x90] sm:$0xff] }
 0x34b   :  { %v4071_v63 = vpop.f32.mrb[55].mxu1 }
 0x34c   :  { %v1924_v22 = vpack.c.bf16 %v1905_v18, %v1904_v48  ;;  %v1697_v50 = vadd.f32 %v4069_v19, %v5301_v6  ;;  %v4072_v1 = vadd.f32 %v4071_v63, %v4070_v47 }
 0x34d   :  { %v1956_v23 = vld [vmem:[#allocation2 + $0x68] sm:$0xff] }
 0x34e   :  { %1940 = vst.msk [vmem:[#allocation2 + $0x70] sm:$0xff] %vm33_vm0, %v1924_v22  ;;  %v1988_v24 = vmax.bf16 %v1970_v59, %v1956_v23  ;;  %v1858_v39 = vadd.f32 %v5273_v56, %v1697_v50  ;;  %v1700_v26 = vadd.f32 %v4072_v1, %v5301_v6 }
 0x34f   :  { %v2318_v35 = vld [vmem:[#allocation3 + $0xa0] sm:$0xff]  ;;  %v2178_v27 = vld [vmem:[#allocation2 + $0x58] sm:$0xff] }
 0x350   :  { %2004 = vst.msk [vmem:[#allocation2 + $0x60] sm:$0xff] %vm33_vm0, %v1988_v24  ;;  %v1861_v44 = vadd.f32 %v5277_v58, %v1700_v26  ;;  %v4073_v30 = vpop.f32.mrb[56].mxu1  ;;  %4427 = vmatprep.mubr.msk.bf16.mxu1 %vm33_vm0, %v2318_v35  ;;  %2218 = vrot.lane.b32.xlu0 %v2178_v27, %s4582_s24  ;;  %2289 = vst.msk [vmem:[#allocation3 + $0xb8] sm:$0xff] %vm33_vm0, %v2178_v27  ;;  %v1906_v32 = vmax.f32 %v1858_v39, 0.0  ;;  %v1971_v58 = vmax.bf16 %v1955_v34, %v1923_v9  ;;  %v2342_v24 = vld [vmem:[#allocation3 + $0x160] sm:$0xff] }
 0x351   :  { %2163 = vst.msk [vmem:[#allocation3 + $0xe0] sm:$0xff] %vm33_vm0, %v2178_v27  ;;  %2037 = vst.msk [vmem:[#allocation3 + $0x108] sm:$0xff] %vm33_vm0, %v2178_v27  ;;  %2094 = vrot.lane.b32.xlu1 %v2178_v27, %s4582_s24  ;;  %v4074_v56 = vpop.f32.mrb[57].mxu1  ;;  %v2345_v27 = vld [vmem:[#allocation3 + $0x178] sm:$0xff] }
 0x352   :  { %v1907_v8 = vmax.f32 %v1861_v44, 0.0  ;;  %v4075_v53 = vadd.f32 %v4074_v56, %v4073_v30  ;;  %v4076_v42 = vpop.f32.mrb[58].mxu1  ;;  %v2298_v44 = vld [vmem:[#allocation3] sm:$0xff] }
 0x353   :  { %v4077_v37 = vpop.f32.mrb[59].mxu1 }
 0x354   :  { %v1925_v46 = vpack.c.bf16 %v1907_v8, %v1906_v32  ;;  %v1705_v41 = vadd.f32 %v4075_v53, %v5301_v6  ;;  %v4078_v43 = vadd.f32 %v4077_v37, %v4076_v42 }
 0x355   :  { %v1957_v55 = vld [vmem:[#allocation2 + $0x70] sm:$0xff] }
 0x356   :  { %v1989_v60 = vmax.bf16 %v1971_v58, %v1957_v55  ;;  %1941 = vst.msk [vmem:[#allocation2 + $0x78] sm:$0xff] %vm33_vm0, %v1925_v46  ;;  %v1866_v29 = vadd.f32 %v5292_v2, %v1705_v41  ;;  %v1708_v36 = vadd.f32 %v4078_v43, %v5301_v6  ;;  %v1973_v12 = vmax.bf16 %v1957_v55, %v1925_v46 }
 0x357   :  { %v2321_v21 = vld [vmem:[#allocation3 + $0xb8] sm:$0xff]  ;;  %v2179_v25 = vld [vmem:[#allocation2 + $0x60] sm:$0xff] }
 0x358   :  { %2005 = vst.msk [vmem:[#allocation2 + $0x68] sm:$0xff] %vm33_vm0, %v1989_v60  ;;  %v1869_v38 = vadd.f32 %v5296_v4, %v1708_v36  ;;  %v4079_v28 = vpop.f32.mrb[60].mxu1  ;;  %4428 = vmatmul.mubr.msk.bf16.gmra.mrb[76].mxu1 %vm33_vm0, %v2321_v21  ;;  %2220 = vrot.lane.b32.xlu0 %v2179_v25, %s4582_s24  ;;  %2290 = vst.msk [vmem:[#allocation3 + $0xd0] sm:$0xff] %vm33_vm0, %v2179_v25  ;;  %v1908_v61 = vmax.f32 %v1866_v29, 0.0  ;;  %v1972_v4 = vmax.bf16 %v1956_v23, %v1924_v22 }
 0x359   :  { %2164 = vst.msk [vmem:[#allocation3 + $0xf8] sm:$0xff] %vm33_vm0, %v2179_v25  ;;  %2038 = vst.msk [vmem:[#allocation3 + $0x120] sm:$0xff] %vm33_vm0, %v2179_v25  ;;  %2096 = vrot.lane.b32.xlu1 %v2179_v25, %s4582_s24  ;;  %v4080_v2 = vpop.f32.mrb[61].mxu1 }
 0x35a   :  { %v1909_v62 = vmax.f32 %v1869_v38, 0.0  ;;  %v4081_v49 = vadd.f32 %v4080_v2, %v4079_v28  ;;  %v4082_v31 = vpop.f32.mrb[62].mxu1 }
 0x35b   :  { %v4083_v52 = vpop.f32.mrb[63].mxu1 }
 0x35c   :  { %v1926_v5 = vpack.c.bf16 %v1909_v62, %v1908_v61  ;;  %v1713_v40 = vadd.f32 %v4081_v49, %v5301_v6  ;;  %v4084_v7 = vadd.f32 %v4083_v52, %v4082_v31 }
 0x35d   :  { %v1958_v33 = vld [vmem:[#allocation2 + $0x78] sm:$0xff] }
 0x35e   :  { %1942 = vst.msk [vmem:[#allocation2 + $0x80] sm:$0xff] %vm33_vm0, %v1926_v5  ;;  %v1990_v51 = vmax.bf16 %v1972_v4, %v1958_v33  ;;  %v1874_v54 = vadd.f32 %v5290_v0, %v1713_v40  ;;  %v1716_v9 = vadd.f32 %v4084_v7, %v5301_v6  ;;  %v1974_v57 = vmax.bf16 %v1958_v33, %v1926_v5 }
 0x35f   :  { %v2324_v10 = vld [vmem:[#allocation3 + $0xd0] sm:$0xff]  ;;  %v2180_v11 = vld [vmem:[#allocation2 + $0x68] sm:$0xff] }
 0x360   :  { %2006 = vst.msk [vmem:[#allocation2 + $0x70] sm:$0xff] %vm33_vm0, %v1990_v51  ;;  %v1877_v34 = vadd.f32 %v5294_v3, %v1716_v9  ;;  %4431 = vmatprep.mubr.msk.bf16.mxu1 %vm33_vm0, %v2324_v10  ;;  %2222 = vrot.lane.b32.xlu0 %v2180_v11, %s4582_s24  ;;  %2291 = vst.msk [vmem:[#allocation3 + $0xe8] sm:$0xff] %vm33_vm0, %v2180_v11  ;;  %v1910_v0 = vmax.f32 %v1874_v54, 0.0 }
 0x361   :  { %2165 = vst.msk [vmem:[#allocation3 + $0x110] sm:$0xff] %vm33_vm0, %v2180_v11  ;;  %2039 = vst.msk [vmem:[#allocation3 + $0x138] sm:$0xff] %vm33_vm0, %v2180_v11  ;;  %2098 = vrot.lane.b32.xlu1 %v2180_v11, %s4582_s24 }
 0x362   :  { %v1911_v6 = vmax.f32 %v1877_v34, 0.0 }
 0x364   :  { %v1927_v13 = vpack.c.bf16 %v1911_v6, %v1910_v0 }
 0x365   :  { %v1959_v45 = vld [vmem:[#allocation2 + $0x80] sm:$0xff] }
 0x366   :  { %v1991_v14 = vmax.bf16 %v1973_v12, %v1959_v45  ;;  %1943 = vst.msk [vmem:[#allocation2 + $0x88] sm:$0xff] %vm33_vm0, %v1927_v13  ;;  %v1975_v16 = vmax.bf16 %v1959_v45, %v1927_v13 }
 0x367   :  { %v2327_v3 = vld [vmem:[#allocation3 + $0xe8] sm:$0xff]  ;;  %v2181_v15 = vld [vmem:[#allocation2 + $0x70] sm:$0xff] }
 0x368   :  { %2007 = vst.msk [vmem:[#allocation2 + $0x78] sm:$0xff] %vm33_vm0, %v1991_v14  ;;  %4432 = vmatmul.mubr.msk.bf16.gmra.mrb[80].mxu1 %vm33_vm0, %v2327_v3  ;;  %2224 = vrot.lane.b32.xlu0 %v2181_v15, %s4582_s24  ;;  %2292 = vst.msk [vmem:[#allocation3 + $0x100] sm:$0xff] %vm33_vm0, %v2181_v15  ;;  %v1993_v48 = vmax.bf16 %v1977_v17, %v1975_v16 }
 0x369   :  { %2166 = vst.msk [vmem:[#allocation3 + $0x128] sm:$0xff] %vm33_vm0, %v2181_v15  ;;  %2040 = vst.msk [vmem:[#allocation3 + $0x150] sm:$0xff] %vm33_vm0, %v2181_v15  ;;  %2100 = vrot.lane.b32.xlu1 %v2181_v15, %s4582_s24 }
 0x36d   :  { %v1976_v18 = vld [vmem:[#allocation2 + $0x88] sm:$0xff] }
 0x36e   :  { %v1992_v19 = vmax.bf16 %v1976_v18, %v1974_v57  ;;  %2009 = vst.msk [vmem:[#allocation2 + $0x88] sm:$0xff] %vm33_vm0, %v1993_v48 }
 0x36f   :  { %v2330_v47 = vld [vmem:[#allocation3 + $0x100] sm:$0xff]  ;;  %v2182_v63 = vld [vmem:[#allocation2 + $0x78] sm:$0xff] }
 0x370   :  { %2008 = vst.msk [vmem:[#allocation2 + $0x80] sm:$0xff] %vm33_vm0, %v1992_v19  ;;  %4435 = vmatprep.mubr.msk.bf16.mxu1 %vm33_vm0, %v2330_v47  ;;  %2226 = vrot.lane.b32.xlu0 %v2182_v63, %s4582_s24  ;;  %2293 = vst.msk [vmem:[#allocation3 + $0x118] sm:$0xff] %vm33_vm0, %v2182_v63 }
 0x371   :  { %2167 = vst.msk [vmem:[#allocation3 + $0x140] sm:$0xff] %vm33_vm0, %v2182_v63  ;;  %2041 = vst.msk [vmem:[#allocation3 + $0x168] sm:$0xff] %vm33_vm0, %v2182_v63  ;;  %2102 = vrot.lane.b32.xlu1 %v2182_v63, %s4582_s24 }
 0x375   :  { %v2184_v59 = vld [vmem:[#allocation2 + $0x88] sm:$0xff] }
 0x376   :  { %2295 = vst.msk [vmem:[#allocation3 + $0x148] sm:$0xff] %vm33_vm0, %v2184_v59  ;;  %2169 = vst.msk [vmem:[#allocation3 + $0x170] sm:$0xff] %vm33_vm0, %v2184_v59 }
 0x377   :  { %v2333_v22 = vld [vmem:[#allocation3 + $0x118] sm:$0xff]  ;;  %v2183_v50 = vld [vmem:[#allocation2 + $0x80] sm:$0xff] }
 0x378   :  { %4436 = vmatmul.mubr.msk.bf16.gmra.mrb[84].mxu1 %vm33_vm0, %v2333_v22  ;;  %2228 = vrot.lane.b32.xlu0 %v2183_v50, %s4582_s24  ;;  %2294 = vst.msk [vmem:[#allocation3 + $0x130] sm:$0xff] %vm33_vm0, %v2183_v50  ;;  %2168 = vst.msk [vmem:[#allocation3 + $0x158] sm:$0xff] %vm33_vm0, %v2183_v50 }
 0x379   :  { %2104 = vrot.lane.b32.xlu1 %v2183_v50, %s4582_s24 }
 0x37a   :  { %v2077_v1 = vpop.permute.xlu1 %2076 }
 0x37b   :  { %2123 = vst.msk [vmem:[#allocation3 + $0x18] sm:$0xff] %vm1118_vm7, %v2077_v1 }
 0x37c   :  { %2230 = vrot.lane.b32.xlu0 %v2184_v59, %s4582_s24 }
 0x37d   :  { %v2339_v39 = vld [vmem:[#allocation3 + $0x148] sm:$0xff] }
 0x37f   :  { %v2336_v23 = vld [vmem:[#allocation3 + $0x130] sm:$0xff] }
 0x380   :  { %4439 = vmatprep.mubr.msk.bf16.mxu1 %vm33_vm0, %v2336_v23  ;;  %2232 = vrot.lane.b32.xlu0 %v1977_v17, %s4582_s24 }
 0x381   :  { %4440 = vmatmul.mubr.msk.bf16.gmra.mrb[88].mxu1 %vm33_vm0, %v2339_v39 }
 0x382   :  { %v2203_v26 = vpop.permute.xlu0 %2202  ;;  %v2079_v35 = vpop.permute.xlu1 %2078  ;;  %4443 = vmatprep.mubr.msk.bf16.mxu1 %vm33_vm0, %v2342_v24  ;;  %v2301_v37 = vld [vmem:[#allocation3 + $0x18] sm:$0xff] }
 0x383   :  { %2250 = vst.msk [vmem:[#allocation3 + $0x8] sm:$0xff] %vm1118_vm7, %v2203_v26  ;;  %2124 = vst.msk [vmem:[#allocation3 + $0x30] sm:$0xff] %vm1118_vm7, %v2079_v35 }
 0x389   :  { %4444 = vmatmul.mubr.msk.bf16.gmra.mrb[92].mxu1 %vm33_vm0, %v2345_v27 }
 0x38a   :  { %v2205_v30 = vpop.permute.xlu0 %2204  ;;  %v2081_v56 = vpop.permute.xlu1 %2080  ;;  %v2299_v32 = vld [vmem:[#allocation3 + $0x8] sm:$0xff]  ;;  %v2304_v43 = vld [vmem:[#allocation3 + $0x30] sm:$0xff] }
 0x38b   :  { %2251 = vst.msk [vmem:[#allocation3 + $0x20] sm:$0xff] %vm1118_vm7, %v2205_v30  ;;  %2125 = vst.msk [vmem:[#allocation3 + $0x48] sm:$0xff] %vm1118_vm7, %v2081_v56  ;;  %2593 = vmatprep.mubr.bf16.mxu0 %v2299_v32 }
 0x38c   :  { %2594 = vmatmul.mubr.bf16.vlgmr.msra.gmra.mrb[64].mxu0 %v2298_v44 }
 0x392   :  { %v2207_v8 = vpop.permute.xlu0 %2206  ;;  %v2083_v53 = vpop.permute.xlu1 %2082  ;;  %v2302_v42 = vld [vmem:[#allocation3 + $0x20] sm:$0xff]  ;;  %v2307_v36 = vld [vmem:[#allocation3 + $0x48] sm:$0xff] }
 0x393   :  { %2252 = vst.msk [vmem:[#allocation3 + $0x38] sm:$0xff] %vm1118_vm7, %v2207_v8  ;;  %2126 = vst.msk [vmem:[#allocation3 + $0x60] sm:$0xff] %vm1118_vm7, %v2083_v53  ;;  %2601 = vmatprep.mubr.bf16.mxu0 %v2302_v42 }
 0x394   :  { %2602 = vmatmul.mubr.bf16.gmra.mrb[68].mxu0 %v2301_v37 }
 0x39a   :  { %v2209_v58 = vpop.permute.xlu0 %2208  ;;  %v2305_v46 = vld [vmem:[#allocation3 + $0x38] sm:$0xff]  ;;  %v2310_v28 = vld [vmem:[#allocation3 + $0x60] sm:$0xff] }
 0x39b   :  { %2253 = vst.msk [vmem:[#allocation3 + $0x50] sm:$0xff] %vm1118_vm7, %v2209_v58  ;;  %v2085_v41 = vpop.permute.xlu1 %2084  ;;  %2609 = vmatprep.mubr.bf16.mxu0 %v2305_v46 }
 0x39c   :  { %2127 = vst.msk [vmem:[#allocation3 + $0x78] sm:$0xff] %vm1118_vm7, %v2085_v41  ;;  %2610 = vmatmul.mubr.bf16.gmra.mrb[72].mxu0 %v2304_v43 }
 0x3a2   :  { %v2211_v55 = vpop.permute.xlu0 %2210  ;;  %v2308_v60 = vld [vmem:[#allocation3 + $0x50] sm:$0xff] }
 0x3a3   :  { %2254 = vst.msk [vmem:[#allocation3 + $0x68] sm:$0xff] %vm1118_vm7, %v2211_v55  ;;  %v2087_v29 = vpop.permute.xlu1 %2086  ;;  %2617 = vmatprep.mubr.bf16.mxu0 %v2308_v60  ;;  %v2313_v49 = vld [vmem:[#allocation3 + $0x78] sm:$0xff] }
 0x3a4   :  { %2128 = vst.msk [vmem:[#allocation3 + $0x90] sm:$0xff] %vm1118_vm7, %v2087_v29  ;;  %2618 = vmatmul.mubr.bf16.gmra.mrb[76].mxu0 %v2307_v36 }
 0x3aa   :  { %v2213_v21 = vpop.permute.xlu0 %2212  ;;  %v2311_v25 = vld [vmem:[#allocation3 + $0x68] sm:$0xff] }
 0x3ab   :  { %2255 = vst.msk [vmem:[#allocation3 + $0x80] sm:$0xff] %vm1118_vm7, %v2213_v21  ;;  %v2089_v38 = vpop.permute.xlu1 %2088  ;;  %2625 = vmatprep.mubr.bf16.mxu0 %v2311_v25  ;;  %v2316_v5 = vld [vmem:[#allocation3 + $0x90] sm:$0xff] }
 0x3ac   :  { %2129 = vst.msk [vmem:[#allocation3 + $0xa8] sm:$0xff] %vm1118_vm7, %v2089_v38  ;;  %2626 = vmatmul.mubr.bf16.gmra.mrb[80].mxu0 %v2310_v28 }
 0x3b2   :  { %v2215_v2 = vpop.permute.xlu0 %2214  ;;  %v2314_v61 = vld [vmem:[#allocation3 + $0x80] sm:$0xff] }
 0x3b3   :  { %2256 = vst.msk [vmem:[#allocation3 + $0x98] sm:$0xff] %vm1118_vm7, %v2215_v2  ;;  %v2091_v62 = vpop.permute.xlu1 %2090  ;;  %2633 = vmatprep.mubr.bf16.mxu0 %v2314_v61  ;;  %v2319_v51 = vld [vmem:[#allocation3 + $0xa8] sm:$0xff] }
 0x3b4   :  { %2130 = vst.msk [vmem:[#allocation3 + $0xc0] sm:$0xff] %vm1118_vm7, %v2091_v62  ;;  %2634 = vmatmul.mubr.bf16.gmra.mrb[84].mxu0 %v2313_v49 }
 0x3ba   :  { %v2217_v31 = vpop.permute.xlu0 %2216  ;;  %v2317_v52 = vld [vmem:[#allocation3 + $0x98] sm:$0xff] }
 0x3bb   :  { %2257 = vst.msk [vmem:[#allocation3 + $0xb0] sm:$0xff] %vm1118_vm7, %v2217_v31  ;;  %v2093_v4 = vpop.permute.xlu1 %2092  ;;  %2641 = vmatprep.mubr.bf16.mxu0 %v2317_v52  ;;  %v2322_v11 = vld [vmem:[#allocation3 + $0xc0] sm:$0xff] }
 0x3bc   :  { %2131 = vst.msk [vmem:[#allocation3 + $0xd8] sm:$0xff] %vm1118_vm7, %v2093_v4  ;;  %2642 = vmatmul.mubr.bf16.gmra.mrb[88].mxu0 %v2316_v5 }
 0x3c2   :  { %v2219_v40 = vpop.permute.xlu0 %2218  ;;  %v2320_v7 = vld [vmem:[#allocation3 + $0xb0] sm:$0xff] }
 0x3c3   :  { %2258 = vst.msk [vmem:[#allocation3 + $0xc8] sm:$0xff] %vm1118_vm7, %v2219_v40  ;;  %v2095_v33 = vpop.permute.xlu1 %2094  ;;  %2649 = vmatprep.mubr.bf16.mxu0 %v2320_v7  ;;  %v2325_v12 = vld [vmem:[#allocation3 + $0xd8] sm:$0xff] }
 0x3c4   :  { %2132 = vst.msk [vmem:[#allocation3 + $0xf0] sm:$0xff] %vm1118_vm7, %v2095_v33  ;;  %2650 = vmatmul.mubr.bf16.gmra.mrb[92].mxu0 %v2319_v51  ;;  %v5624_v33 = vld [vmem:[%s5950_s6] ss:$0 sm:$0xff] }
 0x3ca   :  { %v2221_v54 = vpop.permute.xlu0 %2220  ;;  %v2323_v9 = vld [vmem:[#allocation3 + $0xc8] sm:$0xff] }
 0x3cb   :  { %2259 = vst.msk [vmem:[#allocation3 + $0xe0] sm:$0xff] %vm1118_vm7, %v2221_v54  ;;  %v2097_v10 = vpop.permute.xlu1 %2096  ;;  %2657 = vmatprep.mubr.bf16.mxu0 %v2323_v9  ;;  %v2328_v3 = vld [vmem:[#allocation3 + $0xf0] sm:$0xff] }
 0x3cc   :  { %2133 = vst.msk [vmem:[#allocation3 + $0x108] sm:$0xff] %vm1118_vm7, %v2097_v10  ;;  %2658 = vmatmul.mubr.bf16.gmra.mrb[96].mxu0 %v2322_v11 }
 0x3d2   :  { %v2223_v34 = vpop.permute.xlu0 %2222  ;;  %v2326_v0 = vld [vmem:[#allocation3 + $0xe0] sm:$0xff] }
 0x3d3   :  { %2260 = vst.msk [vmem:[#allocation3 + $0xf8] sm:$0xff] %vm1118_vm7, %v2223_v34  ;;  %v2099_v6 = vpop.permute.xlu1 %2098  ;;  %2665 = vmatprep.mubr.bf16.mxu0 %v2326_v0  ;;  %v2331_v57 = vld [vmem:[#allocation3 + $0x108] sm:$0xff] }
 0x3d4   :  { %2134 = vst.msk [vmem:[#allocation3 + $0x120] sm:$0xff] %vm1118_vm7, %v2099_v6  ;;  %2666 = vmatmul.mubr.bf16.gmra.mrb[100].mxu0 %v2325_v12 }
 0x3da   :  { %v2225_v13 = vpop.permute.xlu0 %2224  ;;  %v2329_v45 = vld [vmem:[#allocation3 + $0xf8] sm:$0xff] }
 0x3db   :  { %2261 = vst.msk [vmem:[#allocation3 + $0x110] sm:$0xff] %vm1118_vm7, %v2225_v13  ;;  %v2101_v14 = vpop.permute.xlu1 %2100  ;;  %2673 = vmatprep.mubr.bf16.mxu0 %v2329_v45  ;;  %v2334_v47 = vld [vmem:[#allocation3 + $0x120] sm:$0xff] }
 0x3dc   :  { %2135 = vst.msk [vmem:[#allocation3 + $0x138] sm:$0xff] %vm1118_vm7, %v2101_v14  ;;  %2674 = vmatmul.mubr.bf16.gmra.mrb[104].mxu0 %v2328_v3 }
 0x3e2   :  { %v2227_v15 = vpop.permute.xlu0 %2226  ;;  %v2332_v16 = vld [vmem:[#allocation3 + $0x110] sm:$0xff] }
 0x3e3   :  { %2262 = vst.msk [vmem:[#allocation3 + $0x128] sm:$0xff] %vm1118_vm7, %v2227_v15  ;;  %v2103_v17 = vpop.permute.xlu1 %2102  ;;  %2681 = vmatprep.mubr.bf16.mxu0 %v2332_v16  ;;  %v2337_v50 = vld [vmem:[#allocation3 + $0x138] sm:$0xff] }
 0x3e4   :  { %2136 = vst.msk [vmem:[#allocation3 + $0x150] sm:$0xff] %vm1118_vm7, %v2103_v17  ;;  %2682 = vmatmul.mubr.bf16.gmra.mrb[108].mxu0 %v2331_v57 }
 0x3ea   :  { %v2229_v48 = vpop.permute.xlu0 %2228  ;;  %v2335_v18 = vld [vmem:[#allocation3 + $0x128] sm:$0xff] }
 0x3eb   :  { %2263 = vst.msk [vmem:[#allocation3 + $0x140] sm:$0xff] %vm1118_vm7, %v2229_v48  ;;  %v2105_v19 = vpop.permute.xlu1 %2104  ;;  %2689 = vmatprep.mubr.bf16.mxu0 %v2335_v18  ;;  %v2340_v39 = vld [vmem:[#allocation3 + $0x150] sm:$0xff] }
 0x3ec   :  { %2137 = vst.msk [vmem:[#allocation3 + $0x168] sm:$0xff] %vm1118_vm7, %v2105_v19  ;;  %2690 = vmatmul.mubr.bf16.gmra.mrb[112].mxu0 %v2334_v47 }
 0x3ee   :  { %v2231_v63 = vpop.permute.xlu0 %2230 }
 0x3ef   :  { %2264 = vst.msk [vmem:[#allocation3 + $0x158] sm:$0xff] %vm1118_vm7, %v2231_v63 }
 0x3f2   :  { %v2338_v59 = vld [vmem:[#allocation3 + $0x140] sm:$0xff]  ;;  %v2233_v22 = vpop.permute.xlu0 %2232 }
 0x3f3   :  { %2697 = vmatprep.mubr.bf16.mxu0 %v2338_v59  ;;  %2265 = vst.msk [vmem:[#allocation3 + $0x170] sm:$0xff] %vm1118_vm7, %v2233_v22  ;;  %v2343_v44 = vld [vmem:[#allocation3 + $0x168] sm:$0xff] }
 0x3f4   :  { %2698 = vmatmul.mubr.bf16.gmra.mrb[116].mxu0 %v2337_v50 }
 0x3f6   :  { %v2341_v1 = vld [vmem:[#allocation3 + $0x158] sm:$0xff] }
 0x3f7   :  { %2705 = vmatprep.mubr.bf16.mxu0 %v2341_v1  ;;  %v4513_v1 = vld [vmem:[%s5951_s7 + $0x140] sm:$0xff]  }
 0x3f8   :  { %4281 = vmatprep.subr.bf16.mxu0 %v4513_v1 }
 0x3fa   :  { %v2344_v23 = vld [vmem:[#allocation3 + $0x170] sm:$0xff] }
 0x3fb   :  { %v4417_v24 = vpop.f32.mrb[64].mxu1 }
 0x3fc   :  { %2706 = vmatmul.mubr.bf16.gmra.mrb[120].mxu0 %v2340_v39  ;;  %v2756_v26 = vpop.f32.mrb[65].mxu1 }
 0x3fd   :  { %v4418_v35 = vpop.f32.mrb[66].mxu1  ;;  %2713 = vmatprep.mubr.bf16.mxu0 %v2344_v23 }
 0x3fe   :  { %v2759_v27 = vpop.f32.mrb[67].mxu1 }
 0x404   :  { %2714 = vmatmul.mubr.bf16.gmra.mrb[124].mxu0 %v2343_v44  ;;  %v4514_v44 = vld [vmem:[%s5951_s7 + $0x100] sm:$0xff]  }
 0x405   :  { %4282 = vmatpush3.bf16.msra.mxu0 %v4514_v44 }
 0x40b   :  { %v5565_v30 = vpop.f32.mrb[68].mxu1 }
 0x40c   :  { %v5567_v56 = vpop.f32.mrb[69].mxu1 }
 0x40d   :  { %v5569_v32 = vpop.f32.mrb[70].mxu1 }
 0x40e   :  { %v5571_v8 = vpop.f32.mrb[71].mxu1 }
 0x41b   :  { %v5573_v53 = vpop.f32.mrb[72].mxu1 }
 0x41c   :  { %v5575_v42 = vpop.f32.mrb[73].mxu1 }
 0x41d   :  { %v5577_v37 = vpop.f32.mrb[74].mxu1 }
 0x41e   :  { %v5579_v58 = vpop.f32.mrb[75].mxu1 }
 0x42b   :  { %v5581_v46 = vpop.f32.mrb[76].mxu1 }
 0x42c   :  { %v5583_v41 = vpop.f32.mrb[77].mxu1 }
 0x42d   :  { %v5585_v43 = vpop.f32.mrb[78].mxu1 }
 0x42e   :  { %v5587_v55 = vpop.f32.mrb[79].mxu1 }
 0x43b   :  { %v5589_v60 = vpop.f32.mrb[80].mxu1 }
 0x43c   :  { %v5591_v29 = vpop.f32.mrb[81].mxu1 }
 0x43d   :  { %v5593_v36 = vpop.f32.mrb[82].mxu1 }
 0x43e   :  { %v5595_v21 = vpop.f32.mrb[83].mxu1 }
 0x44b   :  { %v5597_v25 = vpop.f32.mrb[84].mxu1 }
 0x44c   :  { %v5599_v38 = vpop.f32.mrb[85].mxu1 }
 0x44d   :  { %v5601_v28 = vpop.f32.mrb[86].mxu1 }
 0x44e   :  { %v5603_v2 = vpop.f32.mrb[87].mxu1 }
 0x454   :  { %v5605_v61 = vpop.f32.mrb[88].mxu1 }
 0x455   :  { %v5607_v62 = vpop.f32.mrb[89].mxu1 }
 0x456   :  { %v5609_v49 = vpop.f32.mrb[90].mxu1 }
 0x457   :  { %v5611_v31 = vpop.f32.mrb[91].mxu1 }
 0x45c   :  { %v5613_v52 = vpop.f32.mrb[92].mxu1 }
 0x45d   :  { %v5615_v4 = vpop.f32.mrb[93].mxu1 }
 0x45e   :  { %v5617_v5 = vpop.f32.mrb[94].mxu1 }
 0x45f   :  { %v4121_v40 = vpop.f32.mrb[64].mxu0  ;;  %v5619_v7 = vpop.f32.mrb[95].mxu1 }
 0x460   :  { %v4122_v51 = vpop.f32.mrb[65].mxu0 }
 0x461   :  { %v4123_v54 = vadd.f32 %v4122_v51, %v4121_v40  ;;  %v4124_v9 = vpop.f32.mrb[66].mxu0  ;;  %v4515_v51 = vld [vmem:[%s5951_s7 + $0x40] sm:$0xff]  }
 0x462   :  { %v4125_v10 = vpop.f32.mrb[67].mxu0  ;;  %4237 = vmatprep.subr.bf16.mxu1 %v4515_v51 }
 0x463   :  { %v2596_v11 = vadd.f32 %v4123_v54, %v5624_v33  ;;  %v4126_v34 = vadd.f32 %v4125_v10, %v4124_v9  ;;  %v4516_v54 = vld [vmem:[%s5951_s7] sm:$0xff]  }
 0x464   :  { %4238 = vmatpush3.bf16.msra.mxu1 %v4516_v54  ;;  %v4526_v54 = vld [vmem:[%s5951_s7 + $0x20] sm:$0xff]  }
 0x465   :  { %v2757_v0 = vadd.f32 %v2756_v26, %v2596_v11  ;;  %v2599_v6 = vadd.f32 %v4126_v34, %v5624_v33  ;;  %v4517_v11 = vld [vmem:[%s5951_s7 + $0x48] sm:$0xff]  }
 0x466   :  { %v4518_v34 = vld [vmem:[%s5951_s7 + $0x8] sm:$0xff]   ;;  %4239 = vmatprep.subr.bf16.mxu1 %v4517_v11 }
 0x467   :  { %v2760_v12 = vadd.f32 %v2759_v27, %v2599_v6  ;;  %v4127_v13 = vpop.f32.mrb[68].mxu0  ;;  %v2883_v14 = vmax.f32 %v2757_v0, 0.0 }
 0x468   :  { %v4128_v45 = vpop.f32.mrb[69].mxu0  ;;  %4240 = vmatpush3.bf16.msra.mxu1 %v4518_v34 }
 0x469   :  { %v2884_v3 = vmax.f32 %v2760_v12, 0.0  ;;  %v4129_v15 = vadd.f32 %v4128_v45, %v4127_v13  ;;  %v4130_v16 = vpop.f32.mrb[70].mxu0  ;;  %v4520_v13 = vld [vmem:[%s5951_s7 + $0x108] sm:$0xff]  }
 0x46a   :  { %v4131_v17 = vpop.f32.mrb[71].mxu0 }
 0x46b   :  { %v2915_v57 = vpack.c.bf16 %v2884_v3, %v2883_v14  ;;  %v2604_v48 = vadd.f32 %v4129_v15, %v5624_v33  ;;  %v4132_v18 = vadd.f32 %v4131_v17, %v4130_v16  ;;  %v4521_v14 = vld [vmem:[%s5951_s7 + $0x50] sm:$0xff]  }
 0x46c   :  { %v4522_v17 = vld [vmem:[%s5951_s7 + $0x10] sm:$0xff]   ;;  %4241 = vmatprep.subr.bf16.mxu1 %v4521_v14 }
 0x46d   :  { %2931 = vst.msk [vmem:[#allocation2 + $0x10] sm:$0xff] %vm33_vm0, %v2915_v57  ;;  %v2765_v19 = vadd.f32 %v4417_v24, %v2604_v48  ;;  %v2607_v47 = vadd.f32 %v4132_v18, %v5624_v33  ;;  %v2963_v48 = vmax.bf16 %v2915_v57, %v5341_v20  ;;  %v4524_v57 = vld [vmem:[%s5951_s7 + $0x18] sm:$0xff]   ;;  %4242 = vmatpush3.bf16.msra.mxu1 %v4522_v17 }
 0x46f   :  { %v2885_v63 = vmax.f32 %v2765_v19, 0.0  ;;  %v2768_v59 = vadd.f32 %v4418_v35, %v2607_v47  ;;  %v4133_v22 = vpop.f32.mrb[72].mxu0 }
 0x470   :  { %v4134_v50 = vpop.f32.mrb[73].mxu0 }
 0x471   :  { %v2886_v23 = vmax.f32 %v2768_v59, 0.0  ;;  %v4135_v39 = vadd.f32 %v4134_v50, %v4133_v22  ;;  %v4136_v26 = vpop.f32.mrb[74].mxu0 }
 0x472   :  { %v4137_v27 = vpop.f32.mrb[75].mxu0 }
 0x473   :  { %v5637_v24 = vpack.c.bf16 %v2886_v23, %v2885_v63  ;;  %v2612_v40 = vadd.f32 %v4135_v39, %v5624_v33  ;;  %v4138_v35 = vadd.f32 %v4137_v27, %v4136_v26  ;;  %v4523_v63 = vld [vmem:[%s5951_s7 + $0x58] sm:$0xff]  }
 0x474   :  { %v2948_v59 = vld [vmem:[#allocation2 + $0x10] sm:$0xff]  ;;  %4243 = vmatprep.subr.bf16.mxu1 %v4523_v63 }
 0x475   :  { %2932 = vst.msk [vmem:[#allocation2 + $0x18] sm:$0xff] %vm33_vm0, %v5637_v24  ;;  %v2773_v9 = vadd.f32 %v5567_v56, %v2612_v40  ;;  %v2615_v10 = vadd.f32 %v4138_v35, %v5624_v33  ;;  %v4519_v56 = vld [vmem:[%s5951_s7 + $0x148] sm:$0xff]   ;;  %4244 = vmatpush3.bf16.msra.mxu1 %v4524_v57  ;;  %v4534_v57 = vld [vmem:[%s5951_s7 + $0x38] sm:$0xff]  }
 0x476   :  { %4283 = vmatprep.subr.bf16.mxu0 %v4519_v56 }
 0x477   :  { %v2887_v0 = vmax.f32 %v2773_v9, 0.0  ;;  %v2776_v6 = vadd.f32 %v5571_v8, %v2615_v10  ;;  %v4139_v12 = vpop.f32.mrb[76].mxu0  ;;  %4284 = vmatpush3.bf16.msra.mxu0 %v4520_v13  ;;  %v2964_v9 = vmax.bf16 %v2948_v59, %v5637_v24 }
 0x478   :  { %v4140_v45 = vpop.f32.mrb[77].mxu0 }
 0x479   :  { %v2888_v3 = vmax.f32 %v2776_v6, 0.0  ;;  %v4141_v15 = vadd.f32 %v4140_v45, %v4139_v12  ;;  %v4142_v16 = vpop.f32.mrb[78].mxu0  ;;  %v4529_v6 = vld [vmem:[%s5951_s7 + $0x110] sm:$0xff]   ;;  %v4530_v45 = vld [vmem:[%s5951_s7 + $0x28] sm:$0xff]  }
 0x47a   :  { %v4143_v8 = vpop.f32.mrb[79].mxu0 }
 0x47b   :  { %v5670_v18 = vpack.c.bf16 %v2888_v3, %v2887_v0  ;;  %v2620_v19 = vadd.f32 %v4141_v15, %v5624_v33  ;;  %v4144_v47 = vadd.f32 %v4143_v8, %v4142_v16  ;;  %v4528_v0 = vld [vmem:[%s5951_s7 + $0x68] sm:$0xff]   ;;  %v4531_v15 = vld [vmem:[%s5951_s7 + $0x70] sm:$0xff]  }
 0x47c   :  { %v2949_v22 = vld [vmem:[#allocation2 + $0x18] sm:$0xff] }
 0x47d   :  { %2933 = vst.msk [vmem:[#allocation2 + $0x20] sm:$0xff] %vm33_vm0, %v5670_v18  ;;  %v2981_v50 = vmax.bf16 %v2963_v48, %v2949_v22  ;;  %v2781_v1 = vadd.f32 %v5565_v30, %v2620_v19  ;;  %v2623_v20 = vadd.f32 %v4144_v47, %v5624_v33  ;;  %v4525_v30 = vld [vmem:[%s5951_s7 + $0x60] sm:$0xff]   ;;  %v4532_v19 = vld [vmem:[%s5951_s7 + $0x30] sm:$0xff]   ;;  %v2965_v63 = vmax.bf16 %v2949_v22, %v5670_v18 }
 0x47e   :  { %4245 = vmatprep.subr.bf16.mxu1 %v4525_v30 }
 0x47f   :  { %2997 = vst.msk [vmem:[#allocation2 + $0x10] sm:$0xff] %vm33_vm0, %v2981_v50  ;;  %v2784_v23 = vadd.f32 %v5569_v32, %v2623_v20  ;;  %v4145_v39 = vpop.f32.mrb[80].mxu0  ;;  %v2889_v26 = vmax.f32 %v2781_v1, 0.0  ;;  %v4527_v32 = vld [vmem:[%s5951_s7 + $0x150] sm:$0xff]   ;;  %4246 = vmatpush3.bf16.msra.mxu1 %v4526_v54 }
 0x480   :  { %v4146_v27 = vpop.f32.mrb[81].mxu0  ;;  %4285 = vmatprep.subr.bf16.mxu0 %v4527_v32  ;;  %4247 = vmatprep.subr.bf16.mxu1 %v4528_v0 }
 0x481   :  { %v2890_v44 = vmax.f32 %v2784_v23, 0.0  ;;  %v4147_v40 = vadd.f32 %v4146_v27, %v4145_v39  ;;  %v4148_v35 = vpop.f32.mrb[82].mxu0  ;;  %4286 = vmatpush3.bf16.msra.mxu0 %v4529_v6 }
 0x482   :  { %v4149_v51 = vpop.f32.mrb[83].mxu0 }
 0x483   :  { %v2918_v10 = vpack.c.bf16 %v2890_v44, %v2889_v26  ;;  %v2628_v11 = vadd.f32 %v4147_v40, %v5624_v33  ;;  %v4150_v34 = vadd.f32 %v4149_v51, %v4148_v35  ;;  %4248 = vmatpush3.bf16.msra.mxu1 %v4530_v45 }
 0x484   :  { %v2950_v12 = vld [vmem:[#allocation2 + $0x20] sm:$0xff]  ;;  %4249 = vmatprep.subr.bf16.mxu1 %v4531_v15 }
 0x485   :  { %2934 = vst.msk [vmem:[#allocation2 + $0x28] sm:$0xff] %vm33_vm0, %v2918_v10  ;;  %v2982_v56 = vmax.bf16 %v2964_v9, %v2950_v12  ;;  %v2789_v24 = vadd.f32 %v5575_v42, %v2628_v11  ;;  %v2631_v13 = vadd.f32 %v4150_v34, %v5624_v33 }
 0x487   :  { %2998 = vst.msk [vmem:[#allocation2 + $0x18] sm:$0xff] %vm33_vm0, %v2982_v56  ;;  %v2792_v14 = vadd.f32 %v5579_v58, %v2631_v13  ;;  %v4151_v3 = vpop.f32.mrb[84].mxu0  ;;  %v2891_v42 = vmax.f32 %v2789_v24, 0.0  ;;  %v4533_v58 = vld [vmem:[%s5951_s7 + $0x78] sm:$0xff]   ;;  %4250 = vmatpush3.bf16.msra.mxu1 %v4532_v19 }
 0x488   :  { %v4152_v16 = vpop.f32.mrb[85].mxu0  ;;  %4251 = vmatprep.subr.bf16.mxu1 %v4533_v58 }
 0x489   :  { %v2892_v8 = vmax.f32 %v2792_v14, 0.0  ;;  %v4153_v17 = vadd.f32 %v4152_v16, %v4151_v3  ;;  %v4154_v48 = vpop.f32.mrb[86].mxu0 }
 0x48a   :  { %v4155_v47 = vpop.f32.mrb[87].mxu0 }
 0x48b   :  { %v2919_v59 = vpack.c.bf16 %v2892_v8, %v2891_v42  ;;  %v2636_v50 = vadd.f32 %v4153_v17, %v5624_v33  ;;  %v4156_v1 = vadd.f32 %v4155_v47, %v4154_v48  ;;  %4252 = vmatpush3.bf16.msra.mxu1 %v4534_v57 }
 0x48c   :  { %v2951_v20 = vld [vmem:[#allocation2 + $0x28] sm:$0xff] }
 0x48d   :  { %2935 = vst.msk [vmem:[#allocation2 + $0x30] sm:$0xff] %vm33_vm0, %v2919_v59  ;;  %v2983_v23 = vmax.bf16 %v2965_v63, %v2951_v20  ;;  %v2797_v39 = vadd.f32 %v5573_v53, %v2636_v50  ;;  %v2639_v26 = vadd.f32 %v4156_v1, %v5624_v33  ;;  %v2966_v53 = vmax.bf16 %v2950_v12, %v2918_v10  ;;  %v4537_v10 = vld [vmem:[%s5951_s7 + $0x158] sm:$0xff]  }
 0x48e   :  { %v3014_v27 = vld [vmem:[#allocation2 + $0x18] sm:$0xff]  ;;  %4287 = vmatprep.subr.bf16.mxu0 %v4537_v10  ;;  %v2967_v42 = vmax.bf16 %v2951_v20, %v2919_v59 }
 0x48f   :  { %2999 = vst.msk [vmem:[#allocation2 + $0x20] sm:$0xff] %vm33_vm0, %v2983_v23  ;;  %v2800_v18 = vadd.f32 %v5577_v37, %v2639_v26  ;;  %v4157_v22 = vpop.f32.mrb[88].mxu0  ;;  %3030 = vrot.lane.b32.xlu1 %v3014_v27, %s4582_s24  ;;  %v2893_v44 = vmax.f32 %v2797_v39, 0.0  ;;  %v4535_v37 = vld [vmem:[%s5951_s7 + $0xc0] sm:$0xff]   ;;  %v4539_v12 = vld [vmem:[%s5951_s7 + $0x118] sm:$0xff]  }
 0x490   :  { %v4158_v40 = vpop.f32.mrb[89].mxu0  ;;  %4259 = vmatprep.subr.bf16.mxu1 %v4535_v37  ;;  %4288 = vmatpush3.bf16.msra.mxu0 %v4539_v12 }
 0x491   :  { %v2894_v35 = vmax.f32 %v2800_v18, 0.0  ;;  %v4159_v51 = vadd.f32 %v4158_v40, %v4157_v22  ;;  %v4160_v30 = vpop.f32.mrb[90].mxu0 }
 0x492   :  { %v4161_v54 = vpop.f32.mrb[91].mxu0 }
 0x493   :  { %v2920_v32 = vpack.c.bf16 %v2894_v35, %v2893_v44  ;;  %v2644_v9 = vadd.f32 %v4159_v51, %v5624_v33  ;;  %v4162_v11 = vadd.f32 %v4161_v54, %v4160_v30  ;;  %v4547_v51 = vld [vmem:[%s5951_s7 + $0x160] sm:$0xff]  }
 0x494   :  { %v2952_v34 = vld [vmem:[#allocation2 + $0x30] sm:$0xff]  ;;  %v4549_v30 = vld [vmem:[%s5951_s7 + $0x120] sm:$0xff]   ;;  %4289 = vmatprep.subr.bf16.mxu0 %v4547_v51 }
 0x495   :  { %2936 = vst.msk [vmem:[#allocation2 + $0x38] sm:$0xff] %vm33_vm0, %v2920_v32  ;;  %v2984_v0 = vmax.bf16 %v2966_v53, %v2952_v34  ;;  %v2805_v6 = vadd.f32 %v5583_v41, %v2644_v9  ;;  %v2647_v56 = vadd.f32 %v4162_v11, %v5624_v33  ;;  %v2968_v27 = vmax.bf16 %v2952_v34, %v2920_v32 }
 0x496   :  { %4290 = vmatpush3.bf16.msra.mxu0 %v4549_v30 }
 0x497   :  { %3000 = vst.msk [vmem:[#allocation2 + $0x28] sm:$0xff] %vm33_vm0, %v2984_v0  ;;  %v2808_v24 = vadd.f32 %v5587_v55, %v2647_v56  ;;  %v4163_v13 = vpop.f32.mrb[92].mxu0  ;;  %v2895_v41 = vmax.f32 %v2805_v6, 0.0 }
 0x498   :  { %v4164_v45 = vpop.f32.mrb[93].mxu0 }
 0x499   :  { %v2896_v14 = vmax.f32 %v2808_v24, 0.0  ;;  %v4165_v3 = vadd.f32 %v4164_v45, %v4163_v13  ;;  %v4166_v15 = vpop.f32.mrb[94].mxu0 }
 0x49a   :  { %v4167_v16 = vpop.f32.mrb[95].mxu0 }
 0x49b   :  { %v2921_v8 = vpack.c.bf16 %v2896_v14, %v2895_v41  ;;  %v2652_v17 = vadd.f32 %v4165_v3, %v5624_v33  ;;  %v4168_v48 = vadd.f32 %v4167_v16, %v4166_v15 }
 0x49c   :  { %v2953_v19 = vld [vmem:[#allocation2 + $0x38] sm:$0xff] }
 0x49d   :  { %2937 = vst.msk [vmem:[#allocation2 + $0x40] sm:$0xff] %vm33_vm0, %v2921_v8  ;;  %v2985_v47 = vmax.bf16 %v2967_v42, %v2953_v19  ;;  %v2813_v55 = vadd.f32 %v5581_v46, %v2652_v17  ;;  %v2655_v58 = vadd.f32 %v4168_v48, %v5624_v33  ;;  %v2969_v0 = vmax.bf16 %v2953_v19, %v2921_v8 }
 0x49e   :  { %v3016_v63 = vld [vmem:[#allocation2 + $0x28] sm:$0xff] }
 0x49f   :  { %3001 = vst.msk [vmem:[#allocation2 + $0x30] sm:$0xff] %vm33_vm0, %v2985_v47  ;;  %v2816_v50 = vadd.f32 %v5585_v43, %v2655_v58  ;;  %3033 = vrot.lane.b32.xlu0 %v3016_v63, %s4582_s24  ;;  %v4169_v59 = vpop.f32.mrb[96].mxu0  ;;  %v2897_v1 = vmax.f32 %v2813_v55, 0.0  ;;  %v4555_v58 = vld [vmem:[%s5951_s7 + $0x168] sm:$0xff]  }
 0x4a0   :  { %v4170_v20 = vpop.f32.mrb[97].mxu0  ;;  %4291 = vmatprep.subr.bf16.mxu0 %v4555_v58 }
 0x4a1   :  { %v2898_v57 = vmax.f32 %v2816_v50, 0.0  ;;  %v4171_v23 = vadd.f32 %v4170_v20, %v4169_v59  ;;  %v4172_v39 = vpop.f32.mrb[98].mxu0 }
 0x4a2   :  { %v4173_v26 = vpop.f32.mrb[99].mxu0 }
 0x4a3   :  { %v2922_v18 = vpack.c.bf16 %v2898_v57, %v2897_v1  ;;  %v2660_v46 = vadd.f32 %v4171_v23, %v5624_v33  ;;  %v4174_v22 = vadd.f32 %v4173_v26, %v4172_v39 }
 0x4a4   :  { %v2954_v44 = vld [vmem:[#allocation2 + $0x40] sm:$0xff] }
 0x4a5   :  { %2938 = vst.msk [vmem:[#allocation2 + $0x48] sm:$0xff] %vm33_vm0, %v2922_v18  ;;  %v2986_v40 = vmax.bf16 %v2968_v27, %v2954_v44  ;;  %v2821_v43 = vadd.f32 %v5591_v29, %v2660_v46  ;;  %v2663_v35 = vadd.f32 %v4174_v22, %v5624_v33  ;;  %v2970_v48 = vmax.bf16 %v2954_v44, %v2922_v18 }
 0x4a7   :  { %3002 = vst.msk [vmem:[#allocation2 + $0x38] sm:$0xff] %vm33_vm0, %v2986_v40  ;;  %v2824_v54 = vadd.f32 %v5595_v21, %v2663_v35  ;;  %v4175_v53 = vpop.f32.mrb[100].mxu0  ;;  %v2899_v9 = vmax.f32 %v2821_v43, 0.0 }
 0x4a8   :  { %v4176_v32 = vpop.f32.mrb[101].mxu0 }
 0x4a9   :  { %v2900_v29 = vmax.f32 %v2824_v54, 0.0  ;;  %v4177_v11 = vadd.f32 %v4176_v32, %v4175_v53  ;;  %v4178_v37 = vpop.f32.mrb[102].mxu0 }
 0x4aa   :  { %v4179_v34 = vpop.f32.mrb[103].mxu0 }
 0x4ab   :  { %v2923_v6 = vpack.c.bf16 %v2900_v29, %v2899_v9  ;;  %v2668_v56 = vadd.f32 %v4177_v11, %v5624_v33  ;;  %v4180_v10 = vadd.f32 %v4179_v34, %v4178_v37  ;;  %v4558_v34 = vld [vmem:[%s5951_s7 + $0x130] sm:$0xff]  }
 0x4ac   :  { %v2955_v12 = vld [vmem:[#allocation2 + $0x48] sm:$0xff] }
 0x4ad   :  { %2939 = vst.msk [vmem:[#allocation2 + $0x50] sm:$0xff] %vm33_vm0, %v2923_v6  ;;  %v2987_v24 = vmax.bf16 %v2969_v0, %v2955_v12  ;;  %v2829_v21 = vadd.f32 %v5589_v60, %v2668_v56  ;;  %v2671_v13 = vadd.f32 %v4180_v10, %v5624_v33  ;;  %v2971_v46 = vmax.bf16 %v2955_v12, %v2923_v6  ;;  %v4563_v12 = vld [vmem:[%s5951_s7 + $0x178] sm:$0xff]  }
 0x4ae   :  { %v3018_v45 = vld [vmem:[#allocation2 + $0x38] sm:$0xff] }
 0x4af   :  { %3003 = vst.msk [vmem:[#allocation2 + $0x40] sm:$0xff] %vm33_vm0, %v2987_v24  ;;  %v2832_v41 = vadd.f32 %v5593_v36, %v2671_v13  ;;  %3036 = vrot.lane.b32.xlu1 %v3018_v45, %s4582_s24  ;;  %v4181_v14 = vpop.f32.mrb[104].mxu0  ;;  %v2901_v3 = vmax.f32 %v2829_v21, 0.0  ;;  %v4556_v36 = vld [vmem:[%s5951_s7 + $0x128] sm:$0xff]   ;;  %v4564_v45 = vld [vmem:[%s5951_s7 + $0x138] sm:$0xff]  }
 0x4b0   :  { %v4182_v15 = vpop.f32.mrb[105].mxu0  ;;  %4292 = vmatpush3.bf16.msra.mxu0 %v4556_v36 }
 0x4b1   :  { %v2902_v16 = vmax.f32 %v2832_v41, 0.0  ;;  %v4183_v42 = vadd.f32 %v4182_v15, %v4181_v14  ;;  %v4184_v8 = vpop.f32.mrb[106].mxu0 }
 0x4b2   :  { %v4185_v17 = vpop.f32.mrb[107].mxu0 }
 0x4b3   :  { %v2924_v19 = vpack.c.bf16 %v2902_v16, %v2901_v3  ;;  %v2676_v60 = vadd.f32 %v4183_v42, %v5624_v33  ;;  %v4186_v47 = vadd.f32 %v4185_v17, %v4184_v8 }
 0x4b4   :  { %v2956_v55 = vld [vmem:[#allocation2 + $0x50] sm:$0xff] }
 0x4b5   :  { %2940 = vst.msk [vmem:[#allocation2 + $0x58] sm:$0xff] %vm33_vm0, %v2924_v19  ;;  %v2988_v63 = vmax.bf16 %v2970_v48, %v2956_v55  ;;  %v2837_v50 = vadd.f32 %v5599_v38, %v2676_v60  ;;  %v2679_v59 = vadd.f32 %v4186_v47, %v5624_v33  ;;  %v2972_v0 = vmax.bf16 %v2956_v55, %v2924_v19 }
 0x4b7   :  { %3004 = vst.msk [vmem:[#allocation2 + $0x48] sm:$0xff] %vm33_vm0, %v2988_v63  ;;  %v2840_v1 = vadd.f32 %v5603_v2, %v2679_v59  ;;  %v4187_v20 = vpop.f32.mrb[108].mxu0  ;;  %v2903_v23 = vmax.f32 %v2837_v50, 0.0 }
 0x4b8   :  { %v4188_v57 = vpop.f32.mrb[109].mxu0 }
 0x4b9   :  { %v2904_v39 = vmax.f32 %v2840_v1, 0.0  ;;  %v4189_v26 = vadd.f32 %v4188_v57, %v4187_v20  ;;  %v4190_v27 = vpop.f32.mrb[110].mxu0 }
 0x4ba   :  { %v4191_v18 = vpop.f32.mrb[111].mxu0 }
 0x4bb   :  { %v2925_v22 = vpack.c.bf16 %v2904_v39, %v2903_v23  ;;  %v2684_v44 = vadd.f32 %v4189_v26, %v5624_v33  ;;  %v4192_v38 = vadd.f32 %v4191_v18, %v4190_v27 }
 0x4bc   :  { %v2957_v40 = vld [vmem:[#allocation2 + $0x58] sm:$0xff] }
 0x4bd   :  { %2941 = vst.msk [vmem:[#allocation2 + $0x60] sm:$0xff] %vm33_vm0, %v2925_v22  ;;  %v2989_v43 = vmax.bf16 %v2971_v46, %v2957_v40  ;;  %v2845_v35 = vadd.f32 %v5597_v25, %v2684_v44  ;;  %v2687_v2 = vadd.f32 %v4192_v38, %v5624_v33  ;;  %v4557_v25 = vld [vmem:[%s5951_s7 + $0x170] sm:$0xff]   ;;  %v2973_v17 = vmax.bf16 %v2957_v40, %v2925_v22 }
 0x4be   :  { %v3020_v51 = vld [vmem:[#allocation2 + $0x48] sm:$0xff]  ;;  %4293 = vmatprep.subr.bf16.mxu0 %v4557_v25 }
 0x4bf   :  { %3005 = vst.msk [vmem:[#allocation2 + $0x50] sm:$0xff] %vm33_vm0, %v2989_v43  ;;  %v2848_v30 = vadd.f32 %v5601_v28, %v2687_v2  ;;  %v4193_v54 = vpop.f32.mrb[112].mxu0  ;;  %3039 = vrot.lane.b32.xlu0 %v3020_v51, %s4582_s24  ;;  %v2905_v32 = vmax.f32 %v2845_v35, 0.0  ;;  %4294 = vmatpush3.bf16.msra.mxu0 %v4558_v34 }
 0x4c0   :  { %v4194_v53 = vpop.f32.mrb[113].mxu0  ;;  %4295 = vmatprep.subr.bf16.mxu0 %v4563_v12 }
 0x4c1   :  { %v2906_v9 = vmax.f32 %v2848_v30, 0.0  ;;  %v4195_v29 = vadd.f32 %v4194_v53, %v4193_v54  ;;  %v4196_v11 = vpop.f32.mrb[114].mxu0 }
 0x4c2   :  { %v4197_v37 = vpop.f32.mrb[115].mxu0 }
 0x4c3   :  { %v2926_v6 = vpack.c.bf16 %v2906_v9, %v2905_v32  ;;  %v2692_v28 = vadd.f32 %v4195_v29, %v5624_v33  ;;  %v4198_v56 = vadd.f32 %v4197_v37, %v4196_v11  ;;  %4296 = vmatpush3.bf16.msra.mxu0 %v4564_v45 }
 0x4c4   :  { %v2958_v10 = vld [vmem:[#allocation2 + $0x60] sm:$0xff] }
 0x4c5   :  { %2942 = vst.msk [vmem:[#allocation2 + $0x68] sm:$0xff] %vm33_vm0, %v2926_v6  ;;  %v2990_v24 = vmax.bf16 %v2972_v0, %v2958_v10  ;;  %v2853_v21 = vadd.f32 %v5607_v62, %v2692_v28  ;;  %v2695_v13 = vadd.f32 %v4198_v56, %v5624_v33  ;;  %v2974_v26 = vmax.bf16 %v2958_v10, %v2926_v6 }
 0x4c7   :  { %3006 = vst.msk [vmem:[#allocation2 + $0x58] sm:$0xff] %vm33_vm0, %v2990_v24  ;;  %v2856_v41 = vadd.f32 %v5611_v31, %v2695_v13  ;;  %v4199_v14 = vpop.f32.mrb[116].mxu0  ;;  %v2907_v15 = vmax.f32 %v2853_v21, 0.0  ;;  %v2980_v24 = vld [vmem:[#allocation2 + $0x90] sm:$0xff] }
 0x4c8   :  { %v4200_v3 = vpop.f32.mrb[117].mxu0 }
 0x4c9   :  { %v2908_v16 = vmax.f32 %v2856_v41, 0.0  ;;  %v4201_v42 = vadd.f32 %v4200_v3, %v4199_v14  ;;  %v4202_v8 = vpop.f32.mrb[118].mxu0 }
 0x4ca   :  { %v4203_v62 = vpop.f32.mrb[119].mxu0 }
 0x4cb   :  { %v2927_v48 = vpack.c.bf16 %v2908_v16, %v2907_v15  ;;  %v2700_v19 = vadd.f32 %v4201_v42, %v5624_v33  ;;  %v4204_v60 = vadd.f32 %v4203_v62, %v4202_v8  ;;  %v3015_v15 = vld [vmem:[#allocation2 + $0x20] sm:$0xff]  ;;  %v3013_v42 = vld [vmem:[#allocation2 + $0x10] sm:$0xff]  ;;  %v4538_v62 = vld [vmem:[%s5951_s7 + $0xc8] sm:$0xff]  }
 0x4cc   :  { %v2959_v47 = vld [vmem:[#allocation2 + $0x68] sm:$0xff]  ;;  %v4536_v16 = vld [vmem:[%s5951_s7 + $0x80] sm:$0xff]  }
 0x4cd   :  { %2943 = vst.msk [vmem:[#allocation2 + $0x70] sm:$0xff] %vm33_vm0, %v2927_v48  ;;  %v2991_v55 = vmax.bf16 %v2973_v17, %v2959_v47  ;;  %v2861_v58 = vadd.f32 %v5605_v61, %v2700_v19  ;;  %v2703_v31 = vadd.f32 %v4204_v60, %v5624_v33  ;;  %v2975_v53 = vmax.bf16 %v2959_v47, %v2927_v48  ;;  %v4540_v48 = vld [vmem:[%s5951_s7 + $0x88] sm:$0xff]   ;;  %v4541_v19 = vld [vmem:[%s5951_s7 + $0xd0] sm:$0xff]   ;;  %v4543_v47 = vld [vmem:[%s5951_s7 + $0xd8] sm:$0xff]  }
 0x4ce   :  { %v3022_v36 = vld [vmem:[#allocation2 + $0x58] sm:$0xff]  ;;  %v4542_v60 = vld [vmem:[%s5951_s7 + $0x90] sm:$0xff]  }
 0x4cf   :  { %3007 = vst.msk [vmem:[#allocation2 + $0x60] sm:$0xff] %vm33_vm0, %v2991_v55  ;;  %v2864_v63 = vadd.f32 %v5609_v49, %v2703_v31  ;;  %v4205_v50 = vpop.f32.mrb[120].mxu0  ;;  %3042 = vrot.lane.b32.xlu1 %v3022_v36, %s4582_s24  ;;  %v2909_v1 = vmax.f32 %v2861_v58, 0.0  ;;  %v4544_v55 = vld [vmem:[%s5951_s7 + $0x98] sm:$0xff]   ;;  %v4545_v58 = vld [vmem:[%s5951_s7 + $0xe0] sm:$0xff]   ;;  %v4548_v36 = vld [vmem:[%s5951_s7 + $0xe8] sm:$0xff]  }
 0x4d0   :  { %v4206_v59 = vpop.f32.mrb[121].mxu0  ;;  %v4546_v31 = vld [vmem:[%s5951_s7 + $0xa0] sm:$0xff]  }
 0x4d1   :  { %v2910_v20 = vmax.f32 %v2864_v63, 0.0  ;;  %v4207_v57 = vadd.f32 %v4206_v59, %v4205_v50  ;;  %v4208_v23 = vpop.f32.mrb[122].mxu0  ;;  %v4550_v63 = vld [vmem:[%s5951_s7 + $0xa8] sm:$0xff]   ;;  %v4551_v50 = vld [vmem:[%s5951_s7 + $0xf0] sm:$0xff]  }
 0x4d2   :  { %v4209_v39 = vpop.f32.mrb[123].mxu0  ;;  %v4552_v59 = vld [vmem:[%s5951_s7 + $0xb0] sm:$0xff]  }
 0x4d3   :  { %v2928_v27 = vpack.c.bf16 %v2910_v20, %v2909_v1  ;;  %v4210_v18 = vadd.f32 %v4209_v39, %v4208_v23  ;;  %v2708_v61 = vadd.f32 %v4207_v57, %v5624_v33  ;;  %v4553_v1 = vld [vmem:[%s5951_s7 + $0xf8] sm:$0xff]   ;;  %v4559_v57 = vld [vmem:[%s5951_s7 + $0x1c0] sm:$0xff]  }
 0x4d4   :  { %v2960_v46 = vld [vmem:[#allocation2 + $0x70] sm:$0xff]  ;;  %v4554_v20 = vld [vmem:[%s5951_s7 + $0xb8] sm:$0xff]  }
 0x4d5   :  { %v2992_v22 = vmax.bf16 %v2974_v26, %v2960_v46  ;;  %2944 = vst.msk [vmem:[#allocation2 + $0x78] sm:$0xff] %vm33_vm0, %v2928_v27  ;;  %v2869_v49 = vadd.f32 %v5615_v4, %v2708_v61  ;;  %v2711_v44 = vadd.f32 %v4210_v18, %v5624_v33  ;;  %v2976_v28 = vmax.bf16 %v2960_v46, %v2928_v27  ;;  %v3019_v26 = vld [vmem:[#allocation2 + $0x40] sm:$0xff]  ;;  %v3017_v18 = vld [vmem:[#allocation2 + $0x30] sm:$0xff]  ;;  %v4561_v46 = vld [vmem:[%s5951_s7 + $0x1c8] sm:$0xff]  }
 0x4d6   :  { %v4560_v27 = vld [vmem:[%s5951_s7 + $0x180] sm:$0xff]  }
 0x4d7   :  { %3008 = vst.msk [vmem:[#allocation2 + $0x68] sm:$0xff] %vm33_vm0, %v2992_v22  ;;  %v2872_v38 = vadd.f32 %v5619_v7, %v2711_v44  ;;  %v4211_v40 = vpop.f32.mrb[124].mxu0  ;;  %v2911_v35 = vmax.f32 %v2869_v49, 0.0  ;;  %v4562_v49 = vld [vmem:[%s5951_s7 + $0x188] sm:$0xff]   ;;  %v4565_v44 = vld [vmem:[%s5951_s7 + $0x1d0] sm:$0xff]  }
 0x4d8   :  { %v4212_v43 = vpop.f32.mrb[125].mxu0 }
 0x4d9   :  { %v2912_v2 = vmax.f32 %v2872_v38, 0.0  ;;  %v4213_v51 = vadd.f32 %v4212_v43, %v4211_v40  ;;  %v4214_v30 = vpop.f32.mrb[126].mxu0  ;;  %v4566_v38 = vld [vmem:[%s5951_s7 + $0x190] sm:$0xff]   ;;  %v4567_v40 = vld [vmem:[%s5951_s7 + $0x1d8] sm:$0xff]  }
 0x4da   :  { %v4215_v54 = vpop.f32.mrb[127].mxu0  ;;  %v4568_v43 = vld [vmem:[%s5951_s7 + $0x198] sm:$0xff]  }
 0x4db   :  { %v2929_v32 = vpack.c.bf16 %v2912_v2, %v2911_v35  ;;  %v2716_v9 = vadd.f32 %v4213_v51, %v5624_v33  ;;  %v4216_v29 = vadd.f32 %v4215_v54, %v4214_v30  ;;  %v4569_v35 = vld [vmem:[%s5951_s7 + $0x1e0] sm:$0xff]   ;;  %v4571_v51 = vld [vmem:[%s5951_s7 + $0x1e8] sm:$0xff]   ;;  %v4573_v54 = vld [vmem:[%s5951_s7 + $0x1f0] sm:$0xff]  }
 0x4dc   :  { %v2961_v11 = vld [vmem:[#allocation2 + $0x78] sm:$0xff]  ;;  %v4570_v2 = vld [vmem:[%s5951_s7 + $0x1a0] sm:$0xff]   ;;  %v4572_v30 = vld [vmem:[%s5951_s7 + $0x1a8] sm:$0xff]  }
 0x4dd   :  { %2945 = vst.msk [vmem:[#allocation2 + $0x80] sm:$0xff] %vm33_vm0, %v2929_v32  ;;  %v2993_v4 = vmax.bf16 %v2975_v53, %v2961_v11  ;;  %v2877_v37 = vadd.f32 %v5613_v52, %v2716_v9  ;;  %v2719_v7 = vadd.f32 %v4216_v29, %v5624_v33  ;;  %v2977_v33 = vmax.bf16 %v2961_v11, %v2929_v32  ;;  %v4574_v53 = vld [vmem:[%s5951_s7 + $0x1b0] sm:$0xff]   ;;  %v4575_v32 = vld [vmem:[%s5951_s7 + $0x1f8] sm:$0xff]  }
 0x4de   :  { %v3024_v25 = vld [vmem:[#allocation2 + $0x68] sm:$0xff]  ;;  %v4576_v9 = vld [vmem:[%s5951_s7 + $0x1b8] sm:$0xff]  }
 0x4df   :  { %3009 = vst.msk [vmem:[#allocation2 + $0x70] sm:$0xff] %vm33_vm0, %v2993_v4  ;;  %v2880_v34 = vadd.f32 %v5617_v5, %v2719_v7  ;;  %3045 = vrot.lane.b32.xlu0 %v3024_v25, %s4582_s24  ;;  %v2913_v0 = vmax.f32 %v2877_v37, 0.0  ;;  %v3023_v4 = vld [vmem:[#allocation2 + $0x60] sm:$0xff]  ;;  %v3021_v37 = vld [vmem:[#allocation2 + $0x50] sm:$0xff] }
 0x4e1   :  { %v2914_v6 = vmax.f32 %v2880_v34, 0.0 }
 0x4e3   :  { %v2930_v56 = vpack.c.bf16 %v2914_v6, %v2913_v0 }
 0x4e4   :  { %v2962_v10 = vld [vmem:[#allocation2 + $0x80] sm:$0xff] }
 0x4e5   :  { %v2994_v12 = vmax.bf16 %v2976_v28, %v2962_v10  ;;  %2946 = vst.msk [vmem:[#allocation2 + $0x88] sm:$0xff] %vm33_vm0, %v2930_v56  ;;  %v2978_v52 = vmax.bf16 %v2962_v10, %v2930_v56 }
 0x4e6   :  { %v3025_v28 = vld [vmem:[#allocation2 + $0x70] sm:$0xff] }
 0x4e7   :  { %3010 = vst.msk [vmem:[#allocation2 + $0x78] sm:$0xff] %vm33_vm0, %v2994_v12  ;;  %v2996_v21 = vmax.bf16 %v2980_v24, %v2978_v52 }
 0x4ec   :  { %v2979_v13 = vld [vmem:[#allocation2 + $0x88] sm:$0xff] }
 0x4ed   :  { %v2995_v45 = vmax.bf16 %v2979_v13, %v2977_v33  ;;  %3012 = vst.msk [vmem:[#allocation2 + $0x88] sm:$0xff] %vm33_vm0, %v2996_v21 }
 0x4ee   :  { %v3026_v5 = vld [vmem:[#allocation2 + $0x78] sm:$0xff] }
 0x4ef   :  { %3011 = vst.msk [vmem:[#allocation2 + $0x80] sm:$0xff] %vm33_vm0, %v2995_v45  ;;  %3048 = vrot.lane.b32.xlu1 %v3026_v5, %s4582_s24  ;;  %v3887_v45 = vld [vmem:[%s5952_s8] ss:$0 sm:$0xff] }
 0x4f4   :  { %v3028_v41 = vld [vmem:[#allocation2 + $0x88] sm:$0xff] }
 0x4f5   :  { %3051 = vrot.lane.b32.xlu0 %v3028_v41, %s4582_s24 }
 0x4f6   :  { %v3027_v6 = vld [vmem:[#allocation2 + $0x80] sm:$0xff] }
 0x501   :  { %v3031_v14 = vpop.permute.xlu1 %3030 }
 0x502   :  { %v3055_v17 = vsel %vm33_vm0, %v3013_v42, %v3031_v14 }
 0x511   :  { %v3034_v3 = vpop.permute.xlu0 %3033 }
 0x512   :  { %v3059_v8 = vsel %vm33_vm0, %v3015_v15, %v3034_v3 }
 0x513   :  { %3636 = vmatprep.mubr.bf16.mxu1 %v3059_v8 }
 0x514   :  { %3637 = vmatmul.mubr.bf16.vlgmr.msra.gmra.mrb[96].mxu1 %v3055_v17 }
 0x515   :  { %4260 = vmatpush3.bf16.msra.mxu1 %v4536_v16 }
 0x516   :  { %4261 = vmatprep.subr.bf16.mxu1 %v4538_v62 }
 0x519   :  { %4262 = vmatpush3.bf16.msra.mxu1 %v4540_v48 }
 0x51a   :  { %4263 = vmatprep.subr.bf16.mxu1 %v4541_v19 }
 0x51d   :  { %4264 = vmatpush3.bf16.msra.mxu1 %v4542_v60 }
 0x51e   :  { %4265 = vmatprep.subr.bf16.mxu1 %v4543_v47 }
 0x521   :  { %4266 = vmatpush3.bf16.msra.mxu1 %v4544_v55  ;;  %v3037_v23 = vpop.permute.xlu1 %3036 }
 0x522   :  { %4267 = vmatprep.subr.bf16.mxu1 %v4545_v58  ;;  %v3063_v22 = vsel %vm33_vm0, %v3017_v18, %v3037_v23 }
 0x525   :  { %4268 = vmatpush3.bf16.msra.mxu1 %v4546_v31 }
 0x526   :  { %4269 = vmatprep.subr.bf16.mxu1 %v4548_v36 }
 0x529   :  { %4270 = vmatpush3.bf16.msra.mxu1 %v4550_v63 }
 0x52a   :  { %4271 = vmatprep.subr.bf16.mxu1 %v4551_v50 }
 0x52d   :  { %4272 = vmatpush3.bf16.msra.mxu1 %v4552_v59 }
 0x52e   :  { %4273 = vmatprep.subr.bf16.mxu1 %v4553_v1 }
 0x531   :  { %4274 = vmatpush3.bf16.msra.mxu1 %v4554_v20  ;;  %v3040_v39 = vpop.permute.xlu0 %3039 }
 0x532   :  { %v3067_v61 = vsel %vm33_vm0, %v3019_v26, %v3040_v39  ;;  %4303 = vmatprep.subr.bf16.mxu1 %v4559_v57 }
 0x533   :  { %3677 = vmatprep.mubr.bf16.mxu1 %v3067_v61 }
 0x534   :  { %3678 = vmatmul.mubr.bf16.vlgmr.msra.gmra.mrb[100].mxu1 %v3063_v22 }
 0x535   :  { %4304 = vmatpush3.bf16.msra.mxu1 %v4560_v27 }
 0x536   :  { %4305 = vmatprep.subr.bf16.mxu1 %v4561_v46 }
 0x539   :  { %4306 = vmatpush3.bf16.msra.mxu1 %v4562_v49 }
 0x53a   :  { %4307 = vmatprep.subr.bf16.mxu1 %v4565_v44 }
 0x53d   :  { %4308 = vmatpush3.bf16.msra.mxu1 %v4566_v38 }
 0x53e   :  { %4309 = vmatprep.subr.bf16.mxu1 %v4567_v40 }
 0x541   :  { %4310 = vmatpush3.bf16.msra.mxu1 %v4568_v43  ;;  %v3043_v29 = vpop.permute.xlu1 %3042 }
 0x542   :  { %4311 = vmatprep.subr.bf16.mxu1 %v4569_v35  ;;  %v3071_v25 = vsel %vm33_vm0, %v3021_v37, %v3043_v29 }
 0x545   :  { %4312 = vmatpush3.bf16.msra.mxu1 %v4570_v2 }
 0x546   :  { %4313 = vmatprep.subr.bf16.mxu1 %v4571_v51 }
 0x549   :  { %4314 = vmatpush3.bf16.msra.mxu1 %v4572_v30 }
 0x54a   :  { %4315 = vmatprep.subr.bf16.mxu1 %v4573_v54 }
 0x54d   :  { %4316 = vmatpush3.bf16.msra.mxu1 %v4574_v53 }
 0x54e   :  { %4317 = vmatprep.subr.bf16.mxu1 %v4575_v32 }
 0x551   :  { %v3046_v11 = vpop.permute.xlu0 %3045  ;;  %4318 = vmatpush3.bf16.msra.mxu1 %v4576_v9 }
 0x552   :  { %v3075_v7 = vsel %vm33_vm0, %v3023_v4, %v3046_v11 }
 0x553   :  { %3718 = vmatprep.mubr.bf16.mxu0 %v3075_v7 }
 0x554   :  { %3719 = vmatmul.mubr.bf16.vlgmr.msra.gmra.mrb[128].mxu0 %v3071_v25 }
 0x561   :  { %v3049_v34 = vpop.permute.xlu1 %3048 }
 0x562   :  { %v3079_v10 = vsel %vm33_vm0, %v3025_v28, %v3049_v34 }
 0x567   :  { %v3052_v0 = vpop.permute.xlu0 %3051 }
 0x568   :  { %v3083_v56 = vsel %vm33_vm0, %v3027_v6, %v3052_v0 }
 0x569   :  { %3759 = vmatprep.mubr.bf16.mxu1 %v3083_v56 }
 0x56a   :  { %3760 = vmatmul.mubr.bf16.vlgmr.msra.gmra.mrb[104].mxu1 %v3079_v10 }
 0x5e7   :  { %v4253_v12 = vpop.f32.mrb[96].mxu1 }
 0x5e8   :  { %v4254_v52 = vpop.f32.mrb[97].mxu1 }
 0x5e9   :  { %v4255_v24 = vadd.f32 %v4254_v52, %v4253_v12  ;;  %v4256_v33 = vpop.f32.mrb[98].mxu1 }
 0x5ea   :  { %v4257_v21 = vpop.f32.mrb[99].mxu1 }
 0x5eb   :  { %v4258_v13 = vadd.f32 %v4257_v21, %v4256_v33  ;;  %v3639_v14 = vadd.f32 %v4255_v24, %v3887_v45 }
 0x5ed   :  { %v3642_v42 = vadd.f32 %v4258_v13, %v3887_v45 }
 0x607   :  { %v4275_v5 = vpop.f32.mrb[100].mxu1 }
 0x608   :  { %v4276_v41 = vpop.f32.mrb[101].mxu1 }
 0x609   :  { %v4277_v3 = vadd.f32 %v4276_v41, %v4275_v5  ;;  %v4278_v15 = vpop.f32.mrb[102].mxu1 }
 0x60a   :  { %v4279_v16 = vpop.f32.mrb[103].mxu1 }
 0x60b   :  { %v3680_v8 = vadd.f32 %v4277_v3, %v3639_v14  ;;  %v4280_v62 = vadd.f32 %v4279_v16, %v4278_v15 }
 0x60d   :  { %v3683_v17 = vadd.f32 %v4280_v62, %v3642_v42 }
 0x627   :  { %v4297_v48 = vpop.f32.mrb[128].mxu0 }
 0x628   :  { %v4298_v19 = vpop.f32.mrb[129].mxu0 }
 0x629   :  { %v4299_v60 = vadd.f32 %v4298_v19, %v4297_v48  ;;  %v4300_v47 = vpop.f32.mrb[130].mxu0 }
 0x62a   :  { %v4301_v55 = vpop.f32.mrb[131].mxu0 }
 0x62b   :  { %v3721_v58 = vadd.f32 %v4299_v60, %v3680_v8  ;;  %v4302_v31 = vadd.f32 %v4301_v55, %v4300_v47 }
 0x62d   :  { %v3724_v36 = vadd.f32 %v4302_v31, %v3683_v17 }
 0x63d   :  { %v4319_v63 = vpop.f32.mrb[104].mxu1 }
 0x63e   :  { %v4320_v50 = vpop.f32.mrb[105].mxu1 }
 0x63f   :  { %v4321_v59 = vadd.f32 %v4320_v50, %v4319_v63  ;;  %v4322_v1 = vpop.f32.mrb[106].mxu1 }
 0x640   :  { %v4323_v20 = vpop.f32.mrb[107].mxu1 }
 0x641   :  { %v3762_v57 = vadd.f32 %v4321_v59, %v3721_v58  ;;  %v4324_v23 = vadd.f32 %v4323_v20, %v4322_v1 }
 0x643   :  { %3769 = vst.msk [vmem:[%s5953_s9] sm:$0xff] %vm3768_vm8, %v3762_v57  ;;  %v3765_v39 = vadd.f32 %v4324_v23, %v3724_v36 }
 0x645   :  { %3770 = vst.msk [vmem:[%s5953_s9 + $0x8] sm:$0xff] %vm3768_vm8, %v3765_v39 }

</bundles_post_ra>
